<compile_context>
chip_gen: v7x
topology: tpu7x:2x2x1
jax: 0.10.0
libtpu: 0.0.40
codegen_flags: <defaults>
</compile_context>

<pallas_src>
import functools
import math

import jax
import jax.numpy as jnp
import numpy as np
from jax.experimental import pallas as pl
from jax.experimental.pallas import tpu as pltpu

LANE = 128      # TPU lane width -> padded hidden size Hp
SUBLANE = 8     # f32 sublane count -> padded batch granularity


def _round_up(x, m):
    return (x + m - 1) // m * m


# ---------------------------------------------------------------------------
# Fused Pallas kernel: (3 streams) x (num_layers LSTM layers) x (FC head)
# ---------------------------------------------------------------------------
def hier_lstm_kernel(x_ref, wih_ref, whh_ref, b_ref,
                     whfc_ref, wefc_ref, bfc_ref, ext_ref,
                     out_ref, *, T, Bp):
    """One grid step == one LSTM stream.

    x_ref   : (1, T*Bp, Hp)     time-major, batch-flattened, feature-padded input
    wih_ref : (1, L, Hp, 4*Hp)  per-layer input->gate weights (gate order i,f,g,o)
    whh_ref : (1, L, Hp, 4*Hp)  per-layer hidden->gate weights
    b_ref   : (1, L, 1, 4*Hp)   per-layer combined bias (b_ih + b_hh)
    whfc_ref: (1, 1, Hp)        FC weight, hidden part
    wefc_ref: (1, 1, F)         FC weight, ext-feature part
    bfc_ref : (1, 1, 1)         FC bias
    ext_ref : (1, Bp, F)        external features
    out_ref : (1, Bp, 1)        FC output for this stream
    """
    L = wih_ref.shape[1]
    Hp = whh_ref.shape[2]

    inp = x_ref[0]                                          # (T*Bp, Hp)
    h = None
    for l in range(L):
        # Hoisted weight/bias loads (outside the timestep loop).
        w_ih = wih_ref[0, l]                                # (Hp, 4*Hp)
        w_hh = whh_ref[0, l]                                # (Hp, 4*Hp)
        b = b_ref[0, l]                                     # (1, 4*Hp)

        # Input projection for all T timesteps in one batched matmul,
        # off the recurrent critical path.
        xproj = jnp.dot(inp, w_ih,
                        preferred_element_type=jnp.float32) + b   # (T*Bp, 4*Hp)

        h = jnp.zeros((Bp, Hp), jnp.float32)
        c = jnp.zeros((Bp, Hp), jnp.float32)
        hs = []
        # Statically unrolled recurrence (small fixed T).
        for t in range(T):
            gates = xproj[t * Bp:(t + 1) * Bp, :] + jnp.dot(
                h, w_hh, preferred_element_type=jnp.float32)      # (Bp, 4*Hp)
            # Hp == 128 -> each gate is a full 128-lane block (no masked extracts).
            i_g = jax.nn.sigmoid(gates[:, 0 * Hp:1 * Hp])
            f_g = jax.nn.sigmoid(gates[:, 1 * Hp:2 * Hp])
            g_g = jnp.tanh(gates[:, 2 * Hp:3 * Hp])
            o_g = jax.nn.sigmoid(gates[:, 3 * Hp:4 * Hp])
            c = f_g * c + i_g * g_g
            h = o_g * jnp.tanh(c)
            if l + 1 < L:
                hs.append(h)
        if l + 1 < L:
            # Next layer's input sequence, kept in registers/VMEM (no HBM trip).
            inp = jnp.concatenate(hs, axis=0)               # (T*Bp, Hp)

    # Fused FC head on [h_last, ext] as VPU lane reductions (no N=1 MXU matmul).
    wh = whfc_ref[0]                                        # (1, Hp)
    we = wefc_ref[0]                                        # (1, F)
    ext = ext_ref[0]                                        # (Bp, F)
    out = (jnp.sum(h * wh, axis=-1, keepdims=True)
           + jnp.sum(ext * we, axis=-1, keepdims=True)
           + bfc_ref[0])                                    # (Bp, 1)
    out_ref[0] = out


@functools.partial(jax.jit, static_argnames=("T", "Bp"))
def fused_streams_call(xs, wih, whh, bias, whfc, wefc, bfc, exts, *, T, Bp):
    S, TB, Hp = xs.shape
    L = wih.shape[1]
    F = wefc.shape[2]
    kernel = functools.partial(hier_lstm_kernel, T=T, Bp=Bp)
    return pl.pallas_call(
        kernel,
        out_shape=jax.ShapeDtypeStruct((S, Bp, 1), jnp.float32),
        grid=(S,),
        in_specs=[
            pl.BlockSpec((1, TB, Hp), lambda s: (s, 0, 0)),
            pl.BlockSpec((1, L, Hp, 4 * Hp), lambda s: (s, 0, 0, 0)),
            pl.BlockSpec((1, L, Hp, 4 * Hp), lambda s: (s, 0, 0, 0)),
            pl.BlockSpec((1, L, 1, 4 * Hp), lambda s: (s, 0, 0, 0)),
            pl.BlockSpec((1, 1, Hp), lambda s: (s, 0, 0)),
            pl.BlockSpec((1, 1, F), lambda s: (s, 0, 0)),
            pl.BlockSpec((1, 1, 1), lambda s: (s, 0, 0)),
            pl.BlockSpec((1, Bp, F), lambda s: (s, 0, 0)),
        ],
        out_specs=pl.BlockSpec((1, Bp, 1), lambda s: (s, 0, 0)),
        compiler_params=pltpu.CompilerParams(
            # Streams are independent -> shard across TensorCores on v7x megacore.
            dimension_semantics=("parallel",),
        ),
    )(xs, wih, whh, bias, whfc, wefc, bfc, exts)


# ---------------------------------------------------------------------------
# Parameter initialization (PyTorch-shaped) and packing to kernel layout
# ---------------------------------------------------------------------------
def init_lstm_params(key, input_size, hidden_size, num_layers):
    """PyTorch-layout LSTM params: list of (w_ih (4H,Din), w_hh (4H,H), b (4H,))."""
    params = []
    s = 1.0 / math.sqrt(hidden_size)
    for layer in range(num_layers):
        d_in = input_size if layer == 0 else hidden_size
        key, k1, k2, k3, k4 = jax.random.split(key, 5)
        w_ih = jax.random.uniform(k1, (4 * hidden_size, d_in), jnp.float32, -s, s)
        w_hh = jax.random.uniform(k2, (4 * hidden_size, hidden_size), jnp.float32, -s, s)
        b_ih = jax.random.uniform(k3, (4 * hidden_size,), jnp.float32, -s, s)
        b_hh = jax.random.uniform(k4, (4 * hidden_size,), jnp.float32, -s, s)
        params.append((w_ih, w_hh, b_ih + b_hh))
    return params, key


def init_fc_params(key, hidden_size, feature_size):
    """PyTorch-layout Linear params: (w (1, H+F), b (1,))."""
    s = 1.0 / math.sqrt(hidden_size + feature_size)
    key, k1, k2 = jax.random.split(key, 3)
    w = jax.random.uniform(k1, (1, hidden_size + feature_size), jnp.float32, -s, s)
    b = jax.random.uniform(k2, (1,), jnp.float32, -s, s)
    return (w, b), key


def pack_stream(lstm_layers, fc_params, hidden_size, Hp):
    """Pad / transpose one stream's params into the fused-kernel layout."""
    H = hidden_size
    L = len(lstm_layers)
    wih = np.zeros((L, Hp, 4 * Hp), np.float32)
    whh = np.zeros((L, Hp, 4 * Hp), np.float32)
    bias = np.zeros((L, 1, 4 * Hp), np.float32)
    for l, (w_ih, w_hh, b) in enumerate(lstm_layers):
        w_ih = np.asarray(w_ih)
        w_hh = np.asarray(w_hh)
        b = np.asarray(b)
        d_in = w_ih.shape[1]
        for g in range(4):
            wih[l, :d_in, g * Hp:g * Hp + H] = w_ih[g * H:(g + 1) * H, :].T
            whh[l, :H, g * Hp:g * Hp + H] = w_hh[g * H:(g + 1) * H, :].T
            bias[l, 0, g * Hp:g * Hp + H] = b[g * H:(g + 1) * H]
    w_fc, b_fc = fc_params
    w_fc = np.asarray(w_fc)
    b_fc = np.asarray(b_fc)
    whfc = np.zeros((1, Hp), np.float32)
    whfc[0, :H] = w_fc[0, :H]
    wefc = w_fc[:, H:].astype(np.float32)               # (1, F)
    bfc = b_fc.reshape(1, 1).astype(np.float32)
    return {"wih": jnp.asarray(wih), "whh": jnp.asarray(whh), "b": jnp.asarray(bias),
            "whfc": jnp.asarray(whfc), "wefc": jnp.asarray(wefc), "bfc": jnp.asarray(bfc)}


def init_hierarchical_lstm(key, feature_size, hidden_size, num_layers, player_names):
    raw = {}
    raw["league_lstm"], key = init_lstm_params(key, feature_size + 1, hidden_size, num_layers)
    raw["league_fc"], key = init_fc_params(key, hidden_size, feature_size)
    raw["player_lstm"], key = init_lstm_params(key, feature_size + 1, hidden_size, num_layers)
    raw["player_fc"], key = init_fc_params(key, hidden_size, feature_size)
    for name in player_names:
        raw[f"player_lstm_{name}"], key = init_lstm_params(
            key, feature_size + 1, hidden_size, num_layers)
        raw[f"player_fc_{name}"], key = init_fc_params(key, hidden_size, feature_size)

    Hp = _round_up(hidden_size, LANE)
    packed = {
        "league": pack_stream(raw["league_lstm"], raw["league_fc"], hidden_size, Hp),
        "player": pack_stream(raw["player_lstm"], raw["player_fc"], hidden_size, Hp),
    }
    for name in player_names:
        packed[f"player_{name}"] = pack_stream(
            raw[f"player_lstm_{name}"], raw[f"player_fc_{name}"], hidden_size, Hp)
    return raw, packed


# ---------------------------------------------------------------------------
# Forward pass (mirrors HierarchicalLSTM.forward)
# ---------------------------------------------------------------------------
def _prep_input(x_btd, Hp, Bp):
    """(B, T, D) batch-first -> (T*Bp, Hp): time-major, batch+feature zero-padded."""
    B, T, D = x_btd.shape
    x_tm = jnp.transpose(x_btd, (1, 0, 2))                  # (T, B, D)
    x_tm = jnp.pad(x_tm, ((0, 0), (0, Bp - B), (0, Hp - D)))
    return x_tm.reshape(T * Bp, Hp)


def hierarchical_lstm_forward(packed_params, x, ext_data, league_x, league_ext_data,
                              player_name, player_fga, gamma=None):
    # TODO(synk): pandas .loc lookup / getattr-by-name from the PyTorch module are
    # host-side Python; reproduced here with a dict lookup (no kernel equivalent).
    name = player_name[0]
    fga = float(player_fga[name])
    if gamma is None:
        gamma = fga * 2.0
    alpha = max(fga / gamma, 1.0)       # keeps the reference's max(..., 1) semantics

    B, T, _ = x.shape
    streams = [packed_params["league"], packed_params["player"],
               packed_params[f"player_{name}"]]
    Hp = streams[0]["whh"].shape[1]
    Bp = _round_up(max(B, SUBLANE), SUBLANE)

    xs = jnp.stack([_prep_input(league_x, Hp, Bp),
                    _prep_input(x, Hp, Bp),
                    _prep_input(x, Hp, Bp)], axis=0)        # (3, T*Bp, Hp)
    ext_pad = jnp.pad(ext_data, ((0, Bp - B), (0, 0)))
    lext_pad = jnp.pad(league_ext_data, ((0, Bp - B), (0, 0)))
    exts = jnp.stack([lext_pad, ext_pad, ext_pad], axis=0)  # (3, Bp, F)

    def cat(k):
        return jnp.stack([s[k] for s in streams], axis=0)

    out = fused_streams_call(xs, cat("wih"), cat("whh"), cat("b"),
                             cat("whfc"), cat("wefc"), cat("bfc"), exts,
                             T=T, Bp=Bp)                    # (3, Bp, 1)
    out = out[:, :B, :]
    league_out = out[0]
    blended = (1.0 - alpha) * out[1] + alpha * out[2] + out[0]
    return league_out, blended


# ---------------------------------------------------------------------------
# Pure-JAX reference (un-padded) for a correctness check
# ---------------------------------------------------------------------------
def _ref_lstm_last_h(x_btd, layers):
    B, T, _ = x_btd.shape
    inp = x_btd
    h = None
    for (w_ih, w_hh, b) in layers:
        H = w_hh.shape[1]
        h = jnp.zeros((B, H), jnp.float32)
        c = jnp.zeros((B, H), jnp.float32)
        outs = []
        for t in range(T):
            gates = inp[:, t, :] @ w_ih.T + h @ w_hh.T + b
            i = jax.nn.sigmoid(gates[:, 0 * H:1 * H])
            f = jax.nn.sigmoid(gates[:, 1 * H:2 * H])
            g = jnp.tanh(gates[:, 2 * H:3 * H])
            o = jax.nn.sigmoid(gates[:, 3 * H:4 * H])
            c = f * c + i * g
            h = o * jnp.tanh(c)
            outs.append(h)
        inp = jnp.stack(outs, axis=1)
    return h


def _ref_forward(raw, x, ext_data, league_x, league_ext_data, name, alpha):
    def fc(h, e, p):
        w, b = p
        return jnp.concatenate([h, e], axis=1) @ w.T + b
    lh = _ref_lstm_last_h(league_x, raw["league_lstm"])
    ph = _ref_lstm_last_h(x, raw["player_lstm"])
    sh = _ref_lstm_last_h(x, raw[f"player_lstm_{name}"])
    lo = fc(lh, league_ext_data, raw["league_fc"])
    po = fc(ph, ext_data, raw["player_fc"])
    so = fc(sh, ext_data, raw[f"player_fc_{name}"])
    return lo, (1.0 - alpha) * po + alpha * so + lo


# ---------------------------------------------------------------------------
if __name__ == "__main__":
    feature_size = 8
    hidden_size = 32
    num_layers = 2
    batch = 2
    seq = 8
    player_names = ["curry", "lebron"]
    player_fga = {"curry": 1200.0, "lebron": 1400.0}

    key = jax.random.PRNGKey(0)
    kp, kx, ke, klx, kle = jax.random.split(key, 5)

    raw_params, packed_params = init_hierarchical_lstm(
        kp, feature_size, hidden_size, num_layers, player_names)

    x = jax.random.normal(kx, (batch, seq, feature_size + 1), jnp.float32)
    ext_data = jax.random.normal(ke, (batch, feature_size), jnp.float32)
    league_x = jax.random.normal(klx, (batch, seq, feature_size + 1), jnp.float32)
    league_ext_data = jax.random.normal(kle, (batch, feature_size), jnp.float32)

    league_out, combined_out = hierarchical_lstm_forward(
        packed_params, x, ext_data, league_x, league_ext_data,
        player_name=["curry"], player_fga=player_fga, gamma=None)

    jax.block_until_ready(league_out)
    jax.block_until_ready(combined_out)

    assert league_out.shape == (batch, 1)
    assert combined_out.shape == (batch, 1)

    # Cross-check against the pure-JAX reference (loose tol for MXU f32 paths).
    fga = player_fga["curry"]
    alpha = max(fga / (fga * 2.0), 1.0)
    ref_league, ref_combined = _ref_forward(
        raw_params, x, ext_data, league_x, league_ext_data, "curry", alpha)
    np.testing.assert_allclose(np.asarray(league_out), np.asarray(ref_league),
                               rtol=5e-2, atol=5e-2)
    np.testing.assert_allclose(np.asarray(combined_out), np.asarray(ref_combined),
                               rtol=5e-2, atol=5e-2)

    print("KERNEL_OK")
</pallas_src>

<mosaic_0001>
module attributes {stable_mosaic.version = 11 : i64} {
  func.func @hier_lstm_kernel(%arg0: i32, %arg1: memref<1x64x128xf32, #tpu.memory_space<vmem>>, %arg2: memref<1x2x128x512xf32, #tpu.memory_space<vmem>>, %arg3: memref<1x2x128x512xf32, #tpu.memory_space<vmem>>, %arg4: memref<1x2x1x512xf32, #tpu.memory_space<vmem>>, %arg5: memref<1x1x128xf32, #tpu.memory_space<vmem>>, %arg6: memref<1x1x8xf32, #tpu.memory_space<vmem>>, %arg7: memref<1x1x1xf32, #tpu.memory_space<vmem>>, %arg8: memref<1x8x8xf32, #tpu.memory_space<vmem>>, %arg9: memref<1x8x1xf32, #tpu.memory_space<vmem>>) attributes {dimension_semantics = [#tpu.dimension_semantics<parallel>], iteration_bounds = array<i64: 3>, scalar_prefetch = 0 : i64, scratch_operands = 0 : i64, tpu.core_type = #tpu.core_type<tc>, window_params = [{transform_indices = @transform_0, window_bounds = array<i64: 1, 64, 128>}, {transform_indices = @transform_1, window_bounds = array<i64: 1, 2, 128, 512>}, {transform_indices = @transform_2, window_bounds = array<i64: 1, 2, 128, 512>}, {transform_indices = @transform_3, window_bounds = array<i64: 1, 2, 1, 512>}, {transform_indices = @transform_4, window_bounds = array<i64: 1, 1, 128>}, {transform_indices = @transform_5, window_bounds = array<i64: 1, 1, 8>}, {transform_indices = @transform_6, window_bounds = array<i64: 1, 1, 1>}, {transform_indices = @transform_7, window_bounds = array<i64: 1, 8, 8>}, {transform_indices = @transform_8, window_bounds = array<i64: 1, 8, 1>}]} {
    %c0 = arith.constant 0 : index
    %c0_0 = arith.constant 0 : index
    %c0_1 = arith.constant 0 : index
    %0 = vector.load %arg1[%c0, %c0_0, %c0_1] : memref<1x64x128xf32, #tpu.memory_space<vmem>>, vector<1x64x128xf32>
    %1 = vector.shape_cast %0 : vector<1x64x128xf32> to vector<64x128xf32>
    %c0_2 = arith.constant 0 : index
    %c0_3 = arith.constant 0 : index
    %c0_4 = arith.constant 0 : index
    %c0_5 = arith.constant 0 : index
    %2 = vector.load %arg2[%c0_2, %c0_3, %c0_4, %c0_5] : memref<1x2x128x512xf32, #tpu.memory_space<vmem>>, vector<1x1x128x512xf32>
    %3 = vector.shape_cast %2 : vector<1x1x128x512xf32> to vector<128x512xf32>
    %c0_6 = arith.constant 0 : index
    %c0_7 = arith.constant 0 : index
    %c0_8 = arith.constant 0 : index
    %c0_9 = arith.constant 0 : index
    %4 = vector.load %arg3[%c0_6, %c0_7, %c0_8, %c0_9] : memref<1x2x128x512xf32, #tpu.memory_space<vmem>>, vector<1x1x128x512xf32>
    %5 = vector.shape_cast %4 : vector<1x1x128x512xf32> to vector<128x512xf32>
    %c0_10 = arith.constant 0 : index
    %c0_11 = arith.constant 0 : index
    %c0_12 = arith.constant 0 : index
    %c0_13 = arith.constant 0 : index
    %6 = vector.load %arg4[%c0_10, %c0_11, %c0_12, %c0_13] : memref<1x2x1x512xf32, #tpu.memory_space<vmem>>, vector<1x1x1x512xf32>
    %7 = vector.shape_cast %6 : vector<1x1x1x512xf32> to vector<1x512xf32>
    %cst = arith.constant dense<0.000000e+00> : vector<64x512xf32>
    %8 = tpu.matmul %1, %3, %cst {dimension_numbers = #tpu.dot_dimension_numbers<[1], [0], [0], [1], [0, 0, 1, 1], [], []>} : vector<64x128xf32>, vector<128x512xf32>, vector<64x512xf32> -> vector<64x512xf32>
    %9 = vector.broadcast %7 : vector<1x512xf32> to vector<64x512xf32>
    %10 = arith.addf %8, %9 : vector<64x512xf32>
    %cst_14 = arith.constant 0.000000e+00 : f32
    %11 = vector.broadcast %cst_14 : f32 to vector<8x128xf32>
    %cst_15 = arith.constant 0.000000e+00 : f32
    %12 = vector.broadcast %cst_15 : f32 to vector<8x128xf32>
    %13 = vector.extract_strided_slice %10 {offsets = [0, 0], sizes = [8, 512], strides = [1, 1]} : vector<64x512xf32> to vector<8x512xf32>
    %cst_16 = arith.constant dense<0.000000e+00> : vector<8x512xf32>
    %14 = tpu.matmul %11, %5, %cst_16 {dimension_numbers = #tpu.dot_dimension_numbers<[1], [0], [0], [1], [0, 0, 1, 1], [], []>} : vector<8x128xf32>, vector<128x512xf32>, vector<8x512xf32> -> vector<8x512xf32>
    %15 = arith.addf %13, %14 : vector<8x512xf32>
    %16 = vector.extract_strided_slice %15 {offsets = [0, 0], sizes = [8, 128], strides = [1, 1]} : vector<8x512xf32> to vector<8x128xf32>
    %17 = arith.negf %16 : vector<8x128xf32>
    %18 = math.exp %17 : vector<8x128xf32>
    %cst_17 = arith.constant 1.000000e+00 : f32
    %19 = vector.broadcast %cst_17 : f32 to vector<8x128xf32>
    %20 = arith.addf %19, %18 : vector<8x128xf32>
    %21 = arith.divf %19, %20 : vector<8x128xf32>
    %22 = vector.extract_strided_slice %15 {offsets = [0, 128], sizes = [8, 128], strides = [1, 1]} : vector<8x512xf32> to vector<8x128xf32>
    %23 = arith.negf %22 : vector<8x128xf32>
    %24 = math.exp %23 : vector<8x128xf32>
    %cst_18 = arith.constant 1.000000e+00 : f32
    %25 = vector.broadcast %cst_18 : f32 to vector<8x128xf32>
    %26 = arith.addf %25, %24 : vector<8x128xf32>
    %27 = arith.divf %25, %26 : vector<8x128xf32>
    %28 = vector.extract_strided_slice %15 {offsets = [0, 256], sizes = [8, 128], strides = [1, 1]} : vector<8x512xf32> to vector<8x128xf32>
    %29 = math.tanh %28 : vector<8x128xf32>
    %30 = vector.extract_strided_slice %15 {offsets = [0, 384], sizes = [8, 128], strides = [1, 1]} : vector<8x512xf32> to vector<8x128xf32>
    %31 = arith.negf %30 : vector<8x128xf32>
    %32 = math.exp %31 : vector<8x128xf32>
    %cst_19 = arith.constant 1.000000e+00 : f32
    %33 = vector.broadcast %cst_19 : f32 to vector<8x128xf32>
    %34 = arith.addf %33, %32 : vector<8x128xf32>
    %35 = arith.divf %33, %34 : vector<8x128xf32>
    %36 = arith.mulf %27, %12 : vector<8x128xf32>
    %37 = arith.mulf %21, %29 : vector<8x128xf32>
    %38 = arith.addf %36, %37 : vector<8x128xf32>
    %39 = math.tanh %38 : vector<8x128xf32>
    %40 = arith.mulf %35, %39 : vector<8x128xf32>
    %41 = vector.extract_strided_slice %10 {offsets = [8, 0], sizes = [8, 512], strides = [1, 1]} : vector<64x512xf32> to vector<8x512xf32>
    %cst_20 = arith.constant dense<0.000000e+00> : vector<8x512xf32>
    %42 = tpu.matmul %40, %5, %cst_20 {dimension_numbers = #tpu.dot_dimension_numbers<[1], [0], [0], [1], [0, 0, 1, 1], [], []>} : vector<8x128xf32>, vector<128x512xf32>, vector<8x512xf32> -> vector<8x512xf32>
    %43 = arith.addf %41, %42 : vector<8x512xf32>
    %44 = vector.extract_strided_slice %43 {offsets = [0, 0], sizes = [8, 128], strides = [1, 1]} : vector<8x512xf32> to vector<8x128xf32>
    %45 = arith.negf %44 : vector<8x128xf32>
    %46 = math.exp %45 : vector<8x128xf32>
    %cst_21 = arith.constant 1.000000e+00 : f32
    %47 = vector.broadcast %cst_21 : f32 to vector<8x128xf32>
    %48 = arith.addf %47, %46 : vector<8x128xf32>
    %49 = arith.divf %47, %48 : vector<8x128xf32>
    %50 = vector.extract_strided_slice %43 {offsets = [0, 128], sizes = [8, 128], strides = [1, 1]} : vector<8x512xf32> to vector<8x128xf32>
    %51 = arith.negf %50 : vector<8x128xf32>
    %52 = math.exp %51 : vector<8x128xf32>
    %cst_22 = arith.constant 1.000000e+00 : f32
    %53 = vector.broadcast %cst_22 : f32 to vector<8x128xf32>
    %54 = arith.addf %53, %52 : vector<8x128xf32>
    %55 = arith.divf %53, %54 : vector<8x128xf32>
    %56 = vector.extract_strided_slice %43 {offsets = [0, 256], sizes = [8, 128], strides = [1, 1]} : vector<8x512xf32> to vector<8x128xf32>
    %57 = math.tanh %56 : vector<8x128xf32>
    %58 = vector.extract_strided_slice %43 {offsets = [0, 384], sizes = [8, 128], strides = [1, 1]} : vector<8x512xf32> to vector<8x128xf32>
    %59 = arith.negf %58 : vector<8x128xf32>
    %60 = math.exp %59 : vector<8x128xf32>
    %cst_23 = arith.constant 1.000000e+00 : f32
    %61 = vector.broadcast %cst_23 : f32 to vector<8x128xf32>
    %62 = arith.addf %61, %60 : vector<8x128xf32>
    %63 = arith.divf %61, %62 : vector<8x128xf32>
    %64 = arith.mulf %55, %38 : vector<8x128xf32>
    %65 = arith.mulf %49, %57 : vector<8x128xf32>
    %66 = arith.addf %64, %65 : vector<8x128xf32>
    %67 = math.tanh %66 : vector<8x128xf32>
    %68 = arith.mulf %63, %67 : vector<8x128xf32>
    %69 = vector.extract_strided_slice %10 {offsets = [16, 0], sizes = [8, 512], strides = [1, 1]} : vector<64x512xf32> to vector<8x512xf32>
    %cst_24 = arith.constant dense<0.000000e+00> : vector<8x512xf32>
    %70 = tpu.matmul %68, %5, %cst_24 {dimension_numbers = #tpu.dot_dimension_numbers<[1], [0], [0], [1], [0, 0, 1, 1], [], []>} : vector<8x128xf32>, vector<128x512xf32>, vector<8x512xf32> -> vector<8x512xf32>
    %71 = arith.addf %69, %70 : vector<8x512xf32>
    %72 = vector.extract_strided_slice %71 {offsets = [0, 0], sizes = [8, 128], strides = [1, 1]} : vector<8x512xf32> to vector<8x128xf32>
    %73 = arith.negf %72 : vector<8x128xf32>
    %74 = math.exp %73 : vector<8x128xf32>
    %cst_25 = arith.constant 1.000000e+00 : f32
    %75 = vector.broadcast %cst_25 : f32 to vector<8x128xf32>
    %76 = arith.addf %75, %74 : vector<8x128xf32>
    %77 = arith.divf %75, %76 : vector<8x128xf32>
    %78 = vector.extract_strided_slice %71 {offsets = [0, 128], sizes = [8, 128], strides = [1, 1]} : vector<8x512xf32> to vector<8x128xf32>
    %79 = arith.negf %78 : vector<8x128xf32>
    %80 = math.exp %79 : vector<8x128xf32>
    %cst_26 = arith.constant 1.000000e+00 : f32
    %81 = vector.broadcast %cst_26 : f32 to vector<8x128xf32>
    %82 = arith.addf %81, %80 : vector<8x128xf32>
    %83 = arith.divf %81, %82 : vector<8x128xf32>
    %84 = vector.extract_strided_slice %71 {offsets = [0, 256], sizes = [8, 128], strides = [1, 1]} : vector<8x512xf32> to vector<8x128xf32>
    %85 = math.tanh %84 : vector<8x128xf32>
    %86 = vector.extract_strided_slice %71 {offsets = [0, 384], sizes = [8, 128], strides = [1, 1]} : vector<8x512xf32> to vector<8x128xf32>
    %87 = arith.negf %86 : vector<8x128xf32>
    %88 = math.exp %87 : vector<8x128xf32>
    %cst_27 = arith.constant 1.000000e+00 : f32
    %89 = vector.broadcast %cst_27 : f32 to vector<8x128xf32>
    %90 = arith.addf %89, %88 : vector<8x128xf32>
    %91 = arith.divf %89, %90 : vector<8x128xf32>
    %92 = arith.mulf %83, %66 : vector<8x128xf32>
    %93 = arith.mulf %77, %85 : vector<8x128xf32>
    %94 = arith.addf %92, %93 : vector<8x128xf32>
    %95 = math.tanh %94 : vector<8x128xf32>
    %96 = arith.mulf %91, %95 : vector<8x128xf32>
    %97 = vector.extract_strided_slice %10 {offsets = [24, 0], sizes = [8, 512], strides = [1, 1]} : vector<64x512xf32> to vector<8x512xf32>
    %cst_28 = arith.constant dense<0.000000e+00> : vector<8x512xf32>
    %98 = tpu.matmul %96, %5, %cst_28 {dimension_numbers = #tpu.dot_dimension_numbers<[1], [0], [0], [1], [0, 0, 1, 1], [], []>} : vector<8x128xf32>, vector<128x512xf32>, vector<8x512xf32> -> vector<8x512xf32>
    %99 = arith.addf %97, %98 : vector<8x512xf32>
    %100 = vector.extract_strided_slice %99 {offsets = [0, 0], sizes = [8, 128], strides = [1, 1]} : vector<8x512xf32> to vector<8x128xf32>
    %101 = arith.negf %100 : vector<8x128xf32>
    %102 = math.exp %101 : vector<8x128xf32>
    %cst_29 = arith.constant 1.000000e+00 : f32
    %103 = vector.broadcast %cst_29 : f32 to vector<8x128xf32>
    %104 = arith.addf %103, %102 : vector<8x128xf32>
    %105 = arith.divf %103, %104 : vector<8x128xf32>
    %106 = vector.extract_strided_slice %99 {offsets = [0, 128], sizes = [8, 128], strides = [1, 1]} : vector<8x512xf32> to vector<8x128xf32>
    %107 = arith.negf %106 : vector<8x128xf32>
    %108 = math.exp %107 : vector<8x128xf32>
    %cst_30 = arith.constant 1.000000e+00 : f32
    %109 = vector.broadcast %cst_30 : f32 to vector<8x128xf32>
    %110 = arith.addf %109, %108 : vector<8x128xf32>
    %111 = arith.divf %109, %110 : vector<8x128xf32>
    %112 = vector.extract_strided_slice %99 {offsets = [0, 256], sizes = [8, 128], strides = [1, 1]} : vector<8x512xf32> to vector<8x128xf32>
    %113 = math.tanh %112 : vector<8x128xf32>
    %114 = vector.extract_strided_slice %99 {offsets = [0, 384], sizes = [8, 128], strides = [1, 1]} : vector<8x512xf32> to vector<8x128xf32>
    %115 = arith.negf %114 : vector<8x128xf32>
    %116 = math.exp %115 : vector<8x128xf32>
    %cst_31 = arith.constant 1.000000e+00 : f32
    %117 = vector.broadcast %cst_31 : f32 to vector<8x128xf32>
    %118 = arith.addf %117, %116 : vector<8x128xf32>
    %119 = arith.divf %117, %118 : vector<8x128xf32>
    %120 = arith.mulf %111, %94 : vector<8x128xf32>
    %121 = arith.mulf %105, %113 : vector<8x128xf32>
    %122 = arith.addf %120, %121 : vector<8x128xf32>
    %123 = math.tanh %122 : vector<8x128xf32>
    %124 = arith.mulf %119, %123 : vector<8x128xf32>
    %125 = vector.extract_strided_slice %10 {offsets = [32, 0], sizes = [8, 512], strides = [1, 1]} : vector<64x512xf32> to vector<8x512xf32>
    %cst_32 = arith.constant dense<0.000000e+00> : vector<8x512xf32>
    %126 = tpu.matmul %124, %5, %cst_32 {dimension_numbers = #tpu.dot_dimension_numbers<[1], [0], [0], [1], [0, 0, 1, 1], [], []>} : vector<8x128xf32>, vector<128x512xf32>, vector<8x512xf32> -> vector<8x512xf32>
    %127 = arith.addf %125, %126 : vector<8x512xf32>
    %128 = vector.extract_strided_slice %127 {offsets = [0, 0], sizes = [8, 128], strides = [1, 1]} : vector<8x512xf32> to vector<8x128xf32>
    %129 = arith.negf %128 : vector<8x128xf32>
    %130 = math.exp %129 : vector<8x128xf32>
    %cst_33 = arith.constant 1.000000e+00 : f32
    %131 = vector.broadcast %cst_33 : f32 to vector<8x128xf32>
    %132 = arith.addf %131, %130 : vector<8x128xf32>
    %133 = arith.divf %131, %132 : vector<8x128xf32>
    %134 = vector.extract_strided_slice %127 {offsets = [0, 128], sizes = [8, 128], strides = [1, 1]} : vector<8x512xf32> to vector<8x128xf32>
    %135 = arith.negf %134 : vector<8x128xf32>
    %136 = math.exp %135 : vector<8x128xf32>
    %cst_34 = arith.constant 1.000000e+00 : f32
    %137 = vector.broadcast %cst_34 : f32 to vector<8x128xf32>
    %138 = arith.addf %137, %136 : vector<8x128xf32>
    %139 = arith.divf %137, %138 : vector<8x128xf32>
    %140 = vector.extract_strided_slice %127 {offsets = [0, 256], sizes = [8, 128], strides = [1, 1]} : vector<8x512xf32> to vector<8x128xf32>
    %141 = math.tanh %140 : vector<8x128xf32>
    %142 = vector.extract_strided_slice %127 {offsets = [0, 384], sizes = [8, 128], strides = [1, 1]} : vector<8x512xf32> to vector<8x128xf32>
    %143 = arith.negf %142 : vector<8x128xf32>
    %144 = math.exp %143 : vector<8x128xf32>
    %cst_35 = arith.constant 1.000000e+00 : f32
    %145 = vector.broadcast %cst_35 : f32 to vector<8x128xf32>
    %146 = arith.addf %145, %144 : vector<8x128xf32>
    %147 = arith.divf %145, %146 : vector<8x128xf32>
    %148 = arith.mulf %139, %122 : vector<8x128xf32>
    %149 = arith.mulf %133, %141 : vector<8x128xf32>
    %150 = arith.addf %148, %149 : vector<8x128xf32>
    %151 = math.tanh %150 : vector<8x128xf32>
    %152 = arith.mulf %147, %151 : vector<8x128xf32>
    %153 = vector.extract_strided_slice %10 {offsets = [40, 0], sizes = [8, 512], strides = [1, 1]} : vector<64x512xf32> to vector<8x512xf32>
    %cst_36 = arith.constant dense<0.000000e+00> : vector<8x512xf32>
    %154 = tpu.matmul %152, %5, %cst_36 {dimension_numbers = #tpu.dot_dimension_numbers<[1], [0], [0], [1], [0, 0, 1, 1], [], []>} : vector<8x128xf32>, vector<128x512xf32>, vector<8x512xf32> -> vector<8x512xf32>
    %155 = arith.addf %153, %154 : vector<8x512xf32>
    %156 = vector.extract_strided_slice %155 {offsets = [0, 0], sizes = [8, 128], strides = [1, 1]} : vector<8x512xf32> to vector<8x128xf32>
    %157 = arith.negf %156 : vector<8x128xf32>
    %158 = math.exp %157 : vector<8x128xf32>
    %cst_37 = arith.constant 1.000000e+00 : f32
    %159 = vector.broadcast %cst_37 : f32 to vector<8x128xf32>
    %160 = arith.addf %159, %158 : vector<8x128xf32>
    %161 = arith.divf %159, %160 : vector<8x128xf32>
    %162 = vector.extract_strided_slice %155 {offsets = [0, 128], sizes = [8, 128], strides = [1, 1]} : vector<8x512xf32> to vector<8x128xf32>
    %163 = arith.negf %162 : vector<8x128xf32>
    %164 = math.exp %163 : vector<8x128xf32>
    %cst_38 = arith.constant 1.000000e+00 : f32
    %165 = vector.broadcast %cst_38 : f32 to vector<8x128xf32>
    %166 = arith.addf %165, %164 : vector<8x128xf32>
    %167 = arith.divf %165, %166 : vector<8x128xf32>
    %168 = vector.extract_strided_slice %155 {offsets = [0, 256], sizes = [8, 128], strides = [1, 1]} : vector<8x512xf32> to vector<8x128xf32>
    %169 = math.tanh %168 : vector<8x128xf32>
    %170 = vector.extract_strided_slice %155 {offsets = [0, 384], sizes = [8, 128], strides = [1, 1]} : vector<8x512xf32> to vector<8x128xf32>
    %171 = arith.negf %170 : vector<8x128xf32>
    %172 = math.exp %171 : vector<8x128xf32>
    %cst_39 = arith.constant 1.000000e+00 : f32
    %173 = vector.broadcast %cst_39 : f32 to vector<8x128xf32>
    %174 = arith.addf %173, %172 : vector<8x128xf32>
    %175 = arith.divf %173, %174 : vector<8x128xf32>
    %176 = arith.mulf %167, %150 : vector<8x128xf32>
    %177 = arith.mulf %161, %169 : vector<8x128xf32>
    %178 = arith.addf %176, %177 : vector<8x128xf32>
    %179 = math.tanh %178 : vector<8x128xf32>
    %180 = arith.mulf %175, %179 : vector<8x128xf32>
    %181 = vector.extract_strided_slice %10 {offsets = [48, 0], sizes = [8, 512], strides = [1, 1]} : vector<64x512xf32> to vector<8x512xf32>
    %cst_40 = arith.constant dense<0.000000e+00> : vector<8x512xf32>
    %182 = tpu.matmul %180, %5, %cst_40 {dimension_numbers = #tpu.dot_dimension_numbers<[1], [0], [0], [1], [0, 0, 1, 1], [], []>} : vector<8x128xf32>, vector<128x512xf32>, vector<8x512xf32> -> vector<8x512xf32>
    %183 = arith.addf %181, %182 : vector<8x512xf32>
    %184 = vector.extract_strided_slice %183 {offsets = [0, 0], sizes = [8, 128], strides = [1, 1]} : vector<8x512xf32> to vector<8x128xf32>
    %185 = arith.negf %184 : vector<8x128xf32>
    %186 = math.exp %185 : vector<8x128xf32>
    %cst_41 = arith.constant 1.000000e+00 : f32
    %187 = vector.broadcast %cst_41 : f32 to vector<8x128xf32>
    %188 = arith.addf %187, %186 : vector<8x128xf32>
    %189 = arith.divf %187, %188 : vector<8x128xf32>
    %190 = vector.extract_strided_slice %183 {offsets = [0, 128], sizes = [8, 128], strides = [1, 1]} : vector<8x512xf32> to vector<8x128xf32>
    %191 = arith.negf %190 : vector<8x128xf32>
    %192 = math.exp %191 : vector<8x128xf32>
    %cst_42 = arith.constant 1.000000e+00 : f32
    %193 = vector.broadcast %cst_42 : f32 to vector<8x128xf32>
    %194 = arith.addf %193, %192 : vector<8x128xf32>
    %195 = arith.divf %193, %194 : vector<8x128xf32>
    %196 = vector.extract_strided_slice %183 {offsets = [0, 256], sizes = [8, 128], strides = [1, 1]} : vector<8x512xf32> to vector<8x128xf32>
    %197 = math.tanh %196 : vector<8x128xf32>
    %198 = vector.extract_strided_slice %183 {offsets = [0, 384], sizes = [8, 128], strides = [1, 1]} : vector<8x512xf32> to vector<8x128xf32>
    %199 = arith.negf %198 : vector<8x128xf32>
    %200 = math.exp %199 : vector<8x128xf32>
    %cst_43 = arith.constant 1.000000e+00 : f32
    %201 = vector.broadcast %cst_43 : f32 to vector<8x128xf32>
    %202 = arith.addf %201, %200 : vector<8x128xf32>
    %203 = arith.divf %201, %202 : vector<8x128xf32>
    %204 = arith.mulf %195, %178 : vector<8x128xf32>
    %205 = arith.mulf %189, %197 : vector<8x128xf32>
    %206 = arith.addf %204, %205 : vector<8x128xf32>
    %207 = math.tanh %206 : vector<8x128xf32>
    %208 = arith.mulf %203, %207 : vector<8x128xf32>
    %209 = vector.extract_strided_slice %10 {offsets = [56, 0], sizes = [8, 512], strides = [1, 1]} : vector<64x512xf32> to vector<8x512xf32>
    %cst_44 = arith.constant dense<0.000000e+00> : vector<8x512xf32>
    %210 = tpu.matmul %208, %5, %cst_44 {dimension_numbers = #tpu.dot_dimension_numbers<[1], [0], [0], [1], [0, 0, 1, 1], [], []>} : vector<8x128xf32>, vector<128x512xf32>, vector<8x512xf32> -> vector<8x512xf32>
    %211 = arith.addf %209, %210 : vector<8x512xf32>
    %212 = vector.extract_strided_slice %211 {offsets = [0, 0], sizes = [8, 128], strides = [1, 1]} : vector<8x512xf32> to vector<8x128xf32>
    %213 = arith.negf %212 : vector<8x128xf32>
    %214 = math.exp %213 : vector<8x128xf32>
    %cst_45 = arith.constant 1.000000e+00 : f32
    %215 = vector.broadcast %cst_45 : f32 to vector<8x128xf32>
    %216 = arith.addf %215, %214 : vector<8x128xf32>
    %217 = arith.divf %215, %216 : vector<8x128xf32>
    %218 = vector.extract_strided_slice %211 {offsets = [0, 128], sizes = [8, 128], strides = [1, 1]} : vector<8x512xf32> to vector<8x128xf32>
    %219 = arith.negf %218 : vector<8x128xf32>
    %220 = math.exp %219 : vector<8x128xf32>
    %cst_46 = arith.constant 1.000000e+00 : f32
    %221 = vector.broadcast %cst_46 : f32 to vector<8x128xf32>
    %222 = arith.addf %221, %220 : vector<8x128xf32>
    %223 = arith.divf %221, %222 : vector<8x128xf32>
    %224 = vector.extract_strided_slice %211 {offsets = [0, 256], sizes = [8, 128], strides = [1, 1]} : vector<8x512xf32> to vector<8x128xf32>
    %225 = math.tanh %224 : vector<8x128xf32>
    %226 = vector.extract_strided_slice %211 {offsets = [0, 384], sizes = [8, 128], strides = [1, 1]} : vector<8x512xf32> to vector<8x128xf32>
    %227 = arith.negf %226 : vector<8x128xf32>
    %228 = math.exp %227 : vector<8x128xf32>
    %cst_47 = arith.constant 1.000000e+00 : f32
    %229 = vector.broadcast %cst_47 : f32 to vector<8x128xf32>
    %230 = arith.addf %229, %228 : vector<8x128xf32>
    %231 = arith.divf %229, %230 : vector<8x128xf32>
    %232 = arith.mulf %223, %206 : vector<8x128xf32>
    %233 = arith.mulf %217, %225 : vector<8x128xf32>
    %234 = arith.addf %232, %233 : vector<8x128xf32>
    %235 = math.tanh %234 : vector<8x128xf32>
    %236 = arith.mulf %231, %235 : vector<8x128xf32>
    %237 = tpu.concatenate %40, %68, %96, %124, %152, %180, %208, %236 in 0 : vector<8x128xf32>, vector<8x128xf32>, vector<8x128xf32>, vector<8x128xf32>, vector<8x128xf32>, vector<8x128xf32>, vector<8x128xf32>, vector<8x128xf32> -> vector<64x128xf32>
    %c0_48 = arith.constant 0 : index
    %c1 = arith.constant 1 : index
    %c0_49 = arith.constant 0 : index
    %c0_50 = arith.constant 0 : index
    %238 = vector.load %arg2[%c0_48, %c1, %c0_49, %c0_50] : memref<1x2x128x512xf32, #tpu.memory_space<vmem>>, vector<1x1x128x512xf32>
    %239 = vector.shape_cast %238 : vector<1x1x128x512xf32> to vector<128x512xf32>
    %c0_51 = arith.constant 0 : index
    %c1_52 = arith.constant 1 : index
    %c0_53 = arith.constant 0 : index
    %c0_54 = arith.constant 0 : index
    %240 = vector.load %arg3[%c0_51, %c1_52, %c0_53, %c0_54] : memref<1x2x128x512xf32, #tpu.memory_space<vmem>>, vector<1x1x128x512xf32>
    %241 = vector.shape_cast %240 : vector<1x1x128x512xf32> to vector<128x512xf32>
    %c0_55 = arith.constant 0 : index
    %c1_56 = arith.constant 1 : index
    %c0_57 = arith.constant 0 : index
    %c0_58 = arith.constant 0 : index
    %242 = vector.load %arg4[%c0_55, %c1_56, %c0_57, %c0_58] : memref<1x2x1x512xf32, #tpu.memory_space<vmem>>, vector<1x1x1x512xf32>
    %243 = vector.shape_cast %242 : vector<1x1x1x512xf32> to vector<1x512xf32>
    %cst_59 = arith.constant dense<0.000000e+00> : vector<64x512xf32>
    %244 = tpu.matmul %237, %239, %cst_59 {dimension_numbers = #tpu.dot_dimension_numbers<[1], [0], [0], [1], [0, 0, 1, 1], [], []>} : vector<64x128xf32>, vector<128x512xf32>, vector<64x512xf32> -> vector<64x512xf32>
    %245 = vector.broadcast %243 : vector<1x512xf32> to vector<64x512xf32>
    %246 = arith.addf %244, %245 : vector<64x512xf32>
    %cst_60 = arith.constant 0.000000e+00 : f32
    %247 = vector.broadcast %cst_60 : f32 to vector<8x128xf32>
    %cst_61 = arith.constant 0.000000e+00 : f32
    %248 = vector.broadcast %cst_61 : f32 to vector<8x128xf32>
    %249 = vector.extract_strided_slice %246 {offsets = [0, 0], sizes = [8, 512], strides = [1, 1]} : vector<64x512xf32> to vector<8x512xf32>
    %cst_62 = arith.constant dense<0.000000e+00> : vector<8x512xf32>
    %250 = tpu.matmul %247, %241, %cst_62 {dimension_numbers = #tpu.dot_dimension_numbers<[1], [0], [0], [1], [0, 0, 1, 1], [], []>} : vector<8x128xf32>, vector<128x512xf32>, vector<8x512xf32> -> vector<8x512xf32>
    %251 = arith.addf %249, %250 : vector<8x512xf32>
    %252 = vector.extract_strided_slice %251 {offsets = [0, 0], sizes = [8, 128], strides = [1, 1]} : vector<8x512xf32> to vector<8x128xf32>
    %253 = arith.negf %252 : vector<8x128xf32>
    %254 = math.exp %253 : vector<8x128xf32>
    %cst_63 = arith.constant 1.000000e+00 : f32
    %255 = vector.broadcast %cst_63 : f32 to vector<8x128xf32>
    %256 = arith.addf %255, %254 : vector<8x128xf32>
    %257 = arith.divf %255, %256 : vector<8x128xf32>
    %258 = vector.extract_strided_slice %251 {offsets = [0, 128], sizes = [8, 128], strides = [1, 1]} : vector<8x512xf32> to vector<8x128xf32>
    %259 = arith.negf %258 : vector<8x128xf32>
    %260 = math.exp %259 : vector<8x128xf32>
    %cst_64 = arith.constant 1.000000e+00 : f32
    %261 = vector.broadcast %cst_64 : f32 to vector<8x128xf32>
    %262 = arith.addf %261, %260 : vector<8x128xf32>
    %263 = arith.divf %261, %262 : vector<8x128xf32>
    %264 = vector.extract_strided_slice %251 {offsets = [0, 256], sizes = [8, 128], strides = [1, 1]} : vector<8x512xf32> to vector<8x128xf32>
    %265 = math.tanh %264 : vector<8x128xf32>
    %266 = vector.extract_strided_slice %251 {offsets = [0, 384], sizes = [8, 128], strides = [1, 1]} : vector<8x512xf32> to vector<8x128xf32>
    %267 = arith.negf %266 : vector<8x128xf32>
    %268 = math.exp %267 : vector<8x128xf32>
    %cst_65 = arith.constant 1.000000e+00 : f32
    %269 = vector.broadcast %cst_65 : f32 to vector<8x128xf32>
    %270 = arith.addf %269, %268 : vector<8x128xf32>
    %271 = arith.divf %269, %270 : vector<8x128xf32>
    %272 = arith.mulf %263, %248 : vector<8x128xf32>
    %273 = arith.mulf %257, %265 : vector<8x128xf32>
    %274 = arith.addf %272, %273 : vector<8x128xf32>
    %275 = math.tanh %274 : vector<8x128xf32>
    %276 = arith.mulf %271, %275 : vector<8x128xf32>
    %277 = vector.extract_strided_slice %246 {offsets = [8, 0], sizes = [8, 512], strides = [1, 1]} : vector<64x512xf32> to vector<8x512xf32>
    %cst_66 = arith.constant dense<0.000000e+00> : vector<8x512xf32>
    %278 = tpu.matmul %276, %241, %cst_66 {dimension_numbers = #tpu.dot_dimension_numbers<[1], [0], [0], [1], [0, 0, 1, 1], [], []>} : vector<8x128xf32>, vector<128x512xf32>, vector<8x512xf32> -> vector<8x512xf32>
    %279 = arith.addf %277, %278 : vector<8x512xf32>
    %280 = vector.extract_strided_slice %279 {offsets = [0, 0], sizes = [8, 128], strides = [1, 1]} : vector<8x512xf32> to vector<8x128xf32>
    %281 = arith.negf %280 : vector<8x128xf32>
    %282 = math.exp %281 : vector<8x128xf32>
    %cst_67 = arith.constant 1.000000e+00 : f32
    %283 = vector.broadcast %cst_67 : f32 to vector<8x128xf32>
    %284 = arith.addf %283, %282 : vector<8x128xf32>
    %285 = arith.divf %283, %284 : vector<8x128xf32>
    %286 = vector.extract_strided_slice %279 {offsets = [0, 128], sizes = [8, 128], strides = [1, 1]} : vector<8x512xf32> to vector<8x128xf32>
    %287 = arith.negf %286 : vector<8x128xf32>
    %288 = math.exp %287 : vector<8x128xf32>
    %cst_68 = arith.constant 1.000000e+00 : f32
    %289 = vector.broadcast %cst_68 : f32 to vector<8x128xf32>
    %290 = arith.addf %289, %288 : vector<8x128xf32>
    %291 = arith.divf %289, %290 : vector<8x128xf32>
    %292 = vector.extract_strided_slice %279 {offsets = [0, 256], sizes = [8, 128], strides = [1, 1]} : vector<8x512xf32> to vector<8x128xf32>
    %293 = math.tanh %292 : vector<8x128xf32>
    %294 = vector.extract_strided_slice %279 {offsets = [0, 384], sizes = [8, 128], strides = [1, 1]} : vector<8x512xf32> to vector<8x128xf32>
    %295 = arith.negf %294 : vector<8x128xf32>
    %296 = math.exp %295 : vector<8x128xf32>
    %cst_69 = arith.constant 1.000000e+00 : f32
    %297 = vector.broadcast %cst_69 : f32 to vector<8x128xf32>
    %298 = arith.addf %297, %296 : vector<8x128xf32>
    %299 = arith.divf %297, %298 : vector<8x128xf32>
    %300 = arith.mulf %291, %274 : vector<8x128xf32>
    %301 = arith.mulf %285, %293 : vector<8x128xf32>
    %302 = arith.addf %300, %301 : vector<8x128xf32>
    %303 = math.tanh %302 : vector<8x128xf32>
    %304 = arith.mulf %299, %303 : vector<8x128xf32>
    %305 = vector.extract_strided_slice %246 {offsets = [16, 0], sizes = [8, 512], strides = [1, 1]} : vector<64x512xf32> to vector<8x512xf32>
    %cst_70 = arith.constant dense<0.000000e+00> : vector<8x512xf32>
    %306 = tpu.matmul %304, %241, %cst_70 {dimension_numbers = #tpu.dot_dimension_numbers<[1], [0], [0], [1], [0, 0, 1, 1], [], []>} : vector<8x128xf32>, vector<128x512xf32>, vector<8x512xf32> -> vector<8x512xf32>
    %307 = arith.addf %305, %306 : vector<8x512xf32>
    %308 = vector.extract_strided_slice %307 {offsets = [0, 0], sizes = [8, 128], strides = [1, 1]} : vector<8x512xf32> to vector<8x128xf32>
    %309 = arith.negf %308 : vector<8x128xf32>
    %310 = math.exp %309 : vector<8x128xf32>
    %cst_71 = arith.constant 1.000000e+00 : f32
    %311 = vector.broadcast %cst_71 : f32 to vector<8x128xf32>
    %312 = arith.addf %311, %310 : vector<8x128xf32>
    %313 = arith.divf %311, %312 : vector<8x128xf32>
    %314 = vector.extract_strided_slice %307 {offsets = [0, 128], sizes = [8, 128], strides = [1, 1]} : vector<8x512xf32> to vector<8x128xf32>
    %315 = arith.negf %314 : vector<8x128xf32>
    %316 = math.exp %315 : vector<8x128xf32>
    %cst_72 = arith.constant 1.000000e+00 : f32
    %317 = vector.broadcast %cst_72 : f32 to vector<8x128xf32>
    %318 = arith.addf %317, %316 : vector<8x128xf32>
    %319 = arith.divf %317, %318 : vector<8x128xf32>
    %320 = vector.extract_strided_slice %307 {offsets = [0, 256], sizes = [8, 128], strides = [1, 1]} : vector<8x512xf32> to vector<8x128xf32>
    %321 = math.tanh %320 : vector<8x128xf32>
    %322 = vector.extract_strided_slice %307 {offsets = [0, 384], sizes = [8, 128], strides = [1, 1]} : vector<8x512xf32> to vector<8x128xf32>
    %323 = arith.negf %322 : vector<8x128xf32>
    %324 = math.exp %323 : vector<8x128xf32>
    %cst_73 = arith.constant 1.000000e+00 : f32
    %325 = vector.broadcast %cst_73 : f32 to vector<8x128xf32>
    %326 = arith.addf %325, %324 : vector<8x128xf32>
    %327 = arith.divf %325, %326 : vector<8x128xf32>
    %328 = arith.mulf %319, %302 : vector<8x128xf32>
    %329 = arith.mulf %313, %321 : vector<8x128xf32>
    %330 = arith.addf %328, %329 : vector<8x128xf32>
    %331 = math.tanh %330 : vector<8x128xf32>
    %332 = arith.mulf %327, %331 : vector<8x128xf32>
    %333 = vector.extract_strided_slice %246 {offsets = [24, 0], sizes = [8, 512], strides = [1, 1]} : vector<64x512xf32> to vector<8x512xf32>
    %cst_74 = arith.constant dense<0.000000e+00> : vector<8x512xf32>
    %334 = tpu.matmul %332, %241, %cst_74 {dimension_numbers = #tpu.dot_dimension_numbers<[1], [0], [0], [1], [0, 0, 1, 1], [], []>} : vector<8x128xf32>, vector<128x512xf32>, vector<8x512xf32> -> vector<8x512xf32>
    %335 = arith.addf %333, %334 : vector<8x512xf32>
    %336 = vector.extract_strided_slice %335 {offsets = [0, 0], sizes = [8, 128], strides = [1, 1]} : vector<8x512xf32> to vector<8x128xf32>
    %337 = arith.negf %336 : vector<8x128xf32>
    %338 = math.exp %337 : vector<8x128xf32>
    %cst_75 = arith.constant 1.000000e+00 : f32
    %339 = vector.broadcast %cst_75 : f32 to vector<8x128xf32>
    %340 = arith.addf %339, %338 : vector<8x128xf32>
    %341 = arith.divf %339, %340 : vector<8x128xf32>
    %342 = vector.extract_strided_slice %335 {offsets = [0, 128], sizes = [8, 128], strides = [1, 1]} : vector<8x512xf32> to vector<8x128xf32>
    %343 = arith.negf %342 : vector<8x128xf32>
    %344 = math.exp %343 : vector<8x128xf32>
    %cst_76 = arith.constant 1.000000e+00 : f32
    %345 = vector.broadcast %cst_76 : f32 to vector<8x128xf32>
    %346 = arith.addf %345, %344 : vector<8x128xf32>
    %347 = arith.divf %345, %346 : vector<8x128xf32>
    %348 = vector.extract_strided_slice %335 {offsets = [0, 256], sizes = [8, 128], strides = [1, 1]} : vector<8x512xf32> to vector<8x128xf32>
    %349 = math.tanh %348 : vector<8x128xf32>
    %350 = vector.extract_strided_slice %335 {offsets = [0, 384], sizes = [8, 128], strides = [1, 1]} : vector<8x512xf32> to vector<8x128xf32>
    %351 = arith.negf %350 : vector<8x128xf32>
    %352 = math.exp %351 : vector<8x128xf32>
    %cst_77 = arith.constant 1.000000e+00 : f32
    %353 = vector.broadcast %cst_77 : f32 to vector<8x128xf32>
    %354 = arith.addf %353, %352 : vector<8x128xf32>
    %355 = arith.divf %353, %354 : vector<8x128xf32>
    %356 = arith.mulf %347, %330 : vector<8x128xf32>
    %357 = arith.mulf %341, %349 : vector<8x128xf32>
    %358 = arith.addf %356, %357 : vector<8x128xf32>
    %359 = math.tanh %358 : vector<8x128xf32>
    %360 = arith.mulf %355, %359 : vector<8x128xf32>
    %361 = vector.extract_strided_slice %246 {offsets = [32, 0], sizes = [8, 512], strides = [1, 1]} : vector<64x512xf32> to vector<8x512xf32>
    %cst_78 = arith.constant dense<0.000000e+00> : vector<8x512xf32>
    %362 = tpu.matmul %360, %241, %cst_78 {dimension_numbers = #tpu.dot_dimension_numbers<[1], [0], [0], [1], [0, 0, 1, 1], [], []>} : vector<8x128xf32>, vector<128x512xf32>, vector<8x512xf32> -> vector<8x512xf32>
    %363 = arith.addf %361, %362 : vector<8x512xf32>
    %364 = vector.extract_strided_slice %363 {offsets = [0, 0], sizes = [8, 128], strides = [1, 1]} : vector<8x512xf32> to vector<8x128xf32>
    %365 = arith.negf %364 : vector<8x128xf32>
    %366 = math.exp %365 : vector<8x128xf32>
    %cst_79 = arith.constant 1.000000e+00 : f32
    %367 = vector.broadcast %cst_79 : f32 to vector<8x128xf32>
    %368 = arith.addf %367, %366 : vector<8x128xf32>
    %369 = arith.divf %367, %368 : vector<8x128xf32>
    %370 = vector.extract_strided_slice %363 {offsets = [0, 128], sizes = [8, 128], strides = [1, 1]} : vector<8x512xf32> to vector<8x128xf32>
    %371 = arith.negf %370 : vector<8x128xf32>
    %372 = math.exp %371 : vector<8x128xf32>
    %cst_80 = arith.constant 1.000000e+00 : f32
    %373 = vector.broadcast %cst_80 : f32 to vector<8x128xf32>
    %374 = arith.addf %373, %372 : vector<8x128xf32>
    %375 = arith.divf %373, %374 : vector<8x128xf32>
    %376 = vector.extract_strided_slice %363 {offsets = [0, 256], sizes = [8, 128], strides = [1, 1]} : vector<8x512xf32> to vector<8x128xf32>
    %377 = math.tanh %376 : vector<8x128xf32>
    %378 = vector.extract_strided_slice %363 {offsets = [0, 384], sizes = [8, 128], strides = [1, 1]} : vector<8x512xf32> to vector<8x128xf32>
    %379 = arith.negf %378 : vector<8x128xf32>
    %380 = math.exp %379 : vector<8x128xf32>
    %cst_81 = arith.constant 1.000000e+00 : f32
    %381 = vector.broadcast %cst_81 : f32 to vector<8x128xf32>
    %382 = arith.addf %381, %380 : vector<8x128xf32>
    %383 = arith.divf %381, %382 : vector<8x128xf32>
    %384 = arith.mulf %375, %358 : vector<8x128xf32>
    %385 = arith.mulf %369, %377 : vector<8x128xf32>
    %386 = arith.addf %384, %385 : vector<8x128xf32>
    %387 = math.tanh %386 : vector<8x128xf32>
    %388 = arith.mulf %383, %387 : vector<8x128xf32>
    %389 = vector.extract_strided_slice %246 {offsets = [40, 0], sizes = [8, 512], strides = [1, 1]} : vector<64x512xf32> to vector<8x512xf32>
    %cst_82 = arith.constant dense<0.000000e+00> : vector<8x512xf32>
    %390 = tpu.matmul %388, %241, %cst_82 {dimension_numbers = #tpu.dot_dimension_numbers<[1], [0], [0], [1], [0, 0, 1, 1], [], []>} : vector<8x128xf32>, vector<128x512xf32>, vector<8x512xf32> -> vector<8x512xf32>
    %391 = arith.addf %389, %390 : vector<8x512xf32>
    %392 = vector.extract_strided_slice %391 {offsets = [0, 0], sizes = [8, 128], strides = [1, 1]} : vector<8x512xf32> to vector<8x128xf32>
    %393 = arith.negf %392 : vector<8x128xf32>
    %394 = math.exp %393 : vector<8x128xf32>
    %cst_83 = arith.constant 1.000000e+00 : f32
    %395 = vector.broadcast %cst_83 : f32 to vector<8x128xf32>
    %396 = arith.addf %395, %394 : vector<8x128xf32>
    %397 = arith.divf %395, %396 : vector<8x128xf32>
    %398 = vector.extract_strided_slice %391 {offsets = [0, 128], sizes = [8, 128], strides = [1, 1]} : vector<8x512xf32> to vector<8x128xf32>
    %399 = arith.negf %398 : vector<8x128xf32>
    %400 = math.exp %399 : vector<8x128xf32>
    %cst_84 = arith.constant 1.000000e+00 : f32
    %401 = vector.broadcast %cst_84 : f32 to vector<8x128xf32>
    %402 = arith.addf %401, %400 : vector<8x128xf32>
    %403 = arith.divf %401, %402 : vector<8x128xf32>
    %404 = vector.extract_strided_slice %391 {offsets = [0, 256], sizes = [8, 128], strides = [1, 1]} : vector<8x512xf32> to vector<8x128xf32>
    %405 = math.tanh %404 : vector<8x128xf32>
    %406 = vector.extract_strided_slice %391 {offsets = [0, 384], sizes = [8, 128], strides = [1, 1]} : vector<8x512xf32> to vector<8x128xf32>
    %407 = arith.negf %406 : vector<8x128xf32>
    %408 = math.exp %407 : vector<8x128xf32>
    %cst_85 = arith.constant 1.000000e+00 : f32
    %409 = vector.broadcast %cst_85 : f32 to vector<8x128xf32>
    %410 = arith.addf %409, %408 : vector<8x128xf32>
    %411 = arith.divf %409, %410 : vector<8x128xf32>
    %412 = arith.mulf %403, %386 : vector<8x128xf32>
    %413 = arith.mulf %397, %405 : vector<8x128xf32>
    %414 = arith.addf %412, %413 : vector<8x128xf32>
    %415 = math.tanh %414 : vector<8x128xf32>
    %416 = arith.mulf %411, %415 : vector<8x128xf32>
    %417 = vector.extract_strided_slice %246 {offsets = [48, 0], sizes = [8, 512], strides = [1, 1]} : vector<64x512xf32> to vector<8x512xf32>
    %cst_86 = arith.constant dense<0.000000e+00> : vector<8x512xf32>
    %418 = tpu.matmul %416, %241, %cst_86 {dimension_numbers = #tpu.dot_dimension_numbers<[1], [0], [0], [1], [0, 0, 1, 1], [], []>} : vector<8x128xf32>, vector<128x512xf32>, vector<8x512xf32> -> vector<8x512xf32>
    %419 = arith.addf %417, %418 : vector<8x512xf32>
    %420 = vector.extract_strided_slice %419 {offsets = [0, 0], sizes = [8, 128], strides = [1, 1]} : vector<8x512xf32> to vector<8x128xf32>
    %421 = arith.negf %420 : vector<8x128xf32>
    %422 = math.exp %421 : vector<8x128xf32>
    %cst_87 = arith.constant 1.000000e+00 : f32
    %423 = vector.broadcast %cst_87 : f32 to vector<8x128xf32>
    %424 = arith.addf %423, %422 : vector<8x128xf32>
    %425 = arith.divf %423, %424 : vector<8x128xf32>
    %426 = vector.extract_strided_slice %419 {offsets = [0, 128], sizes = [8, 128], strides = [1, 1]} : vector<8x512xf32> to vector<8x128xf32>
    %427 = arith.negf %426 : vector<8x128xf32>
    %428 = math.exp %427 : vector<8x128xf32>
    %cst_88 = arith.constant 1.000000e+00 : f32
    %429 = vector.broadcast %cst_88 : f32 to vector<8x128xf32>
    %430 = arith.addf %429, %428 : vector<8x128xf32>
    %431 = arith.divf %429, %430 : vector<8x128xf32>
    %432 = vector.extract_strided_slice %419 {offsets = [0, 256], sizes = [8, 128], strides = [1, 1]} : vector<8x512xf32> to vector<8x128xf32>
    %433 = math.tanh %432 : vector<8x128xf32>
    %434 = vector.extract_strided_slice %419 {offsets = [0, 384], sizes = [8, 128], strides = [1, 1]} : vector<8x512xf32> to vector<8x128xf32>
    %435 = arith.negf %434 : vector<8x128xf32>
    %436 = math.exp %435 : vector<8x128xf32>
    %cst_89 = arith.constant 1.000000e+00 : f32
    %437 = vector.broadcast %cst_89 : f32 to vector<8x128xf32>
    %438 = arith.addf %437, %436 : vector<8x128xf32>
    %439 = arith.divf %437, %438 : vector<8x128xf32>
    %440 = arith.mulf %431, %414 : vector<8x128xf32>
    %441 = arith.mulf %425, %433 : vector<8x128xf32>
    %442 = arith.addf %440, %441 : vector<8x128xf32>
    %443 = math.tanh %442 : vector<8x128xf32>
    %444 = arith.mulf %439, %443 : vector<8x128xf32>
    %445 = vector.extract_strided_slice %246 {offsets = [56, 0], sizes = [8, 512], strides = [1, 1]} : vector<64x512xf32> to vector<8x512xf32>
    %cst_90 = arith.constant dense<0.000000e+00> : vector<8x512xf32>
    %446 = tpu.matmul %444, %241, %cst_90 {dimension_numbers = #tpu.dot_dimension_numbers<[1], [0], [0], [1], [0, 0, 1, 1], [], []>} : vector<8x128xf32>, vector<128x512xf32>, vector<8x512xf32> -> vector<8x512xf32>
    %447 = arith.addf %445, %446 : vector<8x512xf32>
    %448 = vector.extract_strided_slice %447 {offsets = [0, 0], sizes = [8, 128], strides = [1, 1]} : vector<8x512xf32> to vector<8x128xf32>
    %449 = arith.negf %448 : vector<8x128xf32>
    %450 = math.exp %449 : vector<8x128xf32>
    %cst_91 = arith.constant 1.000000e+00 : f32
    %451 = vector.broadcast %cst_91 : f32 to vector<8x128xf32>
    %452 = arith.addf %451, %450 : vector<8x128xf32>
    %453 = arith.divf %451, %452 : vector<8x128xf32>
    %454 = vector.extract_strided_slice %447 {offsets = [0, 128], sizes = [8, 128], strides = [1, 1]} : vector<8x512xf32> to vector<8x128xf32>
    %455 = arith.negf %454 : vector<8x128xf32>
    %456 = math.exp %455 : vector<8x128xf32>
    %cst_92 = arith.constant 1.000000e+00 : f32
    %457 = vector.broadcast %cst_92 : f32 to vector<8x128xf32>
    %458 = arith.addf %457, %456 : vector<8x128xf32>
    %459 = arith.divf %457, %458 : vector<8x128xf32>
    %460 = vector.extract_strided_slice %447 {offsets = [0, 256], sizes = [8, 128], strides = [1, 1]} : vector<8x512xf32> to vector<8x128xf32>
    %461 = math.tanh %460 : vector<8x128xf32>
    %462 = vector.extract_strided_slice %447 {offsets = [0, 384], sizes = [8, 128], strides = [1, 1]} : vector<8x512xf32> to vector<8x128xf32>
    %463 = arith.negf %462 : vector<8x128xf32>
    %464 = math.exp %463 : vector<8x128xf32>
    %cst_93 = arith.constant 1.000000e+00 : f32
    %465 = vector.broadcast %cst_93 : f32 to vector<8x128xf32>
    %466 = arith.addf %465, %464 : vector<8x128xf32>
    %467 = arith.divf %465, %466 : vector<8x128xf32>
    %468 = arith.mulf %459, %442 : vector<8x128xf32>
    %469 = arith.mulf %453, %461 : vector<8x128xf32>
    %470 = arith.addf %468, %469 : vector<8x128xf32>
    %471 = math.tanh %470 : vector<8x128xf32>
    %472 = arith.mulf %467, %471 : vector<8x128xf32>
    %c0_94 = arith.constant 0 : index
    %c0_95 = arith.constant 0 : index
    %c0_96 = arith.constant 0 : index
    %473 = vector.load %arg5[%c0_94, %c0_95, %c0_96] : memref<1x1x128xf32, #tpu.memory_space<vmem>>, vector<1x1x128xf32>
    %474 = vector.shape_cast %473 : vector<1x1x128xf32> to vector<1x128xf32>
    %c0_97 = arith.constant 0 : index
    %c0_98 = arith.constant 0 : index
    %c0_99 = arith.constant 0 : index
    %475 = vector.load %arg6[%c0_97, %c0_98, %c0_99] : memref<1x1x8xf32, #tpu.memory_space<vmem>>, vector<1x1x8xf32>
    %476 = vector.shape_cast %475 : vector<1x1x8xf32> to vector<1x8xf32>
    %c0_100 = arith.constant 0 : index
    %c0_101 = arith.constant 0 : index
    %c0_102 = arith.constant 0 : index
    %477 = vector.load %arg8[%c0_100, %c0_101, %c0_102] : memref<1x8x8xf32, #tpu.memory_space<vmem>>, vector<1x8x8xf32>
    %478 = vector.shape_cast %477 : vector<1x8x8xf32> to vector<8x8xf32>
    %479 = vector.broadcast %474 : vector<1x128xf32> to vector<8x128xf32>
    %480 = arith.mulf %472, %479 : vector<8x128xf32>
    %cst_103 = arith.constant dense<0.000000e+00> : vector<8xf32>
    %481 = vector.multi_reduction <add>, %480, %cst_103 [1] : vector<8x128xf32> to vector<8xf32>
    %482 = vector.shape_cast %481 : vector<8xf32> to vector<8x1xf32>
    %483 = vector.broadcast %476 : vector<1x8xf32> to vector<8x8xf32>
    %484 = arith.mulf %478, %483 : vector<8x8xf32>
    %cst_104 = arith.constant dense<0.000000e+00> : vector<8xf32>
    %485 = vector.multi_reduction <add>, %484, %cst_104 [1] : vector<8x8xf32> to vector<8xf32>
    %486 = vector.shape_cast %485 : vector<8xf32> to vector<8x1xf32>
    %487 = arith.addf %482, %486 : vector<8x1xf32>
    %c0_105 = arith.constant 0 : index
    %c0_106 = arith.constant 0 : index
    %c0_107 = arith.constant 0 : index
    %488 = vector.load %arg7[%c0_105, %c0_106, %c0_107] : memref<1x1x1xf32, #tpu.memory_space<vmem>>, vector<1x1x1xf32>
    %489 = vector.shape_cast %488 : vector<1x1x1xf32> to vector<1x1xf32>
    %490 = vector.broadcast %489 : vector<1x1xf32> to vector<8x1xf32>
    %491 = arith.addf %487, %490 : vector<8x1xf32>
    %c0_108 = arith.constant 0 : index
    %c0_109 = arith.constant 0 : index
    %c0_110 = arith.constant 0 : index
    %492 = vector.load %arg9[%c0_108, %c0_109, %c0_110] : memref<1x8x1xf32, #tpu.memory_space<vmem>>, vector<1x8x1xf32>
    %493 = vector.shape_cast %492 : vector<1x8x1xf32> to vector<8x1xf32>
    %494 = vector.shape_cast %491 : vector<8x1xf32> to vector<1x8x1xf32>
    tpu.vector_store %arg9[%c0_108, %c0_109, %c0_110], %494 {strides = array<i32>} : memref<1x8x1xf32, #tpu.memory_space<vmem>>, vector<1x8x1xf32>,
    return
  }
  func.func @transform_0(%arg0: i32) -> (i32, i32, i32) {
    %c0_i32 = arith.constant 0 : i32
    %c0_i32_0 = arith.constant 0 : i32
    %c0_i32_1 = arith.constant 0 : i32
    return %arg0, %c0_i32, %c0_i32_0 : i32, i32, i32
  }
  func.func @transform_1(%arg0: i32) -> (i32, i32, i32, i32) {
    %c0_i32 = arith.constant 0 : i32
    %c0_i32_0 = arith.constant 0 : i32
    %c0_i32_1 = arith.constant 0 : i32
    %c0_i32_2 = arith.constant 0 : i32
    return %arg0, %c0_i32, %c0_i32_0, %c0_i32_1 : i32, i32, i32, i32
  }
  func.func @transform_2(%arg0: i32) -> (i32, i32, i32, i32) {
    %c0_i32 = arith.constant 0 : i32
    %c0_i32_0 = arith.constant 0 : i32
    %c0_i32_1 = arith.constant 0 : i32
    %c0_i32_2 = arith.constant 0 : i32
    return %arg0, %c0_i32, %c0_i32_0, %c0_i32_1 : i32, i32, i32, i32
  }
  func.func @transform_3(%arg0: i32) -> (i32, i32, i32, i32) {
    %c0_i32 = arith.constant 0 : i32
    %c0_i32_0 = arith.constant 0 : i32
    %c0_i32_1 = arith.constant 0 : i32
    %c0_i32_2 = arith.constant 0 : i32
    return %arg0, %c0_i32, %c0_i32_0, %c0_i32_1 : i32, i32, i32, i32
  }
  func.func @transform_4(%arg0: i32) -> (i32, i32, i32) {
    %c0_i32 = arith.constant 0 : i32
    %c0_i32_0 = arith.constant 0 : i32
    %c0_i32_1 = arith.constant 0 : i32
    return %arg0, %c0_i32, %c0_i32_0 : i32, i32, i32
  }
  func.func @transform_5(%arg0: i32) -> (i32, i32, i32) {
    %c0_i32 = arith.constant 0 : i32
    %c0_i32_0 = arith.constant 0 : i32
    %c0_i32_1 = arith.constant 0 : i32
    return %arg0, %c0_i32, %c0_i32_0 : i32, i32, i32
  }
  func.func @transform_6(%arg0: i32) -> (i32, i32, i32) {
    %c0_i32 = arith.constant 0 : i32
    %c0_i32_0 = arith.constant 0 : i32
    %c0_i32_1 = arith.constant 0 : i32
    return %arg0, %c0_i32, %c0_i32_0 : i32, i32, i32
  }
  func.func @transform_7(%arg0: i32) -> (i32, i32, i32) {
    %c0_i32 = arith.constant 0 : i32
    %c0_i32_0 = arith.constant 0 : i32
    %c0_i32_1 = arith.constant 0 : i32
    return %arg0, %c0_i32, %c0_i32_0 : i32, i32, i32
  }
  func.func @transform_8(%arg0: i32) -> (i32, i32, i32) {
    %c0_i32 = arith.constant 0 : i32
    %c0_i32_0 = arith.constant 0 : i32
    %c0_i32_1 = arith.constant 0 : i32
    return %arg0, %c0_i32, %c0_i32_0 : i32, i32, i32
  }
}

</mosaic_0001>

<bundles_post_ra>
// kernel: fused_streams_call.1
= control target key start
LH: loop header
LB: loop body
LE: loop exit
PB: predicated region body
PF: predicated region fallthrough
CT: control target
= control target key end

     0   :  { %s7942_s0 = inlined_call_operand.hbm [shape: f32[3,64,128], index: 0, kind: input, shape index: {}]   ;;  %s7943_s1 = inlined_call_operand.hbm [shape: f32[3,2,128,512], index: 1, kind: input, shape index: {}]   ;;  %s7944_s2 = inlined_call_operand.hbm [shape: f32[3,2,128,512], index: 2, kind: input, shape index: {}]   ;;  %s7945_s3 = inlined_call_operand.hbm [shape: f32[3,2,1,512], index: 3, kind: input, shape index: {}]   ;;  %s7946_s4 = inlined_call_operand.hbm [shape: f32[3,1,128], index: 4, kind: input, shape index: {}]   ;;  %s7947_s5 = inlined_call_operand.hbm [shape: f32[3,1,8], index: 5, kind: input, shape index: {}]   ;;  %s7948_s6 = inlined_call_operand.vmem [shape: f32[3,1,1], index: 6, kind: input, shape index: {}]   ;;  %s7949_s7 = inlined_call_operand.hbm [shape: f32[3,8,8], index: 7, kind: input, shape index: {}]   ;;  %s7950_s8 = inlined_call_operand.vmem [shape: f32[3,8,1], index: 8, kind: output, shape index: {}]  }
   0x1   :  { %7965 = sst [smem:[#allocation20_spill]] %s7943_s1 }
   0x2   :  { %7966 = sst [smem:[#allocation21_spill]] %s7945_s3 }
   0x3   :  { %7967 = sst [smem:[#allocation22_spill]] %s7948_s6 }
   0x4   :  { %7968 = sst [smem:[#allocation23_spill]] %s7950_s8 }
   0x5   :  { %13 = vsyncpa [#allocation3], 0 }
   0x6   :  { %15 = vsyncpa [#allocation3 + $0x1], 0 }
   0x7   :  { %16 = vsyncpa [#allocation5], 0 }
   0x8   :  { %18 = vsyncpa [#allocation5 + $0x1], 0 }
   0x9   :  { %19 = vsyncpa [#allocation8], 0 }
   0xa   :  { %21 = vsyncpa [#allocation8 + $0x1], 0 }
   0xb   :  { %22 = vsyncpa [#allocation11], 0 }
   0xc   :  { %24 = vsyncpa [#allocation11 + $0x1], 0  ;;  %s6409_s27 = smov 0   ;;  %s6411_s28 = smov 0  }
   0xd   :  { %s6413_s29 = smov 0   ;;  %s6415_s30 = smov 0  }
   0xe LB: > { %7969 = sst [smem:[#allocation17_spill]] %s6344_s29  ;;  %s6428_s9 = sadd.s32 4294967295, %s6348_s30   ;;  %s6348_s30 = sphi %s6415_s30, %s7991_s30   ;;  %s6344_s29 = sphi %s6413_s29, %s7993_s29   ;;  %s6340_s28 = sphi %s6411_s28, %s7995_s28   ;;  %s6336_s27 = sphi %s6409_s27, %s7994_s27  }
   0xf   : > { %s6431_s10 = sadd.s32 1, %s6348_s30   ;;  %s37_s12 = sadd.s32 1, %s6344_s29 }
  0x10   : > { %7970 = sst [smem:[#allocation18_spill]] %s6431_s10  ;;  %s34_s11 = ssub.s32 %s6348_s30, %s6431_s10 }
  0x11   : > { %p35_p0 = scmp.eq.s32.totalorder %s34_s11, 0  ;;  %p44_p1 = scmp.ne.s32.totalorder %s6344_s29, %s6340_s28 }
  0x12   : > { %p45_p2 = scmp.eq.s32.totalorder %s6348_s30, 0  ;;  %p50_p3 = scmp.ne.s32.totalorder %s6340_s28, %s6336_s27 }
  0x13   : > { %s6441_s13 = scalar_select %p35_p0, %s6344_s29, %s37_s12  }
  0x14   : > { %p46_p4 = por %p45_p2, %p44_p1  ;;  %p51_p5 = scmp.eq.s32.totalorder %s6428_s9, 0 }
  0x15   : > { %7971 = sst [smem:[#allocation19_spill]] %s6441_s13  ;;  %p5796_p6 = scmp.lt.s32.totalorder %s6348_s30, 3 }
  0x16   : > { %p6445_p7 = por %p51_p5, %p50_p3  ;;  %s6450_s15 = sand.u32 1, %s6344_s29  }
  0x17   : > { %p6452_p8 = pnand %p5796_p6, %p46_p4  ;;  %s6457_s17 = sand.u32 1, %s6348_s30  }
  0x18   : > { %s7972_s14 = scalar_select %p6445_p7, 1, 0 }
  0x19   : > { %s7973_s16 = scalar_select %p6452_p8, 1, 0 }
  0x1a   : > { %s7951_s18 = sshll.u32 %s6450_s15, 10  ;;  %s4477_s19 = sshll.u32 %s6348_s30, 14 }
  0x1b   : > { %s307_s20 = scalar_lea.vmem [#allocation4], %s7951_s18  ;;  %s7974_s1 = sld [smem:[#allocation20_spill]] }
  0x1c   : > { %s314_s21 = sshll.u32 %s307_s20, 4  ;;  %s7954_s25 = scalar_lea.sflag [#allocation5], %s6457_s17  ;;  %s6470_s21 = int_to_ptr.vmem [resolvable:$true] %s314_s21 }
  0x1d   : > { %p6477_p10 = pneg %p6452_p8 }
  0x21   : > { %s6468_s24 = scalar_lea.hbm %s7974_s1, %s4477_s19  ;;  %s6097_s20 = scalar_lea.hbm %s7974_s1, 49152 }
  0x22   : > { %s6092_s26 = scalar_lea.hbm %s6468_s24, 16384  ;;  %p6098_p13 = scmp.lt.u32.totalorder %s6468_s24, %s7974_s1 }
  0x23   : > { %p6093_p9 = scmp.ne.s32.totalorder %s6468_s24, %s6092_s26  ;;  %p6099_p0 = scmp.lt.u32.totalorder %s6097_s20, %s6092_s26 }
  0x24   : > { %p6101_p2 = scmp.lt.u32.totalorder %s6092_s26, %s6468_s24 }
  0x25   : > { %p6095_p11 = pnand %p6477_p10, %p6093_p9  ;;  %p6100_p1 = por %p6099_p0, %p6098_p13 }
  0x27   : > { %p6096_p12 = pneg %p6095_p11  ;;  %p6102_p3 = por %p6101_p2, %p6100_p1 }
  0x29   : > { %p6103_p4 = pnand %p6102_p3, %p6096_p12 }
  0x2b   : > { %6106 = shalt.err (!%p6103_p4)
}
  0x2c   : > { %s6107_s18 = scalar_lea.vmem %s6470_s21, 16384  ;;  %s6350_s11 = smov [#allocation4]  }
  0x2d   : > { %p6108_p5 = scmp.ne.s32.totalorder %s6470_s21, %s6107_s18  ;;  %s6112_s12 = sshll.u32 %s6350_s11, 4  ;;  %s6113_s12 = int_to_ptr.vmem [resolvable:$false] %s6112_s12 }
  0x2e   : > { %s6114_s22 = scalar_lea.vmem %s6113_s12, 32768  ;;  %p6115_p11 = scmp.lt.s32.totalorder %s6470_s21, %s6113_s12 }
  0x2f   : > { %p6110_p6 = pnand %p6108_p5, %p6477_p10  ;;  %p6116_p7 = scmp.lt.s32.totalorder %s6114_s22, %s6107_s18 }
  0x31   : > { %p6111_p9 = pneg %p6110_p6  ;;  %p6117_p13 = por %p6116_p7, %p6115_p11 }
  0x33   : > { %p6118_p0 = pnand %p6117_p13, %p6111_p9 }
  0x35   : > { %6121 = shalt.err (!%p6118_p0)
}
  0x36   : > { %s7956_s26 = smov 512   ;;  %s7957_s20 = smov 32  }
  0x37   : > { %5780 = dma.hbm_to_vmem [thread:$0]  (!%p6452_p8), %s6468_s24, 16384, %s6470_s21, %s7954_s25, %s7956_s26, %s7956_s26, %s7957_s20  }
  0x38   : > { %s6510_s11 = scalar_lea.hbm %s7944_s2, %s4477_s19  ;;  %s7976_s12 = sshll.u32 %s6450_s15, 10 }
  0x39   : > { %s328_s22 = scalar_lea.vmem [#allocation6], %s7976_s12  ;;  %p4287_p7 = scmp.ge.s32.totalorder %s6348_s30, 1 }
  0x3a   : > { %s335_s1 = sshll.u32 %s328_s22, 4  ;;  %p422_p12 = scmp.lt.s32.totalorder %s6348_s30, 4  ;;  %s6515_s1 = int_to_ptr.vmem [resolvable:$true] %s335_s1 }
  0x3b   : > { %s7955_s13 = sshll.u32 %s6450_s15, 3  ;;  %s7958_s21 = sshll.u32 %s6348_s30, 7 }
  0x3c   : > { %p6519_p1 = pnand %p4287_p7, %p422_p12  ;;  %s349_s24 = scalar_lea.vmem [#allocation7], %s7955_s13 }
  0x3d   : > { %s356_s25 = sshll.u32 %s349_s24, 4  ;;  %s7978_s3 = sld [smem:[#allocation21_spill]]  ;;  %s6533_s25 = int_to_ptr.vmem [resolvable:$true] %s356_s25 }
  0x3e   : > { %s7977_s29 = scalar_select %p6519_p1, 1, 0 }
  0x3f   : > { %s346_s12 = scalar_lea.sflag [#allocation8], %s6457_s17 }
  0x43   : > { %s6531_s23 = scalar_lea.hbm %s7978_s3, %s7958_s21  ;;  %s6127_s26 = scalar_lea.hbm %s7978_s3, 384 }
  0x44   : > { %s6122_s22 = scalar_lea.hbm %s6531_s23, 128  ;;  %p6128_p5 = scmp.lt.u32.totalorder %s6531_s23, %s7978_s3 }
  0x45   : > { %p6123_p2 = scmp.ne.s32.totalorder %s6531_s23, %s6122_s22  ;;  %p6129_p6 = scmp.lt.u32.totalorder %s6127_s26, %s6122_s22 }
  0x46   : > { %p6131_p11 = scmp.lt.u32.totalorder %s6122_s22, %s6531_s23 }
  0x47   : > { %p6125_p3 = pnand %p6123_p2, %p6477_p10  ;;  %p6130_p9 = por %p6129_p6, %p6128_p5 }
  0x49   : > { %p6126_p4 = pneg %p6125_p3  ;;  %p6132_p13 = por %p6131_p11, %p6130_p9 }
  0x4b   : > { %p6133_p0 = pnand %p6132_p13, %p6126_p4 }
  0x4d   : > { %6136 = shalt.err (!%p6133_p0)
}
  0x4e   : > { %s6137_s18 = scalar_lea.vmem %s6533_s25, 128  ;;  %s6353_s13 = smov [#allocation7]  }
  0x4f   : > { %p6138_p7 = scmp.ne.s32.totalorder %s6533_s25, %s6137_s18  ;;  %s6142_s24 = sshll.u32 %s6353_s13, 4  ;;  %s6143_s24 = int_to_ptr.vmem [resolvable:$false] %s6142_s24 }
  0x50   : > { %s6144_s20 = scalar_lea.vmem %s6143_s24, 256  ;;  %p6145_p3 = scmp.lt.s32.totalorder %s6533_s25, %s6143_s24 }
  0x51   : > { %p6140_p12 = pnand %p6138_p7, %p6477_p10  ;;  %p6146_p1 = scmp.lt.s32.totalorder %s6144_s20, %s6137_s18 }
  0x53   : > { %p6141_p2 = pneg %p6140_p12  ;;  %p6147_p5 = por %p6146_p1, %p6145_p3 }
  0x55   : > { %p6148_p6 = pnand %p6147_p5, %p6141_p2 }
  0x57   : > { %6151 = shalt.err (!%p6148_p6)
}
  0x58   : > { %s6354_s26 = smov 64   ;;  %s6355_s22 = smov 4  }
  0x59   : > { %5786 = dma.hbm_to_vmem [thread:$0]  (!%p6452_p8), %s6531_s23, 128, %s6533_s25, %s346_s12, %s6354_s26, %s6354_s26, %s6355_s22  }
  0x5a   : > { %s4283_s19 = sshll.u32 %s6348_s30, 4  ;;  %s386_s10 = scalar_lea.vmem [#allocation10], %s6450_s15 }
  0x5b   : > { %s6563_s18 = scalar_lea.hbm %s7946_s4, %s4283_s19  ;;  %s6568_s3 = scalar_lea.hbm %s7947_s5, %s4283_s19 }
  0x5c   : > { %s393_s8 = sshll.u32 %s386_s10, 4  ;;  %s7963_s6 = scalar_lea.sflag [#allocation11], %s6457_s17  ;;  %s394_s8 = int_to_ptr.vmem [resolvable:$true] %s393_s8 }
  0x5d   : > { %s6152_s25 = scalar_lea.hbm %s6568_s3, 16  ;;  %s6157_s22 = scalar_lea.hbm %s7947_s5, 48 }
  0x5e   : > { %p6153_p1 = scmp.ne.s32.totalorder %s6568_s3, %s6152_s25  ;;  %p6158_p11 = scmp.lt.u32.totalorder %s6568_s3, %s7947_s5 }
  0x5f   : > { %p6159_p13 = scmp.lt.u32.totalorder %s6157_s22, %s6152_s25  ;;  %p6161_p7 = scmp.lt.u32.totalorder %s6152_s25, %s6568_s3 }
  0x60   : > { %p6155_p4 = pnand %p6153_p1, %p6477_p10 }
  0x61   : > { %p6160_p0 = por %p6159_p13, %p6158_p11 }
  0x62   : > { %p6156_p9 = pneg %p6155_p4 }
  0x63   : > { %p6162_p12 = por %p6161_p7, %p6160_p0 }
  0x65   : > { %p6163_p2 = pnand %p6162_p12, %p6156_p9 }
  0x67   : > { %6166 = shalt.err (!%p6163_p2)
}
  0x68   : > { %s6167_s10 = scalar_lea.vmem %s394_s8, 16  ;;  %s6356_s13 = smov [#allocation10]  }
  0x69   : > { %p6168_p3 = scmp.ne.s32.totalorder %s394_s8, %s6167_s10  ;;  %s6172_s24 = sshll.u32 %s6356_s13, 4  ;;  %s6173_s24 = int_to_ptr.vmem [resolvable:$false] %s6172_s24 }
  0x6a   : > { %s6174_s20 = scalar_lea.vmem %s6173_s24, 32  ;;  %p6175_p1 = scmp.lt.s32.totalorder %s394_s8, %s6173_s24 }
  0x6b   : > { %p6170_p5 = pnand %p6168_p3, %p6477_p10  ;;  %p6176_p4 = scmp.lt.s32.totalorder %s6174_s20, %s6167_s10 }
  0x6d   : > { %p6171_p6 = pneg %p6170_p5  ;;  %p6177_p8 = por %p6176_p4, %p6175_p1 }
  0x6f   : > { %p6178_p11 = pnand %p6177_p8, %p6171_p6 }
  0x71   : > { %6181 = shalt.err (!%p6178_p11)
}
  0x72   : > { %p7979_p13 = scmp.ne.s32.totalorder %s7973_s16, 0  ;;  %s4271_s25 = sshll.u32 %s6450_s15, 6 }
  0x73   : > { %s4476_s23 = sshll.u32 %s6348_s30, 10  ;;  %s286_s19 = scalar_lea.vmem [#allocation2], %s4271_s25 }
  0x74   : > { %5792 = dma.hbm_to_vmem [thread:$0]  (!%p7979_p13), %s6568_s3, 16, %s394_s8, %s7963_s6  }
  0x75   : > { %s6596_s21 = scalar_lea.hbm %s7942_s0, %s4476_s23  ;;  %s293_s10 = sshll.u32 %s286_s19, 4  ;;  %s6598_s10 = int_to_ptr.vmem [resolvable:$true] %s293_s10 }
  0x76   : > { %s283_s13 = scalar_lea.sflag [#allocation3], %s6450_s15  ;;  %s6182_s24 = scalar_lea.hbm %s6596_s21, 1024 }
  0x77   : > { %p6183_p8 = scmp.ne.s32.totalorder %s6596_s21, %s6182_s24  ;;  %s6187_s20 = scalar_lea.hbm %s7942_s0, 3072 }
  0x78   : > { %p6188_p7 = scmp.lt.u32.totalorder %s6596_s21, %s7942_s0  ;;  %p6189_p12 = scmp.lt.u32.totalorder %s6187_s20, %s6182_s24 }
  0x79   : > { %p6185_p9 = pnand %p6183_p8, %p6477_p10  ;;  %p6191_p3 = scmp.lt.u32.totalorder %s6182_s24, %s6596_s21 }
  0x7a   : > { %p6190_p2 = por %p6189_p12, %p6188_p7 }
  0x7b   : > { %p6186_p0 = pneg %p6185_p9 }
  0x7c   : > { %p6192_p5 = por %p6191_p3, %p6190_p2 }
  0x7e   : > { %p6193_p6 = pnand %p6192_p5, %p6186_p0 }
  0x80   : > { %6196 = shalt.err (!%p6193_p6)
}
  0x81   : > { %s6197_s25 = scalar_lea.vmem %s6598_s10, 1024  ;;  %s6357_s22 = smov [#allocation2]  }
  0x82   : > { %p6198_p1 = scmp.ne.s32.totalorder %s6598_s10, %s6197_s25  ;;  %s6202_s19 = sshll.u32 %s6357_s22, 4  ;;  %s6203_s19 = int_to_ptr.vmem [resolvable:$false] %s6202_s19 }
  0x83   : > { %s6204_s3 = scalar_lea.vmem %s6203_s19, 2048  ;;  %p6205_p8 = scmp.lt.s32.totalorder %s6598_s10, %s6203_s19 }
  0x84   : > { %p6200_p4 = pnand %p6198_p1, %p6477_p10  ;;  %p6206_p9 = scmp.lt.s32.totalorder %s6204_s3, %s6197_s25 }
  0x86   : > { %p6201_p11 = pneg %p6200_p4  ;;  %p6207_p7 = por %p6206_p9, %p6205_p8 }
  0x88   : > { %p6208_p12 = pnand %p6207_p7, %p6201_p11 }
  0x8a   : > { %6211 = shalt.err (!%p6208_p12)
}
  0x8b   : > { %s6358_s24 = smov 128   ;;  %s6359_s8 = smov 8  }
  0x8c   : > { %5777 = dma.hbm_to_vmem [thread:$0]  (!%p7979_p13), %s6596_s21, 1024, %s6598_s10, %s283_s13, %s6358_s24, %s6358_s24, %s6359_s8  }
  0x8d   : > { %s6212_s20 = scalar_lea.hbm %s6510_s11, 16384  ;;  %s6217_s25 = scalar_lea.hbm %s7944_s2, 49152 }
  0x8e   : > { %p6213_p0 = scmp.ne.s32.totalorder %s6510_s11, %s6212_s20  ;;  %p6218_p5 = scmp.lt.u32.totalorder %s6510_s11, %s7944_s2 }
  0x8f   : > { %p6219_p6 = scmp.lt.u32.totalorder %s6217_s25, %s6212_s20  ;;  %p6221_p4 = scmp.lt.u32.totalorder %s6212_s20, %s6510_s11 }
  0x90   : > { %p6215_p2 = pnand %p6213_p0, %p6477_p10 }
  0x91   : > { %p6220_p1 = por %p6219_p6, %p6218_p5 }
  0x92   : > { %p6216_p3 = pneg %p6215_p2 }
  0x93   : > { %p6222_p11 = por %p6221_p4, %p6220_p1 }
  0x95   : > { %p6223_p8 = pnand %p6222_p11, %p6216_p3 }
  0x97   : > { %6226 = shalt.err (!%p6223_p8)
}
  0x98   : > { %s6227_s21 = scalar_lea.vmem %s6515_s1, 16384  ;;  %s6360_s10 = smov [#allocation6]  }
  0x99   : > { %p6228_p9 = scmp.ne.s32.totalorder %s6515_s1, %s6227_s21  ;;  %s6232_s13 = sshll.u32 %s6360_s10, 4  ;;  %s6233_s13 = int_to_ptr.vmem [resolvable:$false] %s6232_s13 }
  0x9a   : > { %s6234_s3 = scalar_lea.vmem %s6233_s13, 32768  ;;  %p6235_p0 = scmp.lt.s32.totalorder %s6515_s1, %s6233_s13 }
  0x9b   : > { %p6230_p7 = pnand %p6228_p9, %p6477_p10  ;;  %p6236_p2 = scmp.lt.s32.totalorder %s6234_s3, %s6227_s21 }
  0x9d   : > { %p6231_p12 = pneg %p6230_p7  ;;  %p6237_p5 = por %p6236_p2, %p6235_p0 }
  0x9f   : > { %p6238_p6 = pnand %p6237_p5, %p6231_p12 }
  0xa1   : > { %6241 = shalt.err (!%p6238_p6)
}
  0xa2   : > { %s7980_s24 = smov 32   ;;  %s7981_s8 = smov 512  }
  0xa3   : > { %s7982_s20 = scalar_lea.sflag [#allocation5], %s6457_s17  ;;  %s369_s23 = scalar_lea.vmem [#allocation9], %s6450_s15 }
  0xa4   : > { %5783 = dma.hbm_to_vmem [thread:$0]  (!%p7979_p13), %s6510_s11, 16384, %s6515_s1, %s7982_s20, %s7981_s8, %s7981_s8, %s7980_s24  }
  0xa5   : > { %s376_s26 = sshll.u32 %s369_s23, 4  ;;  %s7983_s25 = sshll.u32 %s6348_s30, 7  ;;  %s6658_s26 = int_to_ptr.vmem [resolvable:$true] %s376_s26 }
  0xa6   : > { %s6656_s21 = scalar_lea.hbm %s7949_s7, %s7983_s25  ;;  %s7984_s10 = sshll.u32 %s6450_s15, 3 }
  0xa7   : > { %s6662_s13 = scalar_lea.vmem [#allocation12], %s7984_s10  ;;  %s6242_s6 = scalar_lea.hbm %s6563_s18, 16 }
  0xa8   : > { %s417_s3 = sshll.u32 %s6662_s13, 4  ;;  %p6243_p3 = scmp.ne.s32.totalorder %s6563_s18, %s6242_s6  ;;  %s418_s3 = int_to_ptr.vmem [resolvable:$true] %s417_s3 }
  0xa9   : > { %s6247_s30 = scalar_lea.hbm %s7946_s4, 48  ;;  %p6248_p11 = scmp.lt.u32.totalorder %s6563_s18, %s7946_s4 }
  0xaa   : > { %p6245_p1 = pnand %p6243_p3, %p6477_p10  ;;  %p6249_p8 = scmp.lt.u32.totalorder %s6247_s30, %s6242_s6 }
  0xab   : > { %p6251_p7 = scmp.lt.u32.totalorder %s6242_s6, %s6563_s18 }
  0xac   : > { %p6246_p4 = pneg %p6245_p1  ;;  %p6250_p9 = por %p6249_p8, %p6248_p11 }
  0xae   : > { %p6252_p12 = por %p6251_p7, %p6250_p9 }
  0xb0   : > { %p6253_p0 = pnand %p6252_p12, %p6246_p4 }
  0xb2   : > { %6256 = shalt.err (!%p6253_p0)
}
  0xb3   : > { %s6257_s15 = scalar_lea.vmem %s6658_s26, 16  ;;  %s6361_s20 = smov [#allocation9]  }
  0xb4   : > { %p6258_p2 = scmp.ne.s32.totalorder %s6658_s26, %s6257_s15  ;;  %s6262_s23 = sshll.u32 %s6361_s20, 4  ;;  %s6263_s23 = int_to_ptr.vmem [resolvable:$false] %s6262_s23 }
  0xb5   : > { %s6264_s25 = scalar_lea.vmem %s6263_s23, 32  ;;  %p6265_p3 = scmp.lt.s32.totalorder %s6658_s26, %s6263_s23 }
  0xb6   : > { %p6260_p5 = pnand %p6258_p2, %p6477_p10  ;;  %p6266_p1 = scmp.lt.s32.totalorder %s6264_s25, %s6257_s15 }
  0xb8   : > { %p6261_p6 = pneg %p6260_p5  ;;  %p6267_p11 = por %p6266_p1, %p6265_p3 }
  0xba   : > { %p6268_p8 = pnand %p6267_p11, %p6261_p6 }
  0xbc   : > { %6271 = shalt.err (!%p6268_p8)
}
  0xbd   : > { %5789 = dma.hbm_to_vmem [thread:$0]  (!%p7979_p13), %s6563_s18, 16, %s6658_s26, %s346_s12  }
  0xbe   : > { %s6272_s6 = scalar_lea.hbm %s6656_s21, 128  ;;  %s6277_s10 = scalar_lea.hbm %s7949_s7, 384 }
  0xbf   : > { %p6273_p4 = scmp.ne.s32.totalorder %s6656_s21, %s6272_s6  ;;  %p6278_p12 = scmp.lt.u32.totalorder %s6656_s21, %s7949_s7 }
  0xc0   : > { %p6279_p0 = scmp.lt.u32.totalorder %s6277_s10, %s6272_s6  ;;  %p6281_p5 = scmp.lt.u32.totalorder %s6272_s6, %s6656_s21 }
  0xc1   : > { %p6275_p9 = pnand %p6273_p4, %p6477_p10 }
  0xc2   : > { %p6280_p2 = por %p6279_p0, %p6278_p12 }
  0xc3   : > { %p6276_p7 = pneg %p6275_p9 }
  0xc4   : > { %p6282_p6 = por %p6281_p5, %p6280_p2 }
  0xc6   : > { %p6283_p3 = pnand %p6282_p6, %p6276_p7 }
  0xc8   : > { %6286 = shalt.err (!%p6283_p3)
}
  0xc9   : > { %s6287_s12 = scalar_lea.vmem %s418_s3, 128  ;;  %s6362_s18 = smov [#allocation12]  }
  0xca   : > { %p6288_p1 = scmp.ne.s32.totalorder %s418_s3, %s6287_s12  ;;  %s6292_s26 = sshll.u32 %s6362_s18, 4  ;;  %s6293_s26 = int_to_ptr.vmem [resolvable:$false] %s6292_s26 }
  0xcb   : > { %s6294_s11 = scalar_lea.vmem %s6293_s26, 256  ;;  %p6295_p4 = scmp.lt.s32.totalorder %s418_s3, %s6293_s26 }
  0xcc   : > { %p6290_p11 = pnand %p6288_p1, %p6477_p10  ;;  %p6296_p9 = scmp.lt.s32.totalorder %s6294_s11, %s6287_s12 }
  0xce   : > { %p6291_p8 = pneg %p6290_p11  ;;  %p6297_p13 = por %p6296_p9, %p6295_p4 }
  0xd0   : > { %p6298_p0 = pnand %p6297_p13, %p6291_p8 }
  0xd2   : > { %6301 = shalt.err (!%p6298_p0)
}
  0xd3   : > { %p7985_p12 = scmp.ne.s32.totalorder %s7973_s16, 0  ;;  %s7986_s30 = scalar_lea.sflag [#allocation11], %s6457_s17 }
  0xd4   : > { %p7987_p7 = scmp.ne.s32.totalorder %s7977_s29, 0 }
  0xd5   : > { %5795 = dma.hbm_to_vmem [thread:$0]  (!%p7985_p12), %s6656_s21, 128, %s418_s3, %s7986_s30  }
  0xd6   : > { %426 = sbr.rel (%p7987_p7) target bundleno = 4584 (0x11e8), region = 52  ;;  %s6710_s27 = sand.u32 (!%p7987_p7), 1, %s6340_s28  }
  0xd7   : > { %s4288_s24 = sshll.u32 (!%p7987_p7), %s6710_s27, 6  ;;  %s429_s8 = scalar_lea.sflag (!%p7987_p7), [#allocation3], %s6710_s27 }
  0xd8   : > { %s6714_s15 = scalar_lea.vmem (!%p7987_p7), [#allocation2], %s4288_s24  ;;  %p7988_p10 = scmp.ne.s32.totalorder (!%p7987_p7), %s7972_s14, 0 }
  0xdd   : > { %6319 = dma.done.wait (%p7988_p10), %s429_s8, 1024  }
  0xde   : > { %6321 = vsyncadd (%p7988_p10), %s429_s8, 4294966272  ;;  %s437_s29 = sand.u32 1, %s6428_s9   ;;  %s4289_s16 = sshll.u32 %s6710_s27, 10 }
  0xdf   : > { %s438_s17 = scalar_lea.sflag [#allocation5], %s437_s29  ;;  %s6722_s21 = scalar_lea.vmem [#allocation4], %s4289_s16 }
  0xe0   : > { %6323 = dma.done.wait (%p7988_p10), %s438_s17, 32768  }
  0xe1   : > { %6325 = vsyncadd (%p7988_p10), %s438_s17, 4294934528  ;;  %s4291_s3 = sshll.u32 %s6710_s27, 3  ;;  %s6729_s20 = scalar_lea.vmem [#allocation6], %s4289_s16 }
  0xe2   : > { %s456_s23 = scalar_lea.sflag [#allocation8], %s437_s29  ;;  %s6733_s25 = scalar_lea.vmem [#allocation7], %s4291_s3 }
  0xe3   : > { %6327 = dma.done.wait (%p7988_p10), %s456_s23, 144  }
  0xe4   : > { %6329 = vsyncadd (%p7988_p10), %s456_s23, 4294967152  ;;  %s467_s6 = scalar_lea.vmem [#allocation9], %s6710_s27  ;;  %s473_s22 = scalar_lea.sflag [#allocation11], %s437_s29 }
  0xe5   : > { %s475_s19 = scalar_lea.vmem [#allocation10], %s6710_s27 }
  0xe6   : > { %6331 = dma.done.wait (%p7988_p10), %s473_s22, 144  }
  0xe7   : > { %6333 = vsyncadd (%p7988_p10), %s473_s22, 4294967152  ;;  %v6363_v0 = vmov 0.0   ;;  %v563_v1 = vld [vmem:[%s6722_s21 + $0x8] sm:$0xff]  ;;  %v565_v3 = vld [vmem:[%s6722_s21 + $0x18] sm:$0xff]  ;;  %s484_s14 = scalar_lea.vmem [#allocation12], %s4291_s3  ;;  %vm4056_vm0 = vcmask 64512  }
  0xe8   : > { %776 = vmatprep.mubr.f32.mxu0 %v6363_v0  ;;  %889 = vmatprep.mubr.f32.mxu1 %v6363_v0  ;;  %v567_v2 = vld [vmem:[%s6722_s21 + $0x28] sm:$0xff]  ;;  %v569_v5 = vld [vmem:[%s6722_s21 + $0x38] sm:$0xff]  ;;  %v562_v6 = vld [vmem:[%s6722_s21] sm:$0xff]  ;;  %p547_p13 = scmp.lt.s32.totalorder %s6428_s9, 2  ;;  %s7989_s1 = sld [smem:[#allocation22_spill]]  ;;  %vm4069_vm1 = vcmask 7168  }
  0xe9   : > { %v4480_v4 = vpack.c.bf16 %v567_v2, %v563_v1  ;;  %v566_v7 = vld [vmem:[%s6722_s21 + $0x20] sm:$0xff]  ;;  %v4512_v8 = vpack.c.bf16 %v569_v5, %v565_v3  ;;  %v564_v10 = vld [vmem:[%s6722_s21 + $0x10] sm:$0xff]  ;;  %v571_v12 = vld [vmem:[%s6722_s21 + $0x48] sm:$0xff]  ;;  %s7990_s30 = sld [smem:[#allocation23_spill]] }
  0xea   : > { %v4482_v9 = vpack.c.bf16 %v566_v7, %v562_v6  ;;  %v568_v11 = vld [vmem:[%s6722_s21 + $0x30] sm:$0xff]  ;;  %v575_v14 = vld [vmem:[%s6722_s21 + $0x68] sm:$0xff]  ;;  %v573_v15 = vld [vmem:[%s6722_s21 + $0x58] sm:$0xff]  ;;  %s7997_s9 = smov (!%p547_p13, %s6428_s9), 2 }
  0xeb   : > { %4481 = vmatprep.subr.bf16.mxu0 %v4480_v4  ;;  %v4514_v13 = vpack.c.bf16 %v568_v11, %v564_v10  ;;  %v577_v16 = vld [vmem:[%s6722_s21 + $0x78] sm:$0xff]  ;;  %4513 = vmatprep.subr.bf16.mxu1 %v4512_v8  ;;  %v4484_v17 = vpack.c.bf16 %v575_v14, %v571_v12  ;;  %v570_v19 = vld [vmem:[%s6722_s21 + $0x40] sm:$0xff]  ;;  %v572_v21 = vld [vmem:[%s6722_s21 + $0x50] sm:$0xff]  ;;  %s4293_s18 = sshll.u32 %s7997_s9, 3 }
  0xec   : > { %4483 = vmatpush1.bf16.msra.mxu0 %v4482_v9  ;;  %v4516_v18 = vpack.c.bf16 %v577_v16, %v573_v15  ;;  %v574_v20 = vld [vmem:[%s6722_s21 + $0x60] sm:$0xff]  ;;  %v576_v23 = vld [vmem:[%s6722_s21 + $0x70] sm:$0xff]  ;;  %v579_v24 = vld [vmem:[%s6722_s21 + $0x88] sm:$0xff] }
  0xed   : > { %4515 = vmatpush1.bf16.msra.mxu1 %v4514_v13  ;;  %v4486_v22 = vpack.c.bf16 %v574_v20, %v570_v19  ;;  %v583_v25 = vld [vmem:[%s6722_s21 + $0xa8] sm:$0xff]  ;;  %4485 = vmatprep.subr.bf16.mxu0 %v4484_v17  ;;  %v4518_v26 = vpack.c.bf16 %v576_v23, %v572_v21  ;;  %v581_v28 = vld [vmem:[%s6722_s21 + $0x98] sm:$0xff]  ;;  %v578_v30 = vld [vmem:[%s6722_s21 + $0x80] sm:$0xff] }
  0xee   : > { %4517 = vmatprep.subr.bf16.mxu1 %v4516_v18  ;;  %v4488_v27 = vpack.c.bf16 %v583_v25, %v579_v24  ;;  %v585_v29 = vld [vmem:[%s6722_s21 + $0xb8] sm:$0xff]  ;;  %v582_v32 = vld [vmem:[%s6722_s21 + $0xa0] sm:$0xff]  ;;  %v580_v33 = vld [vmem:[%s6722_s21 + $0x90] sm:$0xff]  ;;  %s549_s12 = scalar_lea.vmem %s7989_s1, %s7997_s9 }
  0xef   : > { %v4520_v31 = vpack.c.bf16 %v585_v29, %v581_v28  ;;  %v584_v34 = vld [vmem:[%s6722_s21 + $0xb0] sm:$0xff]  ;;  %v4490_v35 = vpack.c.bf16 %v582_v32, %v578_v30  ;;  %v587_v36 = vld [vmem:[%s6722_s21 + $0xc8] sm:$0xff]  ;;  %v589_v38 = vld [vmem:[%s6722_s21 + $0xd8] sm:$0xff]  ;;  %s553_s27 = scalar_lea.vmem %s7990_s30, %s4293_s18 }
  0xf0   : > { %4487 = vmatpush1.bf16.msra.mxu0 %v4486_v22  ;;  %v591_v37 = vld [vmem:[%s6722_s21 + $0xe8] sm:$0xff]  ;;  %v4522_v39 = vpack.c.bf16 %v584_v34, %v580_v33  ;;  %v593_v41 = vld [vmem:[%s6722_s21 + $0xf8] sm:$0xff]  ;;  %v586_v42 = vld [vmem:[%s6722_s21 + $0xc0] sm:$0xff] }
  0xf1   : > { %4519 = vmatpush1.bf16.msra.mxu1 %v4518_v26  ;;  %4489 = vmatprep.subr.bf16.mxu0 %v4488_v27  ;;  %v4492_v40 = vpack.c.bf16 %v591_v37, %v587_v36  ;;  %v590_v43 = vld [vmem:[%s6722_s21 + $0xe0] sm:$0xff]  ;;  %v4524_v44 = vpack.c.bf16 %v593_v41, %v589_v38  ;;  %v588_v45 = vld [vmem:[%s6722_s21 + $0xd0] sm:$0xff]  ;;  %v595_v47 = vld [vmem:[%s6722_s21 + $0x108] sm:$0xff] }
  0xf2   : > { %4521 = vmatprep.subr.bf16.mxu1 %v4520_v31  ;;  %v592_v46 = vld [vmem:[%s6722_s21 + $0xf0] sm:$0xff]  ;;  %v599_v48 = vld [vmem:[%s6722_s21 + $0x128] sm:$0xff]  ;;  %v597_v49 = vld [vmem:[%s6722_s21 + $0x118] sm:$0xff]  ;;  %v4494_v51 = vpack.c.bf16 %v590_v43, %v586_v42 }
  0xf3   : > { %v601_v50 = vld [vmem:[%s6722_s21 + $0x138] sm:$0xff]  ;;  %v4526_v52 = vpack.c.bf16 %v592_v46, %v588_v45  ;;  %v4496_v53 = vpack.c.bf16 %v599_v48, %v595_v47  ;;  %v594_v54 = vld [vmem:[%s6722_s21 + $0x100] sm:$0xff]  ;;  %v596_v56 = vld [vmem:[%s6722_s21 + $0x110] sm:$0xff] }
  0xf4   : > { %4491 = vmatpush1.bf16.msra.mxu0 %v4490_v35  ;;  %v598_v55 = vld [vmem:[%s6722_s21 + $0x120] sm:$0xff]  ;;  %v4528_v57 = vpack.c.bf16 %v601_v50, %v597_v49  ;;  %v600_v58 = vld [vmem:[%s6722_s21 + $0x130] sm:$0xff]  ;;  %v603_v59 = vld [vmem:[%s6722_s21 + $0x148] sm:$0xff] }
  0xf5   : > { %4523 = vmatpush1.bf16.msra.mxu1 %v4522_v39  ;;  %4493 = vmatprep.subr.bf16.mxu0 %v4492_v40  ;;  %v607_v60 = vld [vmem:[%s6722_s21 + $0x168] sm:$0xff]  ;;  %v605_v61 = vld [vmem:[%s6722_s21 + $0x158] sm:$0xff]  ;;  %v4498_v63 = vpack.c.bf16 %v598_v55, %v594_v54  ;;  %v4530_v1 = vpack.c.bf16 %v600_v58, %v596_v56  ;;  %v602_v3 = vld [vmem:[%s6722_s21 + $0x140] sm:$0xff] }
  0xf6   : > { %4525 = vmatprep.subr.bf16.mxu1 %v4524_v44  ;;  %v609_v62 = vld [vmem:[%s6722_s21 + $0x178] sm:$0xff]  ;;  %v4500_v2 = vpack.c.bf16 %v607_v60, %v603_v59  ;;  %v606_v4 = vld [vmem:[%s6722_s21 + $0x160] sm:$0xff]  ;;  %v604_v5 = vld [vmem:[%s6722_s21 + $0x150] sm:$0xff] }
  0xf7   : > { %v4532_v6 = vpack.c.bf16 %v609_v62, %v605_v61  ;;  %v608_v7 = vld [vmem:[%s6722_s21 + $0x170] sm:$0xff]  ;;  %v611_v8 = vld [vmem:[%s6722_s21 + $0x188] sm:$0xff]  ;;  %v613_v10 = vld [vmem:[%s6722_s21 + $0x198] sm:$0xff]  ;;  %v4502_v12 = vpack.c.bf16 %v606_v4, %v602_v3 }
  0xf8   : > { %4495 = vmatpush1.bf16.msra.mxu0 %v4494_v51  ;;  %v615_v9 = vld [vmem:[%s6722_s21 + $0x1a8] sm:$0xff]  ;;  %v617_v11 = vld [vmem:[%s6722_s21 + $0x1b8] sm:$0xff]  ;;  %v4534_v13 = vpack.c.bf16 %v608_v7, %v604_v5  ;;  %v610_v15 = vld [vmem:[%s6722_s21 + $0x180] sm:$0xff] }
  0xf9   : > { %4527 = vmatpush1.bf16.msra.mxu1 %v4526_v52  ;;  %4497 = vmatprep.subr.bf16.mxu0 %v4496_v53  ;;  %v4504_v14 = vpack.c.bf16 %v615_v9, %v611_v8  ;;  %v614_v16 = vld [vmem:[%s6722_s21 + $0x1a0] sm:$0xff]  ;;  %v612_v17 = vld [vmem:[%s6722_s21 + $0x190] sm:$0xff]  ;;  %v4536_v18 = vpack.c.bf16 %v617_v11, %v613_v10  ;;  %v619_v20 = vld [vmem:[%s6722_s21 + $0x1c8] sm:$0xff] }
  0xfa   : > { %4529 = vmatprep.subr.bf16.mxu1 %v4528_v57  ;;  %v616_v19 = vld [vmem:[%s6722_s21 + $0x1b0] sm:$0xff]  ;;  %v623_v21 = vld [vmem:[%s6722_s21 + $0x1e8] sm:$0xff]  ;;  %v621_v22 = vld [vmem:[%s6722_s21 + $0x1d8] sm:$0xff]  ;;  %v4506_v24 = vpack.c.bf16 %v614_v16, %v610_v15 }
  0xfb   : > { %v625_v23 = vld [vmem:[%s6722_s21 + $0x1f8] sm:$0xff]  ;;  %v4538_v25 = vpack.c.bf16 %v616_v19, %v612_v17  ;;  %v4508_v26 = vpack.c.bf16 %v623_v21, %v619_v20  ;;  %v618_v27 = vld [vmem:[%s6722_s21 + $0x1c0] sm:$0xff]  ;;  %v620_v29 = vld [vmem:[%s6722_s21 + $0x1d0] sm:$0xff] }
  0xfc   : > { %4499 = vmatpush1.bf16.msra.mxu0 %v4498_v63  ;;  %v622_v28 = vld [vmem:[%s6722_s21 + $0x1e0] sm:$0xff]  ;;  %v4540_v30 = vpack.c.bf16 %v625_v23, %v621_v22  ;;  %v624_v31 = vld [vmem:[%s6722_s21 + $0x1f0] sm:$0xff]  ;;  %v627_v32 = vld [vmem:[%s6729_s20 + $0x8] sm:$0xff] }
  0xfd   : > { %4531 = vmatpush1.bf16.msra.mxu1 %v4530_v1  ;;  %4501 = vmatprep.subr.bf16.mxu0 %v4500_v2  ;;  %v631_v33 = vld [vmem:[%s6729_s20 + $0x28] sm:$0xff]  ;;  %v629_v34 = vld [vmem:[%s6729_s20 + $0x18] sm:$0xff]  ;;  %v4510_v36 = vpack.c.bf16 %v622_v28, %v618_v27  ;;  %v4542_v37 = vpack.c.bf16 %v624_v31, %v620_v29  ;;  %v626_v39 = vld [vmem:[%s6729_s20] sm:$0xff] }
  0xfe   : > { %4533 = vmatprep.subr.bf16.mxu1 %v4532_v6  ;;  %v633_v35 = vld [vmem:[%s6729_s20 + $0x38] sm:$0xff]  ;;  %v6815_v38 = vpack.c.bf16 %v631_v33, %v627_v32  ;;  %v630_v40 = vld [vmem:[%s6729_s20 + $0x20] sm:$0xff]  ;;  %v628_v42 = vld [vmem:[%s6729_s20 + $0x10] sm:$0xff] }
  0xff   : > { %v6819_v41 = vpack.c.bf16 %v633_v35, %v629_v34  ;;  %v632_v43 = vld [vmem:[%s6729_s20 + $0x30] sm:$0xff]  ;;  %v635_v44 = vld [vmem:[%s6729_s20 + $0x48] sm:$0xff]  ;;  %v554_v46 = vld [vmem:[%s6714_s15] sm:$0xff]  ;;  %v6826_v47 = vpack.c.bf16 %v630_v40, %v626_v39 }
 0x100   : > { %4503 = vmatpush1.bf16.msra.mxu0 %v4502_v12  ;;  %v639_v45 = vld [vmem:[%s6729_s20 + $0x68] sm:$0xff]  ;;  %v637_v48 = vld [vmem:[%s6729_s20 + $0x58] sm:$0xff]  ;;  %v6831_v50 = vpack.c.bf16 %v632_v43, %v628_v42  ;;  %v634_v51 = vld [vmem:[%s6729_s20 + $0x40] sm:$0xff] }
 0x101   : > { %4535 = vmatpush1.bf16.msra.mxu1 %v4534_v13  ;;  %4505 = vmatprep.subr.bf16.mxu0 %v4504_v14  ;;  %v641_v49 = vld [vmem:[%s6729_s20 + $0x78] sm:$0xff]  ;;  %v638_v52 = vld [vmem:[%s6729_s20 + $0x60] sm:$0xff]  ;;  %v6836_v53 = vpack.c.bf16 %v639_v45, %v635_v44  ;;  %v636_v54 = vld [vmem:[%s6729_s20 + $0x50] sm:$0xff] }
 0x102   : > { %4537 = vmatprep.subr.bf16.mxu1 %v4536_v18  ;;  %v640_v55 = vld [vmem:[%s6729_s20 + $0x70] sm:$0xff]  ;;  %v6840_v56 = vpack.c.bf16 %v641_v49, %v637_v48  ;;  %v643_v57 = vld [vmem:[%s6729_s20 + $0x88] sm:$0xff]  ;;  %v6846_v60 = vpack.c.bf16 %v638_v52, %v634_v51  ;;  %v645_v61 = vld [vmem:[%s6729_s20 + $0x98] sm:$0xff] }
 0x103   : > { %v647_v58 = vld [vmem:[%s6729_s20 + $0xa8] sm:$0xff]  ;;  %v649_v62 = vld [vmem:[%s6729_s20 + $0xb8] sm:$0xff]  ;;  %v6852_v63 = vpack.c.bf16 %v640_v55, %v636_v54  ;;  %v642_v1 = vld [vmem:[%s6729_s20 + $0x80] sm:$0xff] }
 0x104   : > { %4507 = vmatpush1.bf16.msra.mxu0 %v4506_v24  ;;  %v555_v59 = vld [vmem:[%s6714_s15 + $0x8] sm:$0xff]  ;;  %v646_v2 = vld [vmem:[%s6729_s20 + $0xa0] sm:$0xff]  ;;  %v6858_v3 = vpack.c.bf16 %v647_v58, %v643_v57  ;;  %v644_v4 = vld [vmem:[%s6729_s20 + $0x90] sm:$0xff]  ;;  %v6863_v6 = vpack.c.bf16 %v649_v62, %v645_v61 }
 0x105   : > { %4539 = vmatpush1.bf16.msra.mxu1 %v4538_v25  ;;  %4509 = vmatprep.subr.bf16.mxu0 %v4508_v26  ;;  %v648_v5 = vld [vmem:[%s6729_s20 + $0xb0] sm:$0xff]  ;;  %v651_v7 = vld [vmem:[%s6729_s20 + $0xc8] sm:$0xff]  ;;  %v6869_v10 = vpack.c.bf16 %v646_v2, %v642_v1  ;;  %v653_v11 = vld [vmem:[%s6729_s20 + $0xd8] sm:$0xff] }
 0x106   : > { %4541 = vmatprep.subr.bf16.mxu1 %v4540_v30  ;;  %v655_v8 = vld [vmem:[%s6729_s20 + $0xe8] sm:$0xff]  ;;  %v556_v9 = vld [vmem:[%s6714_s15 + $0x10] sm:$0xff]  ;;  %v657_v12 = vld [vmem:[%s6729_s20 + $0xf8] sm:$0xff]  ;;  %v6875_v13 = vpack.c.bf16 %v648_v5, %v644_v4 }
 0x107   : > { %v650_v14 = vld [vmem:[%s6729_s20 + $0xc0] sm:$0xff]  ;;  %v6881_v16 = vpack.c.bf16 %v655_v8, %v651_v7  ;;  %v652_v17 = vld [vmem:[%s6729_s20 + $0xd0] sm:$0xff]  ;;  %v6886_v19 = vpack.c.bf16 %v657_v12, %v653_v11  ;;  %v659_v20 = vld [vmem:[%s6729_s20 + $0x108] sm:$0xff] }
 0x108   : > { %4511 = vmatpush1.bf16.msra.mxu0 %v4510_v36  ;;  %v654_v15 = vld [vmem:[%s6729_s20 + $0xe0] sm:$0xff]  ;;  %v656_v18 = vld [vmem:[%s6729_s20 + $0xf0] sm:$0xff]  ;;  %v663_v21 = vld [vmem:[%s6729_s20 + $0x128] sm:$0xff] }
 0x109   : > { %4543 = vmatpush1.bf16.msra.mxu1 %v4542_v37  ;;  %4545 = vmatprep.subr.bf16.mxu0 %v6815_v38  ;;  %v557_v22 = vld [vmem:[%s6714_s15 + $0x18] sm:$0xff]  ;;  %v6892_v23 = vpack.c.bf16 %v654_v15, %v650_v14  ;;  %v6898_v26 = vpack.c.bf16 %v656_v18, %v652_v17  ;;  %v658_v27 = vld [vmem:[%s6729_s20 + $0x100] sm:$0xff]  ;;  %v6904_v29 = vpack.c.bf16 %v663_v21, %v659_v20  ;;  %v660_v30 = vld [vmem:[%s6729_s20 + $0x110] sm:$0xff] }
 0x10a   : > { %4577 = vmatprep.subr.bf16.mxu1 %v6819_v41  ;;  %v661_v24 = vld [vmem:[%s6729_s20 + $0x118] sm:$0xff]  ;;  %v662_v28 = vld [vmem:[%s6729_s20 + $0x120] sm:$0xff]  ;;  %v664_v31 = vld [vmem:[%s6729_s20 + $0x130] sm:$0xff] }
 0x10b   : > { %777 = vmatmul.mubr.f32.vlgmr.msra.gmra.mrb[0].mxu0 %v554_v46  ;;  %v665_v25 = vld [vmem:[%s6729_s20 + $0x138] sm:$0xff]  ;;  %v667_v33 = vld [vmem:[%s6729_s20 + $0x148] sm:$0xff]  ;;  %v558_v35 = vld [vmem:[%s6714_s15 + $0x20] sm:$0xff]  ;;  %v6915_v36 = vpack.c.bf16 %v662_v28, %v658_v27  ;;  %v6921_v40 = vpack.c.bf16 %v664_v31, %v660_v30  ;;  %v692_v28 = vlaneseq }
 0x10c   : > { %890 = vmatmul.mubr.f32.vlgmr.msra.gmra.mrb[0].mxu1 %v554_v46  ;;  %4547 = vmatpush1.bf16.msra.mxu0 %v6826_v47  ;;  %v6909_v32 = vpack.c.bf16 %v665_v25, %v661_v24  ;;  %v671_v34 = vld [vmem:[%s6729_s20 + $0x168] sm:$0xff]  ;;  %v669_v37 = vld [vmem:[%s6729_s20 + $0x158] sm:$0xff]  ;;  %v666_v42 = vld [vmem:[%s6729_s20 + $0x140] sm:$0xff] }
 0x10d   : > { %4579 = vmatpush1.bf16.msra.mxu1 %v6831_v50  ;;  %782 = vmatprep.mubr.f32.mxu0 %v6363_v0  ;;  %v673_v39 = vld [vmem:[%s6729_s20 + $0x178] sm:$0xff]  ;;  %v670_v43 = vld [vmem:[%s6729_s20 + $0x160] sm:$0xff]  ;;  %v6927_v44 = vpack.c.bf16 %v671_v34, %v667_v33  ;;  %v668_v45 = vld [vmem:[%s6729_s20 + $0x150] sm:$0xff]  ;;  %v7033_v30 = vshrl.u32 %v692_v28, 7 }
 0x10e   : > { %895 = vmatprep.mubr.f32.mxu1 %v6363_v0  ;;  %4549 = vmatprep.subr.bf16.mxu0 %v6836_v53  ;;  %v672_v46 = vld [vmem:[%s6729_s20 + $0x170] sm:$0xff]  ;;  %v6932_v48 = vpack.c.bf16 %v673_v39, %v669_v37  ;;  %v675_v49 = vld [vmem:[%s6729_s20 + $0x188] sm:$0xff]  ;;  %v6938_v54 = vpack.c.bf16 %v670_v43, %v666_v42  ;;  %v677_v55 = vld [vmem:[%s6729_s20 + $0x198] sm:$0xff] }
 0x10f   : > { %783 = vmatmul.mubr.f32.gmra.mrb[2].mxu0 %v555_v59  ;;  %4581 = vmatprep.subr.bf16.mxu1 %v6840_v56  ;;  %v679_v51 = vld [vmem:[%s6729_s20 + $0x1a8] sm:$0xff]  ;;  %v681_v57 = vld [vmem:[%s6729_s20 + $0x1b8] sm:$0xff]  ;;  %v6944_v58 = vpack.c.bf16 %v672_v46, %v668_v45  ;;  %v678_v61 = vld [vmem:[%s6729_s20 + $0x1a0] sm:$0xff]  ;;  %v694_v31 = vsub.s32 0, %v7033_v30  ;;  %v698_v34 = vsub.s32 1, %v7033_v30  ;;  %v706_v42 = vsub.s32 3, %v7033_v30 }
 0x110   : > { %896 = vmatmul.mubr.f32.gmra.mrb[2].mxu1 %v555_v59  ;;  %4551 = vmatpush1.bf16.msra.mxu0 %v6846_v60  ;;  %v559_v52 = vld [vmem:[%s6714_s15 + $0x28] sm:$0xff]  ;;  %v674_v59 = vld [vmem:[%s6729_s20 + $0x180] sm:$0xff]  ;;  %v6950_v62 = vpack.c.bf16 %v679_v51, %v675_v49  ;;  %v676_v1 = vld [vmem:[%s6729_s20 + $0x190] sm:$0xff]  ;;  %v6955_v4 = vpack.c.bf16 %v681_v57, %v677_v55 }
 0x111   : > { %4583 = vmatpush1.bf16.msra.mxu1 %v6852_v63  ;;  %788 = vmatprep.mubr.f32.mxu0 %v6363_v0  ;;  %v680_v2 = vld [vmem:[%s6729_s20 + $0x1b0] sm:$0xff]  ;;  %v683_v5 = vld [vmem:[%s6729_s20 + $0x1c8] sm:$0xff]  ;;  %v685_v11 = vld [vmem:[%s6729_s20 + $0x1d8] sm:$0xff] }
 0x112   : > { %901 = vmatprep.mubr.f32.mxu1 %v6363_v0  ;;  %4553 = vmatprep.subr.bf16.mxu0 %v6858_v3  ;;  %v687_v7 = vld [vmem:[%s6729_s20 + $0x1e8] sm:$0xff]  ;;  %v560_v8 = vld [vmem:[%s6714_s15 + $0x30] sm:$0xff]  ;;  %v689_v12 = vld [vmem:[%s6729_s20 + $0x1f8] sm:$0xff]  ;;  %v6967_v14 = vpack.c.bf16 %v680_v2, %v676_v1 }
 0x113   : > { %789 = vmatmul.mubr.f32.gmra.mrb[4].mxu0 %v556_v9  ;;  %4585 = vmatprep.subr.bf16.mxu1 %v6863_v6  ;;  %v682_v15 = vld [vmem:[%s6729_s20 + $0x1c0] sm:$0xff]  ;;  %v6973_v18 = vpack.c.bf16 %v687_v7, %v683_v5  ;;  %v684_v20 = vld [vmem:[%s6729_s20 + $0x1d0] sm:$0xff]  ;;  %v561_v24 = vld [vmem:[%s6714_s15 + $0x38] sm:$0xff] }
 0x114   : > { %902 = vmatmul.mubr.f32.gmra.mrb[4].mxu1 %v556_v9  ;;  %4555 = vmatpush1.bf16.msra.mxu0 %v6869_v10  ;;  %v6961_v9 = vpack.c.bf16 %v678_v61, %v674_v59  ;;  %v686_v17 = vld [vmem:[%s6729_s20 + $0x1e0] sm:$0xff]  ;;  %v688_v21 = vld [vmem:[%s6729_s20 + $0x1f0] sm:$0xff]  ;;  %v702_v59 = vsub.s32 2, %v7033_v30 }
 0x115   : > { %4587 = vmatpush1.bf16.msra.mxu1 %v6875_v13  ;;  %794 = vmatprep.mubr.f32.mxu0 %v6363_v0  ;;  %v6982_v25 = vpack.c.bf16 %v686_v17, %v682_v15  ;;  %v6986_v27 = vpack.c.bf16 %v688_v21, %v684_v20  ;;  %v690_v33 = vld [vmem:[%s6733_s25] sm:$0xf] }
 0x116   : > { %907 = vmatprep.mubr.f32.mxu1 %v6363_v0  ;;  %4557 = vmatprep.subr.bf16.mxu0 %v6881_v16  ;;  %v7044_v37 = vrot.slane %v690_v33, %v698_v34  ;;  %v7051_v57 = vrot.slane %v690_v33, %v706_v42  ;;  %v7057_v1 = vrot.slane %v690_v33, %v702_v59 }
 0x117   : > { %795 = vmatmul.mubr.f32.gmra.mrb[6].mxu0 %v557_v22  ;;  %4589 = vmatprep.subr.bf16.mxu1 %v6886_v19 }
 0x118   : > { %908 = vmatmul.mubr.f32.gmra.mrb[6].mxu1 %v557_v22  ;;  %4559 = vmatpush1.bf16.msra.mxu0 %v6892_v23  ;;  %v6978_v22 = vpack.c.bf16 %v689_v12, %v685_v11 }
 0x119   : > { %4591 = vmatpush1.bf16.msra.mxu1 %v6898_v26  ;;  %800 = vmatprep.mubr.f32.mxu0 %v6363_v0 }
 0x11a   : > { %913 = vmatprep.mubr.f32.mxu1 %v6363_v0  ;;  %4561 = vmatprep.subr.bf16.mxu0 %v6904_v29 }
 0x11b   : > { %801 = vmatmul.mubr.f32.gmra.mrb[8].mxu0 %v558_v35  ;;  %4593 = vmatprep.subr.bf16.mxu1 %v6909_v32 }
 0x11c   : > { %914 = vmatmul.mubr.f32.gmra.mrb[8].mxu1 %v558_v35  ;;  %4563 = vmatpush1.bf16.msra.mxu0 %v6915_v36  ;;  %v7040_v35 = vrot.slane %v690_v33, %v694_v31 }
 0x11d   : > { %4595 = vmatpush1.bf16.msra.mxu1 %v6921_v40  ;;  %806 = vmatprep.mubr.f32.mxu0 %v6363_v0 }
 0x11e   : > { %919 = vmatprep.mubr.f32.mxu1 %v6363_v0  ;;  %4565 = vmatprep.subr.bf16.mxu0 %v6927_v44 }
 0x11f   : > { %807 = vmatmul.mubr.f32.gmra.mrb[10].mxu0 %v559_v52  ;;  %4597 = vmatprep.subr.bf16.mxu1 %v6932_v48 }
 0x120   : > { %920 = vmatmul.mubr.f32.gmra.mrb[10].mxu1 %v559_v52  ;;  %4567 = vmatpush1.bf16.msra.mxu0 %v6938_v54 }
 0x121   : > { %4599 = vmatpush1.bf16.msra.mxu1 %v6944_v58  ;;  %812 = vmatprep.mubr.f32.mxu0 %v6363_v0 }
 0x122   : > { %925 = vmatprep.mubr.f32.mxu1 %v6363_v0  ;;  %4569 = vmatprep.subr.bf16.mxu0 %v6950_v62 }
 0x123   : > { %813 = vmatmul.mubr.f32.gmra.mrb[12].mxu0 %v560_v8  ;;  %4601 = vmatprep.subr.bf16.mxu1 %v6955_v4 }
 0x124   : > { %926 = vmatmul.mubr.f32.gmra.mrb[12].mxu1 %v560_v8  ;;  %4571 = vmatpush1.bf16.msra.mxu0 %v6961_v9 }
 0x125   : > { %4603 = vmatpush1.bf16.msra.mxu1 %v6967_v14  ;;  %818 = vmatprep.mubr.f32.mxu0 %v6363_v0 }
 0x126   : > { %931 = vmatprep.mubr.f32.mxu1 %v6363_v0  ;;  %4573 = vmatprep.subr.bf16.mxu0 %v6973_v18 }
 0x127   : > { %819 = vmatmul.mubr.f32.gmra.mrb[14].mxu0 %v561_v24  ;;  %4605 = vmatprep.subr.bf16.mxu1 %v6978_v22 }
 0x128   : > { %932 = vmatmul.mubr.f32.gmra.mrb[14].mxu1 %v561_v24  ;;  %4575 = vmatpush1.bf16.msra.mxu0 %v6982_v25 }
 0x129   : > { %4607 = vmatpush1.bf16.msra.mxu1 %v6986_v27  ;;  %1002 = vmatprep.mubr.f32.mxu0 %v6363_v0 }
 0x12a   : > { %1073 = vmatprep.mubr.f32.mxu1 %v6363_v0  ;;  %4609 = vmatprep.subr.bf16.mxu0 %v6815_v38 }
 0x12b   : > { %1003 = vmatmul.mubr.f32.vlgmr.msra.gmra.mrb[0].mxu0 %v6363_v0  ;;  %4641 = vmatprep.subr.bf16.mxu1 %v6819_v41 }
 0x12c   : > { %1074 = vmatmul.mubr.f32.vlgmr.msra.gmra.mrb[0].mxu1 %v6363_v0  ;;  %4611 = vmatpush1.bf16.msra.mxu0 %v6826_v47 }
 0x12d   : > { %4643 = vmatpush1.bf16.msra.mxu1 %v6831_v50  ;;  %4613 = vmatprep.subr.bf16.mxu0 %v6836_v53 }
 0x12e   : > { %4645 = vmatprep.subr.bf16.mxu1 %v6840_v56  ;;  %1172 = vmatprep.mubr.f32.mxu0 %v6363_v0 }
 0x12f   : > { %1243 = vmatprep.mubr.f32.mxu1 %v6363_v0 }
 0x130   : > { %4615 = vmatpush1.bf16.msra.mxu0 %v6846_v60 }
 0x131   : > { %4647 = vmatpush1.bf16.msra.mxu1 %v6852_v63  ;;  %4617 = vmatprep.subr.bf16.mxu0 %v6858_v3 }
 0x132   : > { %4649 = vmatprep.subr.bf16.mxu1 %v6863_v6 }
 0x134   : > { %4619 = vmatpush1.bf16.msra.mxu0 %v6869_v10 }
 0x135   : > { %4651 = vmatpush1.bf16.msra.mxu1 %v6875_v13  ;;  %4621 = vmatprep.subr.bf16.mxu0 %v6881_v16 }
 0x136   : > { %4653 = vmatprep.subr.bf16.mxu1 %v6886_v19 }
 0x138   : > { %4623 = vmatpush1.bf16.msra.mxu0 %v6892_v23 }
 0x139   : > { %4655 = vmatpush1.bf16.msra.mxu1 %v6898_v26  ;;  %4625 = vmatprep.subr.bf16.mxu0 %v6904_v29 }
 0x13a   : > { %4657 = vmatprep.subr.bf16.mxu1 %v6909_v32 }
 0x13c   : > { %4627 = vmatpush1.bf16.msra.mxu0 %v6915_v36 }
 0x13d   : > { %4659 = vmatpush1.bf16.msra.mxu1 %v6921_v40  ;;  %4629 = vmatprep.subr.bf16.mxu0 %v6927_v44 }
 0x13e   : > { %4661 = vmatprep.subr.bf16.mxu1 %v6932_v48 }
 0x140   : > { %4631 = vmatpush1.bf16.msra.mxu0 %v6938_v54 }
 0x141   : > { %4663 = vmatpush1.bf16.msra.mxu1 %v6944_v58  ;;  %4633 = vmatprep.subr.bf16.mxu0 %v6950_v62 }
 0x142   : > { %4665 = vmatprep.subr.bf16.mxu1 %v6955_v4 }
 0x144   : > { %4635 = vmatpush1.bf16.msra.mxu0 %v6961_v9 }
 0x145   : > { %4667 = vmatpush1.bf16.msra.mxu1 %v6967_v14  ;;  %4637 = vmatprep.subr.bf16.mxu0 %v6973_v18 }
 0x146   : > { %4669 = vmatprep.subr.bf16.mxu1 %v6978_v22 }
 0x148   : > { %4639 = vmatpush1.bf16.msra.mxu0 %v6982_v25 }
 0x149   : > { %4671 = vmatpush1.bf16.msra.mxu1 %v6986_v27  ;;  %4673 = vmatprep.subr.bf16.mxu0 %v6815_v38 }
 0x14a   : > { %4705 = vmatprep.subr.bf16.mxu1 %v6819_v41 }
 0x1fe   : > { %v1004_v39 = vpop.f32.mrb[0].mxu0 }
 0x1ff   : > { %v5632_v43 = vadd.f32 %v1004_v39, %v7040_v35  ;;  %v1075_v45 = vpop.f32.mrb[0].mxu1  ;;  %v1006_v46 = vpop.f32.mrb[1].mxu0 }
 0x200   : > { %v5633_v49 = vadd.f32 %v1006_v46, %v7044_v37  ;;  %v1077_v51 = vpop.f32.mrb[1].mxu1  ;;  %v5648_v5 = vadd.f32 %v1075_v45, %v7057_v1 }
 0x201   : > { %v4294_v52 = vmul.f32 -1.442695, %v5632_v43  ;;  %v5649_v61 = vadd.f32 %v1077_v51, %v7051_v57 }
 0x202   : > { %v4295_v55 = vmul.f32 -1.442695, %v5633_v49 }
 0x203   : > { %5836 = vpow2.f32 %v4294_v52  ;;  %v4296_v2 = vmul.f32 -1.442695, %v5649_v61 }
 0x204   : > { %5838 = vpow2.f32 %v4295_v55 }
 0x205   : > { %5840 = vpow2.f32 %v4296_v2 }
 0x206   : > { %5842 = vtanh.f32 %v5648_v5 }
 0x20d   : > { %v5837_v7 = vpop.eup %5836 }
 0x20e   : > { %v5839_v8 = vpop.eup %5838  ;;  %v1087_v11 = vadd.f32 1.0, %v5837_v7 }
 0x20f   : > { %v1093_v12 = vadd.f32 1.0, %v5839_v8  ;;  %v5841_v15 = vpop.eup %5840 }
 0x210   : > { %5844 = vrcp.f32 %v1087_v11  ;;  %v5843_v17 = vpop.eup %5842  ;;  %v1100_v28 = vadd.f32 1.0, %v5841_v15 }
 0x211   : > { %5846 = vrcp.f32 %v1093_v12 }
 0x212   : > { %5848 = vrcp.f32 %v1100_v28 }
 0x21a   : > { %v5845_v20 = vpop.eup %5844 }
 0x21b   : > { %v5847_v21 = vpop.eup %5846  ;;  %v1104_v24 = vmul.f32 %v5845_v20, %v5843_v17 }
 0x21c   : > { %v1103_v39 = vmul.f32 0.0, %v5847_v21  ;;  %v5849_v43 = vpop.eup %5848 }
 0x21e   : > { %v7060_v33 = vadd.f32 %v1104_v24, %v1103_v39 }
 0x220   : > { %5850 = vtanh.f32 %v7060_v33 }
 0x22a   : > { %v5851_v45 = vpop.eup %5850 }
 0x22b   : > { %v7063_v46 = vmul.f32 %v5851_v45, %v5849_v43 }
 0x22d   : > { %1173 = vmatmul.mubr.f32.vlgmr.msra.gmra.mrb[2].mxu0 %v7063_v46  ;;  %1244 = vmatmul.mubr.f32.vlgmr.msra.gmra.mrb[2].mxu1 %v7063_v46 }
 0x22e   : > { %4675 = vmatpush1.bf16.msra.mxu0 %v6826_v47  ;;  %4707 = vmatpush1.bf16.msra.mxu1 %v6831_v50 }
 0x22f   : > { %4677 = vmatprep.subr.bf16.mxu0 %v6836_v53  ;;  %4709 = vmatprep.subr.bf16.mxu1 %v6840_v56 }
 0x230   : > { %1342 = vmatprep.mubr.f32.mxu0 %v6363_v0  ;;  %1413 = vmatprep.mubr.f32.mxu1 %v6363_v0 }
 0x232   : > { %4679 = vmatpush1.bf16.msra.mxu0 %v6846_v60  ;;  %4711 = vmatpush1.bf16.msra.mxu1 %v6852_v63 }
 0x233   : > { %4681 = vmatprep.subr.bf16.mxu0 %v6858_v3  ;;  %4713 = vmatprep.subr.bf16.mxu1 %v6863_v6 }
 0x236   : > { %4683 = vmatpush1.bf16.msra.mxu0 %v6869_v10  ;;  %4715 = vmatpush1.bf16.msra.mxu1 %v6875_v13 }
 0x237   : > { %4685 = vmatprep.subr.bf16.mxu0 %v6881_v16  ;;  %4717 = vmatprep.subr.bf16.mxu1 %v6886_v19 }
 0x23a   : > { %4687 = vmatpush1.bf16.msra.mxu0 %v6892_v23  ;;  %4719 = vmatpush1.bf16.msra.mxu1 %v6898_v26 }
 0x23b   : > { %4689 = vmatprep.subr.bf16.mxu0 %v6904_v29  ;;  %4721 = vmatprep.subr.bf16.mxu1 %v6909_v32 }
 0x23e   : > { %4691 = vmatpush1.bf16.msra.mxu0 %v6915_v36  ;;  %4723 = vmatpush1.bf16.msra.mxu1 %v6921_v40 }
 0x23f   : > { %4693 = vmatprep.subr.bf16.mxu0 %v6927_v44  ;;  %4725 = vmatprep.subr.bf16.mxu1 %v6932_v48 }
 0x242   : > { %4695 = vmatpush1.bf16.msra.mxu0 %v6938_v54  ;;  %4727 = vmatpush1.bf16.msra.mxu1 %v6944_v58 }
 0x243   : > { %4697 = vmatprep.subr.bf16.mxu0 %v6950_v62  ;;  %4729 = vmatprep.subr.bf16.mxu1 %v6955_v4 }
 0x246   : > { %4699 = vmatpush1.bf16.msra.mxu0 %v6961_v9  ;;  %4731 = vmatpush1.bf16.msra.mxu1 %v6967_v14 }
 0x247   : > { %4701 = vmatprep.subr.bf16.mxu0 %v6973_v18  ;;  %4733 = vmatprep.subr.bf16.mxu1 %v6978_v22 }
 0x24a   : > { %4703 = vmatpush1.bf16.msra.mxu0 %v6982_v25  ;;  %4735 = vmatpush1.bf16.msra.mxu1 %v6986_v27 }
 0x24b   : > { %4737 = vmatprep.subr.bf16.mxu0 %v6815_v38  ;;  %4769 = vmatprep.subr.bf16.mxu1 %v6819_v41 }
 0x300   : > { %v1174_v49 = vpop.f32.mrb[2].mxu0  ;;  %v1245_v51 = vpop.f32.mrb[2].mxu1 }
 0x301   : > { %v5634_v52 = vadd.f32 %v1174_v49, %v7040_v35  ;;  %v1176_v55 = vpop.f32.mrb[3].mxu0  ;;  %v1247_v61 = vpop.f32.mrb[3].mxu1  ;;  %v5650_v12 = vadd.f32 %v1245_v51, %v7057_v1 }
 0x302   : > { %v5635_v2 = vadd.f32 %v1176_v55, %v7044_v37  ;;  %v5651_v8 = vadd.f32 %v1247_v61, %v7051_v57 }
 0x303   : > { %v4297_v5 = vmul.f32 -1.442695, %v5634_v52 }
 0x304   : > { %v4298_v7 = vmul.f32 -1.442695, %v5635_v2  ;;  %v4299_v11 = vmul.f32 -1.442695, %v5651_v8 }
 0x305   : > { %5852 = vpow2.f32 %v4297_v5 }
 0x306   : > { %5854 = vpow2.f32 %v4298_v7 }
 0x307   : > { %5856 = vpow2.f32 %v4299_v11 }
 0x308   : > { %5858 = vtanh.f32 %v5650_v12 }
 0x30f   : > { %v5853_v15 = vpop.eup %5852 }
 0x310   : > { %v5855_v17 = vpop.eup %5854  ;;  %v1257_v20 = vadd.f32 1.0, %v5853_v15 }
 0x311   : > { %v1263_v21 = vadd.f32 1.0, %v5855_v17  ;;  %v5857_v24 = vpop.eup %5856 }
 0x312   : > { %5860 = vrcp.f32 %v1257_v20  ;;  %v5859_v28 = vpop.eup %5858  ;;  %v1270_v49 = vadd.f32 1.0, %v5857_v24 }
 0x313   : > { %5862 = vrcp.f32 %v1263_v21 }
 0x314   : > { %5864 = vrcp.f32 %v1270_v49 }
 0x31c   : > { %v5861_v39 = vpop.eup %5860 }
 0x31d   : > { %v5863_v43 = vpop.eup %5862  ;;  %v1274_v45 = vmul.f32 %v5861_v39, %v5859_v28 }
 0x31e   : > { %v1273_v52 = vmul.f32 %v5863_v43, %v7060_v33  ;;  %v5865_v51 = vpop.eup %5864 }
 0x320   : > { %v7106_v55 = vadd.f32 %v1274_v45, %v1273_v52 }
 0x322   : > { %5866 = vtanh.f32 %v7106_v55 }
 0x32c   : > { %v5867_v61 = vpop.eup %5866 }
 0x32d   : > { %v7109_v2 = vmul.f32 %v5867_v61, %v5865_v51 }
 0x32f   : > { %1343 = vmatmul.mubr.f32.vlgmr.msra.gmra.mrb[4].mxu0 %v7109_v2  ;;  %1414 = vmatmul.mubr.f32.vlgmr.msra.gmra.mrb[4].mxu1 %v7109_v2 }
 0x330   : > { %4739 = vmatpush1.bf16.msra.mxu0 %v6826_v47  ;;  %4771 = vmatpush1.bf16.msra.mxu1 %v6831_v50 }
 0x331   : > { %4741 = vmatprep.subr.bf16.mxu0 %v6836_v53  ;;  %4773 = vmatprep.subr.bf16.mxu1 %v6840_v56 }
 0x332   : > { %1512 = vmatprep.mubr.f32.mxu0 %v6363_v0  ;;  %1583 = vmatprep.mubr.f32.mxu1 %v6363_v0 }
 0x334   : > { %4743 = vmatpush1.bf16.msra.mxu0 %v6846_v60  ;;  %4775 = vmatpush1.bf16.msra.mxu1 %v6852_v63 }
 0x335   : > { %4745 = vmatprep.subr.bf16.mxu0 %v6858_v3  ;;  %4777 = vmatprep.subr.bf16.mxu1 %v6863_v6 }
 0x338   : > { %4747 = vmatpush1.bf16.msra.mxu0 %v6869_v10  ;;  %4779 = vmatpush1.bf16.msra.mxu1 %v6875_v13 }
 0x339   : > { %4749 = vmatprep.subr.bf16.mxu0 %v6881_v16  ;;  %4781 = vmatprep.subr.bf16.mxu1 %v6886_v19 }
 0x33c   : > { %4751 = vmatpush1.bf16.msra.mxu0 %v6892_v23  ;;  %4783 = vmatpush1.bf16.msra.mxu1 %v6898_v26 }
 0x33d   : > { %4753 = vmatprep.subr.bf16.mxu0 %v6904_v29  ;;  %4785 = vmatprep.subr.bf16.mxu1 %v6909_v32 }
 0x340   : > { %4755 = vmatpush1.bf16.msra.mxu0 %v6915_v36  ;;  %4787 = vmatpush1.bf16.msra.mxu1 %v6921_v40 }
 0x341   : > { %4757 = vmatprep.subr.bf16.mxu0 %v6927_v44  ;;  %4789 = vmatprep.subr.bf16.mxu1 %v6932_v48 }
 0x344   : > { %4759 = vmatpush1.bf16.msra.mxu0 %v6938_v54  ;;  %4791 = vmatpush1.bf16.msra.mxu1 %v6944_v58 }
 0x345   : > { %4761 = vmatprep.subr.bf16.mxu0 %v6950_v62  ;;  %4793 = vmatprep.subr.bf16.mxu1 %v6955_v4 }
 0x348   : > { %4763 = vmatpush1.bf16.msra.mxu0 %v6961_v9  ;;  %4795 = vmatpush1.bf16.msra.mxu1 %v6967_v14 }
 0x349   : > { %4765 = vmatprep.subr.bf16.mxu0 %v6973_v18  ;;  %4797 = vmatprep.subr.bf16.mxu1 %v6978_v22 }
 0x34c   : > { %4767 = vmatpush1.bf16.msra.mxu0 %v6982_v25  ;;  %4799 = vmatpush1.bf16.msra.mxu1 %v6986_v27 }
 0x34d   : > { %4801 = vmatprep.subr.bf16.mxu0 %v6815_v38  ;;  %4833 = vmatprep.subr.bf16.mxu1 %v6819_v41 }
 0x402   : > { %v1344_v33 = vpop.f32.mrb[4].mxu0  ;;  %v1415_v5 = vpop.f32.mrb[4].mxu1 }
 0x403   : > { %v5636_v7 = vadd.f32 %v1344_v33, %v7040_v35  ;;  %v1346_v8 = vpop.f32.mrb[5].mxu0  ;;  %v1417_v11 = vpop.f32.mrb[5].mxu1  ;;  %v5652_v24 = vadd.f32 %v1415_v5, %v7057_v1 }
 0x404   : > { %v5637_v12 = vadd.f32 %v1346_v8, %v7044_v37  ;;  %v5653_v20 = vadd.f32 %v1417_v11, %v7051_v57 }
 0x405   : > { %v4300_v15 = vmul.f32 -1.442695, %v5636_v7 }
 0x406   : > { %v4301_v17 = vmul.f32 -1.442695, %v5637_v12  ;;  %v4302_v21 = vmul.f32 -1.442695, %v5653_v20 }
 0x407   : > { %5868 = vpow2.f32 %v4300_v15 }
 0x408   : > { %5870 = vpow2.f32 %v4301_v17 }
 0x409   : > { %5872 = vpow2.f32 %v4302_v21 }
 0x40a   : > { %5874 = vtanh.f32 %v5652_v24 }
 0x411   : > { %v5869_v28 = vpop.eup %5868 }
 0x412   : > { %v5871_v39 = vpop.eup %5870  ;;  %v1427_v43 = vadd.f32 1.0, %v5869_v28 }
 0x413   : > { %v1433_v45 = vadd.f32 1.0, %v5871_v39  ;;  %v5873_v49 = vpop.eup %5872 }
 0x414   : > { %5876 = vrcp.f32 %v1427_v43  ;;  %v5875_v52 = vpop.eup %5874  ;;  %v1440_v7 = vadd.f32 1.0, %v5873_v49 }
 0x415   : > { %5878 = vrcp.f32 %v1433_v45 }
 0x416   : > { %5880 = vrcp.f32 %v1440_v7 }
 0x41e   : > { %v5877_v51 = vpop.eup %5876 }
 0x41f   : > { %v5879_v61 = vpop.eup %5878  ;;  %v1444_v33 = vmul.f32 %v5877_v51, %v5875_v52 }
 0x420   : > { %v1443_v8 = vmul.f32 %v5879_v61, %v7106_v55  ;;  %v5881_v5 = vpop.eup %5880 }
 0x422   : > { %v7152_v11 = vadd.f32 %v1444_v33, %v1443_v8 }
 0x424   : > { %5882 = vtanh.f32 %v7152_v11 }
 0x42e   : > { %v5883_v12 = vpop.eup %5882 }
 0x42f   : > { %v7155_v15 = vmul.f32 %v5883_v12, %v5881_v5 }
 0x431   : > { %1513 = vmatmul.mubr.f32.vlgmr.msra.gmra.mrb[6].mxu0 %v7155_v15  ;;  %1584 = vmatmul.mubr.f32.vlgmr.msra.gmra.mrb[6].mxu1 %v7155_v15 }
 0x432   : > { %4803 = vmatpush1.bf16.msra.mxu0 %v6826_v47  ;;  %4835 = vmatpush1.bf16.msra.mxu1 %v6831_v50 }
 0x433   : > { %4805 = vmatprep.subr.bf16.mxu0 %v6836_v53  ;;  %4837 = vmatprep.subr.bf16.mxu1 %v6840_v56 }
 0x434   : > { %1682 = vmatprep.mubr.f32.mxu0 %v6363_v0  ;;  %1753 = vmatprep.mubr.f32.mxu1 %v6363_v0 }
 0x436   : > { %4807 = vmatpush1.bf16.msra.mxu0 %v6846_v60  ;;  %4839 = vmatpush1.bf16.msra.mxu1 %v6852_v63 }
 0x437   : > { %4809 = vmatprep.subr.bf16.mxu0 %v6858_v3  ;;  %4841 = vmatprep.subr.bf16.mxu1 %v6863_v6 }
 0x43a   : > { %4811 = vmatpush1.bf16.msra.mxu0 %v6869_v10  ;;  %4843 = vmatpush1.bf16.msra.mxu1 %v6875_v13 }
 0x43b   : > { %4813 = vmatprep.subr.bf16.mxu0 %v6881_v16  ;;  %4845 = vmatprep.subr.bf16.mxu1 %v6886_v19 }
 0x43e   : > { %4815 = vmatpush1.bf16.msra.mxu0 %v6892_v23  ;;  %4847 = vmatpush1.bf16.msra.mxu1 %v6898_v26 }
 0x43f   : > { %4817 = vmatprep.subr.bf16.mxu0 %v6904_v29  ;;  %4849 = vmatprep.subr.bf16.mxu1 %v6909_v32 }
 0x442   : > { %4819 = vmatpush1.bf16.msra.mxu0 %v6915_v36  ;;  %4851 = vmatpush1.bf16.msra.mxu1 %v6921_v40 }
 0x443   : > { %4821 = vmatprep.subr.bf16.mxu0 %v6927_v44  ;;  %4853 = vmatprep.subr.bf16.mxu1 %v6932_v48 }
 0x446   : > { %4823 = vmatpush1.bf16.msra.mxu0 %v6938_v54  ;;  %4855 = vmatpush1.bf16.msra.mxu1 %v6944_v58 }
 0x447   : > { %4825 = vmatprep.subr.bf16.mxu0 %v6950_v62  ;;  %4857 = vmatprep.subr.bf16.mxu1 %v6955_v4 }
 0x44a   : > { %4827 = vmatpush1.bf16.msra.mxu0 %v6961_v9  ;;  %4859 = vmatpush1.bf16.msra.mxu1 %v6967_v14 }
 0x44b   : > { %4829 = vmatprep.subr.bf16.mxu0 %v6973_v18  ;;  %4861 = vmatprep.subr.bf16.mxu1 %v6978_v22 }
 0x44e   : > { %4831 = vmatpush1.bf16.msra.mxu0 %v6982_v25  ;;  %4863 = vmatpush1.bf16.msra.mxu1 %v6986_v27 }
 0x44f   : > { %4865 = vmatprep.subr.bf16.mxu0 %v6815_v38  ;;  %4897 = vmatprep.subr.bf16.mxu1 %v6819_v41 }
 0x504   : > { %v1514_v55 = vpop.f32.mrb[6].mxu0  ;;  %v1585_v17 = vpop.f32.mrb[6].mxu1 }
 0x505   : > { %v5638_v20 = vadd.f32 %v1514_v55, %v7040_v35  ;;  %v1516_v21 = vpop.f32.mrb[7].mxu0  ;;  %v1587_v24 = vpop.f32.mrb[7].mxu1  ;;  %v5654_v52 = vadd.f32 %v1585_v17, %v7057_v1 }
 0x506   : > { %v5639_v28 = vadd.f32 %v1516_v21, %v7044_v37  ;;  %v5655_v45 = vadd.f32 %v1587_v24, %v7051_v57 }
 0x507   : > { %v4303_v39 = vmul.f32 -1.442695, %v5638_v20 }
 0x508   : > { %v4304_v43 = vmul.f32 -1.442695, %v5639_v28  ;;  %v4305_v49 = vmul.f32 -1.442695, %v5655_v45 }
 0x509   : > { %5884 = vpow2.f32 %v4303_v39 }
 0x50a   : > { %5886 = vpow2.f32 %v4304_v43 }
 0x50b   : > { %5888 = vpow2.f32 %v4305_v49 }
 0x50c   : > { %5890 = vtanh.f32 %v5654_v52 }
 0x513   : > { %v5885_v51 = vpop.eup %5884 }
 0x514   : > { %v5887_v61 = vpop.eup %5886  ;;  %v1597_v33 = vadd.f32 1.0, %v5885_v51 }
 0x515   : > { %v1603_v7 = vadd.f32 1.0, %v5887_v61  ;;  %v5889_v8 = vpop.eup %5888 }
 0x516   : > { %5892 = vrcp.f32 %v1597_v33  ;;  %v5891_v5 = vpop.eup %5890  ;;  %v1610_v21 = vadd.f32 1.0, %v5889_v8 }
 0x517   : > { %5894 = vrcp.f32 %v1603_v7 }
 0x518   : > { %5896 = vrcp.f32 %v1610_v21 }
 0x520   : > { %v5893_v12 = vpop.eup %5892 }
 0x521   : > { %v5895_v55 = vpop.eup %5894  ;;  %v1614_v20 = vmul.f32 %v5893_v12, %v5891_v5 }
 0x522   : > { %v1613_v28 = vmul.f32 %v5895_v55, %v7152_v11  ;;  %v5897_v17 = vpop.eup %5896 }
 0x524   : > { %v7198_v24 = vadd.f32 %v1614_v20, %v1613_v28 }
 0x526   : > { %5898 = vtanh.f32 %v7198_v24 }
 0x530   : > { %v5899_v39 = vpop.eup %5898 }
 0x531   : > { %v7201_v43 = vmul.f32 %v5899_v39, %v5897_v17 }
 0x533   : > { %1683 = vmatmul.mubr.f32.vlgmr.msra.gmra.mrb[8].mxu0 %v7201_v43  ;;  %1754 = vmatmul.mubr.f32.vlgmr.msra.gmra.mrb[8].mxu1 %v7201_v43 }
 0x534   : > { %4867 = vmatpush1.bf16.msra.mxu0 %v6826_v47  ;;  %4899 = vmatpush1.bf16.msra.mxu1 %v6831_v50 }
 0x535   : > { %4869 = vmatprep.subr.bf16.mxu0 %v6836_v53  ;;  %4901 = vmatprep.subr.bf16.mxu1 %v6840_v56 }
 0x536   : > { %1852 = vmatprep.mubr.f32.mxu0 %v6363_v0  ;;  %1923 = vmatprep.mubr.f32.mxu1 %v6363_v0 }
 0x538   : > { %4871 = vmatpush1.bf16.msra.mxu0 %v6846_v60  ;;  %4903 = vmatpush1.bf16.msra.mxu1 %v6852_v63 }
 0x539   : > { %4873 = vmatprep.subr.bf16.mxu0 %v6858_v3  ;;  %4905 = vmatprep.subr.bf16.mxu1 %v6863_v6 }
 0x53c   : > { %4875 = vmatpush1.bf16.msra.mxu0 %v6869_v10  ;;  %4907 = vmatpush1.bf16.msra.mxu1 %v6875_v13 }
 0x53d   : > { %4877 = vmatprep.subr.bf16.mxu0 %v6881_v16  ;;  %4909 = vmatprep.subr.bf16.mxu1 %v6886_v19 }
 0x540   : > { %4879 = vmatpush1.bf16.msra.mxu0 %v6892_v23  ;;  %4911 = vmatpush1.bf16.msra.mxu1 %v6898_v26 }
 0x541   : > { %4881 = vmatprep.subr.bf16.mxu0 %v6904_v29  ;;  %4913 = vmatprep.subr.bf16.mxu1 %v6909_v32 }
 0x544   : > { %4883 = vmatpush1.bf16.msra.mxu0 %v6915_v36  ;;  %4915 = vmatpush1.bf16.msra.mxu1 %v6921_v40 }
 0x545   : > { %4885 = vmatprep.subr.bf16.mxu0 %v6927_v44  ;;  %4917 = vmatprep.subr.bf16.mxu1 %v6932_v48 }
 0x548   : > { %4887 = vmatpush1.bf16.msra.mxu0 %v6938_v54  ;;  %4919 = vmatpush1.bf16.msra.mxu1 %v6944_v58 }
 0x549   : > { %4889 = vmatprep.subr.bf16.mxu0 %v6950_v62  ;;  %4921 = vmatprep.subr.bf16.mxu1 %v6955_v4 }
 0x54c   : > { %4891 = vmatpush1.bf16.msra.mxu0 %v6961_v9  ;;  %4923 = vmatpush1.bf16.msra.mxu1 %v6967_v14 }
 0x54d   : > { %4893 = vmatprep.subr.bf16.mxu0 %v6973_v18  ;;  %4925 = vmatprep.subr.bf16.mxu1 %v6978_v22 }
 0x550   : > { %4895 = vmatpush1.bf16.msra.mxu0 %v6982_v25  ;;  %4927 = vmatpush1.bf16.msra.mxu1 %v6986_v27 }
 0x551   : > { %4929 = vmatprep.subr.bf16.mxu0 %v6815_v38  ;;  %4961 = vmatprep.subr.bf16.mxu1 %v6819_v41 }
 0x606   : > { %v1684_v11 = vpop.f32.mrb[8].mxu0  ;;  %v1755_v45 = vpop.f32.mrb[8].mxu1 }
 0x607   : > { %v5640_v49 = vadd.f32 %v1684_v11, %v7040_v35  ;;  %v1686_v52 = vpop.f32.mrb[9].mxu0  ;;  %v1757_v51 = vpop.f32.mrb[9].mxu1  ;;  %v5656_v12 = vadd.f32 %v1755_v45, %v7057_v1 }
 0x608   : > { %v5641_v61 = vadd.f32 %v1686_v52, %v7044_v37  ;;  %v5657_v8 = vadd.f32 %v1757_v51, %v7051_v57 }
 0x609   : > { %v4306_v33 = vmul.f32 -1.442695, %v5640_v49 }
 0x60a   : > { %v4307_v7 = vmul.f32 -1.442695, %v5641_v61  ;;  %v4308_v5 = vmul.f32 -1.442695, %v5657_v8 }
 0x60b   : > { %5900 = vpow2.f32 %v4306_v33 }
 0x60c   : > { %5902 = vpow2.f32 %v4307_v7 }
 0x60d   : > { %5904 = vpow2.f32 %v4308_v5 }
 0x60e   : > { %5906 = vtanh.f32 %v5656_v12 }
 0x615   : > { %v5901_v55 = vpop.eup %5900 }
 0x616   : > { %v5903_v20 = vpop.eup %5902  ;;  %v1767_v21 = vadd.f32 1.0, %v5901_v55 }
 0x617   : > { %v1773_v28 = vadd.f32 1.0, %v5903_v20  ;;  %v5905_v17 = vpop.eup %5904 }
 0x618   : > { %5908 = vrcp.f32 %v1767_v21  ;;  %v5907_v39 = vpop.eup %5906  ;;  %v1780_v61 = vadd.f32 1.0, %v5905_v17 }
 0x619   : > { %5910 = vrcp.f32 %v1773_v28 }
 0x61a   : > { %5912 = vrcp.f32 %v1780_v61 }
 0x622   : > { %v5909_v11 = vpop.eup %5908 }
 0x623   : > { %v5911_v49 = vpop.eup %5910  ;;  %v1784_v52 = vmul.f32 %v5909_v11, %v5907_v39 }
 0x624   : > { %v1783_v33 = vmul.f32 %v5911_v49, %v7198_v24  ;;  %v5913_v45 = vpop.eup %5912 }
 0x626   : > { %v7244_v51 = vadd.f32 %v1784_v52, %v1783_v33 }
 0x628   : > { %5914 = vtanh.f32 %v7244_v51 }
 0x632   : > { %v5915_v7 = vpop.eup %5914 }
 0x633   : > { %v7247_v8 = vmul.f32 %v5915_v7, %v5913_v45 }
 0x635   : > { %1853 = vmatmul.mubr.f32.vlgmr.msra.gmra.mrb[10].mxu0 %v7247_v8  ;;  %1924 = vmatmul.mubr.f32.vlgmr.msra.gmra.mrb[10].mxu1 %v7247_v8 }
 0x636   : > { %4931 = vmatpush1.bf16.msra.mxu0 %v6826_v47  ;;  %4963 = vmatpush1.bf16.msra.mxu1 %v6831_v50 }
 0x637   : > { %4933 = vmatprep.subr.bf16.mxu0 %v6836_v53  ;;  %4965 = vmatprep.subr.bf16.mxu1 %v6840_v56 }
 0x638   : > { %2022 = vmatprep.mubr.f32.mxu0 %v6363_v0  ;;  %2093 = vmatprep.mubr.f32.mxu1 %v6363_v0 }
 0x63a   : > { %4935 = vmatpush1.bf16.msra.mxu0 %v6846_v60  ;;  %4967 = vmatpush1.bf16.msra.mxu1 %v6852_v63 }
 0x63b   : > { %4937 = vmatprep.subr.bf16.mxu0 %v6858_v3  ;;  %4969 = vmatprep.subr.bf16.mxu1 %v6863_v6 }
 0x63e   : > { %4939 = vmatpush1.bf16.msra.mxu0 %v6869_v10  ;;  %4971 = vmatpush1.bf16.msra.mxu1 %v6875_v13 }
 0x63f   : > { %4941 = vmatprep.subr.bf16.mxu0 %v6881_v16  ;;  %4973 = vmatprep.subr.bf16.mxu1 %v6886_v19 }
 0x642   : > { %4943 = vmatpush1.bf16.msra.mxu0 %v6892_v23  ;;  %4975 = vmatpush1.bf16.msra.mxu1 %v6898_v26 }
 0x643   : > { %4945 = vmatprep.subr.bf16.mxu0 %v6904_v29  ;;  %4977 = vmatprep.subr.bf16.mxu1 %v6909_v32 }
 0x646   : > { %4947 = vmatpush1.bf16.msra.mxu0 %v6915_v36  ;;  %4979 = vmatpush1.bf16.msra.mxu1 %v6921_v40 }
 0x647   : > { %4949 = vmatprep.subr.bf16.mxu0 %v6927_v44  ;;  %4981 = vmatprep.subr.bf16.mxu1 %v6932_v48 }
 0x64a   : > { %4951 = vmatpush1.bf16.msra.mxu0 %v6938_v54  ;;  %4983 = vmatpush1.bf16.msra.mxu1 %v6944_v58 }
 0x64b   : > { %4953 = vmatprep.subr.bf16.mxu0 %v6950_v62  ;;  %4985 = vmatprep.subr.bf16.mxu1 %v6955_v4 }
 0x64e   : > { %4955 = vmatpush1.bf16.msra.mxu0 %v6961_v9  ;;  %4987 = vmatpush1.bf16.msra.mxu1 %v6967_v14 }
 0x64f   : > { %4957 = vmatprep.subr.bf16.mxu0 %v6973_v18  ;;  %4989 = vmatprep.subr.bf16.mxu1 %v6978_v22 }
 0x652   : > { %4959 = vmatpush1.bf16.msra.mxu0 %v6982_v25  ;;  %4991 = vmatpush1.bf16.msra.mxu1 %v6986_v27 }
 0x653   : > { %4993 = vmatprep.subr.bf16.mxu0 %v6815_v38  ;;  %5025 = vmatprep.subr.bf16.mxu1 %v6819_v41 }
 0x708   : > { %v1854_v24 = vpop.f32.mrb[10].mxu0  ;;  %v1925_v5 = vpop.f32.mrb[10].mxu1 }
 0x709   : > { %v5642_v12 = vadd.f32 %v1854_v24, %v7040_v35  ;;  %v1856_v55 = vpop.f32.mrb[11].mxu0  ;;  %v1927_v20 = vpop.f32.mrb[11].mxu1  ;;  %v5658_v49 = vadd.f32 %v1925_v5, %v7057_v1 }
 0x70a   : > { %v5643_v21 = vadd.f32 %v1856_v55, %v7044_v37  ;;  %v5659_v39 = vadd.f32 %v1927_v20, %v7051_v57 }
 0x70b   : > { %v4309_v28 = vmul.f32 -1.442695, %v5642_v12 }
 0x70c   : > { %v4310_v17 = vmul.f32 -1.442695, %v5643_v21  ;;  %v4311_v11 = vmul.f32 -1.442695, %v5659_v39  ;;  %v4320_v39 = vld [vmem:[%s6722_s21 + $0x210] sm:$0xff] }
 0x70d   : > { %5916 = vpow2.f32 %v4309_v28 }
 0x70e   : > { %5918 = vpow2.f32 %v4310_v17 }
 0x70f   : > { %5920 = vpow2.f32 %v4311_v11  ;;  %v4324_v11 = vld [vmem:[%s6722_s21 + $0x230] sm:$0xff] }
 0x710   : > { %5922 = vtanh.f32 %v5658_v49  ;;  %v4327_v49 = vld [vmem:[%s6722_s21 + $0x248] sm:$0xff] }
 0x717   : > { %v5917_v38 = vpop.eup %5916 }
 0x718   : > { %v5919_v52 = vpop.eup %5918  ;;  %v1937_v41 = vadd.f32 1.0, %v5917_v38  ;;  %v4331_v38 = vld [vmem:[%s6722_s21 + $0x268] sm:$0xff] }
 0x719   : > { %v1943_v61 = vadd.f32 1.0, %v5919_v52  ;;  %v5921_v33 = vpop.eup %5920  ;;  %v4329_v52 = vld [vmem:[%s6722_s21 + $0x258] sm:$0xff] }
 0x71a   : > { %5924 = vrcp.f32 %v1937_v41  ;;  %v5923_v45 = vpop.eup %5922  ;;  %v1950_v55 = vadd.f32 1.0, %v5921_v33  ;;  %v4333_v41 = vld [vmem:[%s6722_s21 + $0x278] sm:$0xff] }
 0x71b   : > { %5926 = vrcp.f32 %v1943_v61 }
 0x71c   : > { %5928 = vrcp.f32 %v1950_v55 }
 0x724   : > { %v5925_v7 = vpop.eup %5924 }
 0x725   : > { %v5927_v24 = vpop.eup %5926  ;;  %v1954_v12 = vmul.f32 %v5925_v7, %v5923_v45  ;;  %v5090_v7 = vpack.c.bf16 %v4324_v11, %v4320_v39  ;;  %v4350_v39 = vld [vmem:[%s6722_s21 + $0x300] sm:$0xff] }
 0x726   : > { %v1953_v21 = vmul.f32 %v5927_v24, %v7244_v51  ;;  %v5929_v5 = vpop.eup %5928  ;;  %v4322_v51 = vld [vmem:[%s6722_s21 + $0x220] sm:$0xff] }
 0x727   : > { %v4326_v24 = vld [vmem:[%s6722_s21 + $0x240] sm:$0xff] }
 0x728   : > { %v7290_v20 = vadd.f32 %v1954_v12, %v1953_v21  ;;  %v4330_v12 = vld [vmem:[%s6722_s21 + $0x260] sm:$0xff]  ;;  %v5060_v21 = vpack.c.bf16 %v4331_v38, %v4327_v49 }
 0x729   : > { %v4354_v11 = vld [vmem:[%s6722_s21 + $0x320] sm:$0xff] }
 0x72a   : > { %5930 = vtanh.f32 %v7290_v20 }
 0x734   : > { %v5931_v28 = vpop.eup %5930 }
 0x735   : > { %v7293_v17 = vmul.f32 %v5931_v28, %v5929_v5  ;;  %v4328_v5 = vld [vmem:[%s6722_s21 + $0x250] sm:$0xff] }
 0x736   : > { %v4332_v28 = vld [vmem:[%s6722_s21 + $0x270] sm:$0xff] }
 0x737   : > { %2023 = vmatmul.mubr.f32.vlgmr.msra.gmra.mrb[12].mxu0 %v7293_v17  ;;  %2094 = vmatmul.mubr.f32.vlgmr.msra.gmra.mrb[12].mxu1 %v7293_v17 }
 0x738   : > { %4995 = vmatpush1.bf16.msra.mxu0 %v6826_v47  ;;  %5027 = vmatpush1.bf16.msra.mxu1 %v6831_v50  ;;  %v4319_v47 = vld [vmem:[%s6722_s21 + $0x208] sm:$0xff] }
 0x739   : > { %4997 = vmatprep.subr.bf16.mxu0 %v6836_v53  ;;  %5029 = vmatprep.subr.bf16.mxu1 %v6840_v56  ;;  %v4323_v50 = vld [vmem:[%s6722_s21 + $0x228] sm:$0xff]  ;;  %v4321_v53 = vld [vmem:[%s6722_s21 + $0x218] sm:$0xff] }
 0x73a   : > { %2192 = vmatprep.mubr.f32.mxu0 %v6363_v0  ;;  %2263 = vmatprep.mubr.f32.mxu1 %v6363_v0  ;;  %v5056_v56 = vpack.c.bf16 %v4323_v50, %v4319_v47  ;;  %v4335_v47 = vld [vmem:[%s6722_s21 + $0x288] sm:$0xff] }
 0x73b   : > { %v4339_v50 = vld [vmem:[%s6722_s21 + $0x2a8] sm:$0xff] }
 0x73c   : > { %4999 = vmatpush1.bf16.msra.mxu0 %v6846_v60  ;;  %5031 = vmatpush1.bf16.msra.mxu1 %v6852_v63  ;;  %v4325_v60 = vld [vmem:[%s6722_s21 + $0x238] sm:$0xff] }
 0x73d   : > { %5001 = vmatprep.subr.bf16.mxu0 %v6858_v3  ;;  %5033 = vmatprep.subr.bf16.mxu1 %v6863_v6  ;;  %v5088_v63 = vpack.c.bf16 %v4325_v60, %v4321_v53  ;;  %v4337_v53 = vld [vmem:[%s6722_s21 + $0x298] sm:$0xff]  ;;  %v5062_v60 = vpack.c.bf16 %v4330_v12, %v4326_v24  ;;  %v5074_v24 = vpack.c.bf16 %v4354_v11, %v4350_v39  ;;  %v4384_v39 = vld [vmem:[%s6729_s20 + $0x210] sm:$0xff] }
 0x73e   : > { %v4388_v11 = vld [vmem:[%s6729_s20 + $0x230] sm:$0xff] }
 0x740   : > { %5003 = vmatpush1.bf16.msra.mxu0 %v6869_v10  ;;  %5035 = vmatpush1.bf16.msra.mxu1 %v6875_v13 }
 0x741   : > { %5005 = vmatprep.subr.bf16.mxu0 %v6881_v16  ;;  %5037 = vmatprep.subr.bf16.mxu1 %v6886_v19 }
 0x744   : > { %5007 = vmatpush1.bf16.msra.mxu0 %v6892_v23  ;;  %5039 = vmatpush1.bf16.msra.mxu1 %v6898_v26 }
 0x745   : > { %5009 = vmatprep.subr.bf16.mxu0 %v6904_v29  ;;  %5041 = vmatprep.subr.bf16.mxu1 %v6909_v32 }
 0x748   : > { %5011 = vmatpush1.bf16.msra.mxu0 %v6915_v36  ;;  %5043 = vmatpush1.bf16.msra.mxu1 %v6921_v40 }
 0x749   : > { %5013 = vmatprep.subr.bf16.mxu0 %v6927_v44  ;;  %5045 = vmatprep.subr.bf16.mxu1 %v6932_v48 }
 0x74c   : > { %5015 = vmatpush1.bf16.msra.mxu0 %v6938_v54  ;;  %5047 = vmatpush1.bf16.msra.mxu1 %v6944_v58 }
 0x74d   : > { %5017 = vmatprep.subr.bf16.mxu0 %v6950_v62  ;;  %5049 = vmatprep.subr.bf16.mxu1 %v6955_v4 }
 0x750   : > { %5019 = vmatpush1.bf16.msra.mxu0 %v6961_v9  ;;  %5051 = vmatpush1.bf16.msra.mxu1 %v6967_v14 }
 0x751   : > { %5021 = vmatprep.subr.bf16.mxu0 %v6973_v18  ;;  %5053 = vmatprep.subr.bf16.mxu1 %v6978_v22 }
 0x754   : > { %5023 = vmatpush1.bf16.msra.mxu0 %v6982_v25  ;;  %5055 = vmatpush1.bf16.msra.mxu1 %v6986_v27  ;;  %v4318_v27 = vld [vmem:[%s6722_s21 + $0x200] sm:$0xff] }
 0x755   : > { %5057 = vmatprep.subr.bf16.mxu0 %v5056_v56  ;;  %5089 = vmatprep.subr.bf16.mxu1 %v5088_v63  ;;  %v5058_v45 = vpack.c.bf16 %v4322_v51, %v4318_v27  ;;  %v4341_v56 = vld [vmem:[%s6722_s21 + $0x2b8] sm:$0xff]  ;;  %v5094_v63 = vpack.c.bf16 %v4332_v28, %v4328_v5 }
 0x80a   : > { %v2024_v3 = vpop.f32.mrb[12].mxu0  ;;  %v2095_v6 = vpop.f32.mrb[12].mxu1 }
 0x80b   : > { %v5644_v10 = vadd.f32 %v2024_v3, %v7040_v35  ;;  %v2026_v13 = vpop.f32.mrb[13].mxu0  ;;  %v2097_v16 = vpop.f32.mrb[13].mxu1  ;;  %v5660_v36 = vadd.f32 %v2095_v6, %v7057_v1  ;;  %v4334_v3 = vld [vmem:[%s6722_s21 + $0x280] sm:$0xff] }
 0x80c   : > { %v5645_v19 = vadd.f32 %v2026_v13, %v7044_v37  ;;  %v5661_v29 = vadd.f32 %v2097_v16, %v7051_v57  ;;  %v4338_v6 = vld [vmem:[%s6722_s21 + $0x2a0] sm:$0xff]  ;;  %v5096_v13 = vpack.c.bf16 %v4341_v56, %v4337_v53  ;;  %v4336_v16 = vld [vmem:[%s6722_s21 + $0x290] sm:$0xff]  ;;  %v4367_v53 = vld [vmem:[%s6722_s21 + $0x388] sm:$0xff] }
 0x80d   : > { %v4312_v23 = vmul.f32 -1.442695, %v5644_v10  ;;  %v5064_v10 = vpack.c.bf16 %v4339_v50, %v4335_v47  ;;  %v4360_v47 = vld [vmem:[%s6722_s21 + $0x350] sm:$0xff]  ;;  %v4371_v56 = vld [vmem:[%s6722_s21 + $0x3a8] sm:$0xff] }
 0x80e   : > { %v4313_v26 = vmul.f32 -1.442695, %v5645_v19  ;;  %v4314_v32 = vmul.f32 -1.442695, %v5661_v29  ;;  %v4340_v19 = vld [vmem:[%s6722_s21 + $0x2b0] sm:$0xff]  ;;  %v4345_v29 = vld [vmem:[%s6722_s21 + $0x2d8] sm:$0xff] }
 0x80f   : > { %5932 = vpow2.f32 %v4312_v23  ;;  %v4343_v23 = vld [vmem:[%s6722_s21 + $0x2c8] sm:$0xff]  ;;  %v4364_v50 = vld [vmem:[%s6722_s21 + $0x370] sm:$0xff] }
 0x810   : > { %5934 = vpow2.f32 %v4313_v26  ;;  %v4347_v26 = vld [vmem:[%s6722_s21 + $0x2e8] sm:$0xff] }
 0x811   : > { %5936 = vpow2.f32 %v4314_v32  ;;  %v4349_v32 = vld [vmem:[%s6722_s21 + $0x2f8] sm:$0xff] }
 0x812   : > { %5938 = vtanh.f32 %v5660_v36  ;;  %v5066_v36 = vpack.c.bf16 %v4338_v6, %v4334_v3  ;;  %v5110_v6 = vpack.c.bf16 %v4364_v50, %v4360_v47  ;;  %v4403_v47 = vld [vmem:[%s6729_s20 + $0x2a8] sm:$0xff]  ;;  %v4401_v50 = vld [vmem:[%s6729_s20 + $0x298] sm:$0xff] }
 0x819   : > { %v5933_v40 = vpop.eup %5932 }
 0x81a   : > { %v5935_v44 = vpop.eup %5934  ;;  %v2107_v48 = vadd.f32 1.0, %v5933_v40  ;;  %v5098_v40 = vpack.c.bf16 %v4340_v19, %v4336_v16  ;;  %v5080_v16 = vpack.c.bf16 %v4371_v56, %v4367_v53  ;;  %v4405_v56 = vld [vmem:[%s6729_s20 + $0x2b8] sm:$0xff] }
 0x81b   : > { %v2113_v54 = vadd.f32 1.0, %v5935_v44  ;;  %v5937_v58 = vpop.eup %5936  ;;  %v4342_v44 = vld [vmem:[%s6722_s21 + $0x2c0] sm:$0xff] }
 0x81c   : > { %5940 = vrcp.f32 %v2107_v48  ;;  %v5939_v62 = vpop.eup %5938  ;;  %v2120_v18 = vadd.f32 1.0, %v5937_v58  ;;  %v4346_v48 = vld [vmem:[%s6722_s21 + $0x2e0] sm:$0xff]  ;;  %v5100_v58 = vpack.c.bf16 %v4349_v32, %v4345_v29  ;;  %v4375_v29 = vld [vmem:[%s6722_s21 + $0x3c8] sm:$0xff] }
 0x81d   : > { %5942 = vrcp.f32 %v2113_v54  ;;  %v5068_v54 = vpack.c.bf16 %v4347_v26, %v4343_v23  ;;  %v5070_v27 = vpack.c.bf16 %v4346_v48, %v4342_v44  ;;  %v4368_v23 = vld [vmem:[%s6722_s21 + $0x390] sm:$0xff]  ;;  %v4379_v32 = vld [vmem:[%s6722_s21 + $0x3e8] sm:$0xff] }
 0x81e   : > { %5944 = vrcp.f32 %v2120_v18  ;;  %v4353_v18 = vld [vmem:[%s6722_s21 + $0x318] sm:$0xff]  ;;  %v4372_v26 = vld [vmem:[%s6722_s21 + $0x3b0] sm:$0xff] }
 0x81f   : > { %v5114_v48 = vpack.c.bf16 %v4372_v26, %v4368_v23  ;;  %v4411_v23 = vld [vmem:[%s6729_s20 + $0x2e8] sm:$0xff]  ;;  %v4409_v26 = vld [vmem:[%s6729_s20 + $0x2d8] sm:$0xff] }
 0x826   : > { %v5941_v4 = vpop.eup %5940 }
 0x827   : > { %v5943_v9 = vpop.eup %5942  ;;  %v2124_v14 = vmul.f32 %v5941_v4, %v5939_v62  ;;  %v4344_v62 = vld [vmem:[%s6722_s21 + $0x2d0] sm:$0xff] }
 0x828   : > { %v2123_v22 = vmul.f32 %v5943_v9, %v7290_v20  ;;  %v5945_v61 = vpop.eup %5944  ;;  %v5092_v20 = vpack.c.bf16 %v4333_v41, %v4329_v52  ;;  %v4348_v4 = vld [vmem:[%s6722_s21 + $0x2f0] sm:$0xff]  ;;  %v4351_v9 = vld [vmem:[%s6722_s21 + $0x308] sm:$0xff] }
 0x829   : > { %v5102_v51 = vpack.c.bf16 %v4348_v4, %v4344_v62  ;;  %v4352_v52 = vld [vmem:[%s6722_s21 + $0x310] sm:$0xff]  ;;  %v4378_v4 = vld [vmem:[%s6722_s21 + $0x3e0] sm:$0xff] }
 0x82a   : > { %v7338_v25 = vadd.f32 %v2124_v14, %v2123_v22  ;;  %v4355_v14 = vld [vmem:[%s6722_s21 + $0x328] sm:$0xff]  ;;  %v4357_v22 = vld [vmem:[%s6722_s21 + $0x338] sm:$0xff]  ;;  %v4356_v41 = vld [vmem:[%s6722_s21 + $0x330] sm:$0xff] }
 0x82b   : > { %v5072_v49 = vpack.c.bf16 %v4355_v14, %v4351_v9  ;;  %v5104_v38 = vpack.c.bf16 %v4357_v22, %v4353_v18  ;;  %v5106_v12 = vpack.c.bf16 %v4356_v41, %v4352_v52  ;;  %v4376_v9 = vld [vmem:[%s6722_s21 + $0x3d0] sm:$0xff]  ;;  %v4395_v52 = vld [vmem:[%s6729_s20 + $0x268] sm:$0xff]  ;;  %v4393_v41 = vld [vmem:[%s6729_s20 + $0x258] sm:$0xff] }
 0x82c   : > { %5946 = vtanh.f32 %v7338_v25  ;;  %v4380_v14 = vld [vmem:[%s6722_s21 + $0x3f0] sm:$0xff] }
 0x82d   : > { %v5118_v22 = vpack.c.bf16 %v4380_v14, %v4376_v9  ;;  %v4419_v9 = vld [vmem:[%s6729_s20 + $0x328] sm:$0xff]  ;;  %v4417_v14 = vld [vmem:[%s6729_s20 + $0x318] sm:$0xff] }
 0x836   : > { %v5947_v33 = vpop.eup %5946 }
 0x837   : > { %v7351_v55 = vmul.f32 %v5947_v33, %v5945_v61  ;;  %v4359_v61 = vld [vmem:[%s6722_s21 + $0x348] sm:$0xff] }
 0x838   : > { %v4363_v33 = vld [vmem:[%s6722_s21 + $0x368] sm:$0xff] }
 0x839   : > { %2193 = vmatmul.mubr.f32.vlgmr.msra.gmra.mrb[14].mxu0 %v7351_v55  ;;  %2264 = vmatmul.mubr.f32.vlgmr.msra.gmra.mrb[14].mxu1 %v7351_v55  ;;  %v5076_v5 = vpack.c.bf16 %v4363_v33, %v4359_v61  ;;  %v4397_v33 = vld [vmem:[%s6729_s20 + $0x278] sm:$0xff] }
 0x83a   : > { %5059 = vmatpush1.bf16.msra.mxu0 %v5058_v45  ;;  %5091 = vmatpush1.bf16.msra.mxu1 %v5090_v7  ;;  %v4361_v45 = vld [vmem:[%s6722_s21 + $0x358] sm:$0xff] }
 0x83b   : > { %5061 = vmatprep.subr.bf16.mxu0 %v5060_v21  ;;  %5093 = vmatprep.subr.bf16.mxu1 %v5092_v20  ;;  %v4365_v7 = vld [vmem:[%s6722_s21 + $0x378] sm:$0xff]  ;;  %v4358_v21 = vld [vmem:[%s6722_s21 + $0x340] sm:$0xff] }
 0x83c   : > { %2515 = vmatprep.mubr.f32.mxu0 %v6363_v0  ;;  %2628 = vmatprep.mubr.f32.mxu1 %v6363_v0  ;;  %v4362_v20 = vld [vmem:[%s6722_s21 + $0x360] sm:$0xff]  ;;  %v5108_v28 = vpack.c.bf16 %v4365_v7, %v4361_v45 }
 0x83d   : > { %v5078_v3 = vpack.c.bf16 %v4362_v20, %v4358_v21  ;;  %v4390_v45 = vld [vmem:[%s6729_s20 + $0x240] sm:$0xff]  ;;  %v4392_v21 = vld [vmem:[%s6729_s20 + $0x250] sm:$0xff] }
 0x83e   : > { %5063 = vmatpush1.bf16.msra.mxu0 %v5062_v60  ;;  %5095 = vmatpush1.bf16.msra.mxu1 %v5094_v63  ;;  %v4369_v60 = vld [vmem:[%s6722_s21 + $0x398] sm:$0xff]  ;;  %v4394_v7 = vld [vmem:[%s6729_s20 + $0x260] sm:$0xff]  ;;  %v4396_v20 = vld [vmem:[%s6729_s20 + $0x270] sm:$0xff] }
 0x83f   : > { %5065 = vmatprep.subr.bf16.mxu0 %v5064_v10  ;;  %5097 = vmatprep.subr.bf16.mxu1 %v5096_v13  ;;  %v4373_v63 = vld [vmem:[%s6722_s21 + $0x3b8] sm:$0xff]  ;;  %v4366_v10 = vld [vmem:[%s6722_s21 + $0x380] sm:$0xff] }
 0x840   : > { %v4370_v13 = vld [vmem:[%s6722_s21 + $0x3a0] sm:$0xff]  ;;  %v5112_v19 = vpack.c.bf16 %v4373_v63, %v4369_v60 }
 0x841   : > { %v5082_v44 = vpack.c.bf16 %v4370_v13, %v4366_v10  ;;  %v4398_v60 = vld [vmem:[%s6729_s20 + $0x280] sm:$0xff]  ;;  %v4400_v10 = vld [vmem:[%s6729_s20 + $0x290] sm:$0xff] }
 0x842   : > { %5067 = vmatpush1.bf16.msra.mxu0 %v5066_v36  ;;  %5099 = vmatpush1.bf16.msra.mxu1 %v5098_v40  ;;  %v4377_v36 = vld [vmem:[%s6722_s21 + $0x3d8] sm:$0xff]  ;;  %v4402_v63 = vld [vmem:[%s6729_s20 + $0x2a0] sm:$0xff]  ;;  %v4404_v13 = vld [vmem:[%s6729_s20 + $0x2b0] sm:$0xff] }
 0x843   : > { %5069 = vmatprep.subr.bf16.mxu0 %v5068_v54  ;;  %5101 = vmatprep.subr.bf16.mxu1 %v5100_v58  ;;  %v4381_v40 = vld [vmem:[%s6722_s21 + $0x3f8] sm:$0xff]  ;;  %v4374_v54 = vld [vmem:[%s6722_s21 + $0x3c0] sm:$0xff]  ;;  %v5084_v58 = vpack.c.bf16 %v4379_v32, %v4375_v29 }
 0x844   : > { %v5116_v62 = vpack.c.bf16 %v4381_v40, %v4377_v36  ;;  %v5086_v18 = vpack.c.bf16 %v4378_v4, %v4374_v54  ;;  %v4413_v32 = vld [vmem:[%s6729_s20 + $0x2f8] sm:$0xff]  ;;  %v4406_v36 = vld [vmem:[%s6729_s20 + $0x2c0] sm:$0xff]  ;;  %v4408_v54 = vld [vmem:[%s6729_s20 + $0x2d0] sm:$0xff] }
 0x845   : > { %v4410_v40 = vld [vmem:[%s6729_s20 + $0x2e0] sm:$0xff] }
 0x846   : > { %5071 = vmatpush1.bf16.msra.mxu0 %v5070_v27  ;;  %5103 = vmatpush1.bf16.msra.mxu1 %v5102_v51  ;;  %v4386_v27 = vld [vmem:[%s6729_s20 + $0x220] sm:$0xff] }
 0x847   : > { %5073 = vmatprep.subr.bf16.mxu0 %v5072_v49  ;;  %5105 = vmatprep.subr.bf16.mxu1 %v5104_v38  ;;  %v7450_v49 = vpack.c.bf16 %v4388_v11, %v4384_v39  ;;  %v4391_v38 = vld [vmem:[%s6729_s20 + $0x248] sm:$0xff] }
 0x848   : > { %v7458_v61 = vpack.c.bf16 %v4395_v52, %v4391_v38  ;;  %v4423_v39 = vld [vmem:[%s6729_s20 + $0x348] sm:$0xff] }
 0x849   : > { %v4427_v11 = vld [vmem:[%s6729_s20 + $0x368] sm:$0xff] }
 0x84a   : > { %5075 = vmatpush1.bf16.msra.mxu0 %v5074_v24  ;;  %5107 = vmatpush1.bf16.msra.mxu1 %v5106_v12  ;;  %v7463_v24 = vpack.c.bf16 %v4397_v33, %v4393_v41  ;;  %v7465_v12 = vpack.c.bf16 %v4394_v7, %v4390_v45  ;;  %v7535_v52 = vpack.c.bf16 %v4427_v11, %v4423_v39  ;;  %v4425_v41 = vld [vmem:[%s6729_s20 + $0x358] sm:$0xff]  ;;  %v4422_v45 = vld [vmem:[%s6729_s20 + $0x340] sm:$0xff]  ;;  %v4440_v39 = vld [vmem:[%s6729_s20 + $0x3d0] sm:$0xff] }
 0x84b   : > { %5077 = vmatprep.subr.bf16.mxu0 %v5076_v5  ;;  %5109 = vmatprep.subr.bf16.mxu1 %v5108_v28  ;;  %v7470_v5 = vpack.c.bf16 %v4396_v20, %v4392_v21  ;;  %v4399_v28 = vld [vmem:[%s6729_s20 + $0x288] sm:$0xff]  ;;  %v4429_v33 = vld [vmem:[%s6729_s20 + $0x378] sm:$0xff]  ;;  %v4426_v21 = vld [vmem:[%s6729_s20 + $0x360] sm:$0xff] }
 0x84c   : > { %v7478_v53 = vpack.c.bf16 %v4403_v47, %v4399_v28  ;;  %v7540_v7 = vpack.c.bf16 %v4429_v33, %v4425_v41  ;;  %v4424_v20 = vld [vmem:[%s6729_s20 + $0x350] sm:$0xff]  ;;  %v7546_v47 = vpack.c.bf16 %v4426_v21, %v4422_v45 }
 0x84d   : > { %v4428_v28 = vld [vmem:[%s6729_s20 + $0x370] sm:$0xff] }
 0x84e   : > { %5079 = vmatpush1.bf16.msra.mxu0 %v5078_v3  ;;  %5111 = vmatpush1.bf16.msra.mxu1 %v5110_v6  ;;  %v7483_v3 = vpack.c.bf16 %v4405_v56, %v4401_v50  ;;  %v7485_v6 = vpack.c.bf16 %v4402_v63, %v4398_v60  ;;  %v4431_v50 = vld [vmem:[%s6729_s20 + $0x388] sm:$0xff]  ;;  %v4433_v60 = vld [vmem:[%s6729_s20 + $0x398] sm:$0xff]  ;;  %v7553_v63 = vpack.c.bf16 %v4428_v28, %v4424_v20  ;;  %v4444_v11 = vld [vmem:[%s6729_s20 + $0x3f0] sm:$0xff] }
 0x84f   : > { %5081 = vmatprep.subr.bf16.mxu0 %v5080_v16  ;;  %5113 = vmatprep.subr.bf16.mxu1 %v5112_v19  ;;  %v7490_v16 = vpack.c.bf16 %v4404_v13, %v4400_v10  ;;  %v4407_v19 = vld [vmem:[%s6729_s20 + $0x2c8] sm:$0xff]  ;;  %v4437_v13 = vld [vmem:[%s6729_s20 + $0x3b8] sm:$0xff]  ;;  %v7590_v41 = vpack.c.bf16 %v4444_v11, %v4440_v39 }
 0x850   : > { %v7498_v29 = vpack.c.bf16 %v4411_v23, %v4407_v19  ;;  %v4435_v56 = vld [vmem:[%s6729_s20 + $0x3a8] sm:$0xff]  ;;  %v4430_v19 = vld [vmem:[%s6729_s20 + $0x380] sm:$0xff] }
 0x851   : > { %v7555_v10 = vpack.c.bf16 %v4435_v56, %v4431_v50  ;;  %v4434_v23 = vld [vmem:[%s6729_s20 + $0x3a0] sm:$0xff] }
 0x852   : > { %5083 = vmatpush1.bf16.msra.mxu0 %v5082_v44  ;;  %5115 = vmatpush1.bf16.msra.mxu1 %v5114_v48  ;;  %v7503_v44 = vpack.c.bf16 %v4413_v32, %v4409_v26  ;;  %v7505_v48 = vpack.c.bf16 %v4410_v40, %v4406_v36  ;;  %v7561_v26 = vpack.c.bf16 %v4437_v13, %v4433_v60  ;;  %v4432_v32 = vld [vmem:[%s6729_s20 + $0x390] sm:$0xff] }
 0x853   : > { %5085 = vmatprep.subr.bf16.mxu0 %v5084_v58  ;;  %5117 = vmatprep.subr.bf16.mxu1 %v5116_v62  ;;  %v4412_v58 = vld [vmem:[%s6729_s20 + $0x2f0] sm:$0xff]  ;;  %v4415_v62 = vld [vmem:[%s6729_s20 + $0x308] sm:$0xff]  ;;  %v7566_v40 = vpack.c.bf16 %v4434_v23, %v4430_v19 }
 0x854   : > { %v7511_v4 = vpack.c.bf16 %v4412_v58, %v4408_v54  ;;  %v4436_v36 = vld [vmem:[%s6729_s20 + $0x3b0] sm:$0xff]  ;;  %v4439_v58 = vld [vmem:[%s6729_s20 + $0x3c8] sm:$0xff] }
 0x855   : > { %v7570_v54 = vpack.c.bf16 %v4436_v36, %v4432_v32 }
 0x856   : > { %5087 = vmatpush1.bf16.msra.mxu0 %v5086_v18  ;;  %5119 = vmatpush1.bf16.msra.mxu1 %v5118_v22  ;;  %v4421_v18 = vld [vmem:[%s6729_s20 + $0x338] sm:$0xff]  ;;  %v7518_v22 = vpack.c.bf16 %v4419_v9, %v4415_v62  ;;  %v4443_v62 = vld [vmem:[%s6729_s20 + $0x3e8] sm:$0xff] }
 0x857   : > { %v4441_v9 = vld [vmem:[%s6729_s20 + $0x3d8] sm:$0xff] }
 0x859   : > { %2516 = vmatmul.mubr.f32.vlgmr.msra.gmra.mrb[16].mxu0 %v7063_v46  ;;  %2629 = vmatmul.mubr.f32.vlgmr.msra.gmra.mrb[16].mxu1 %v7063_v46  ;;  %v4383_v46 = vld [vmem:[%s6729_s20 + $0x208] sm:$0xff] }
 0x85a   : > { %2521 = vmatprep.mubr.f32.mxu0 %v6363_v0  ;;  %2634 = vmatprep.mubr.f32.mxu1 %v6363_v0 }
 0x85d   : > { %2522 = vmatmul.mubr.f32.gmra.mrb[18].mxu0 %v7109_v2  ;;  %2635 = vmatmul.mubr.f32.gmra.mrb[18].mxu1 %v7109_v2  ;;  %v4387_v2 = vld [vmem:[%s6729_s20 + $0x228] sm:$0xff] }
 0x85e   : > { %2527 = vmatprep.mubr.f32.mxu0 %v6363_v0  ;;  %2640 = vmatprep.mubr.f32.mxu1 %v6363_v0 }
 0x861   : > { %2528 = vmatmul.mubr.f32.gmra.mrb[20].mxu0 %v7155_v15  ;;  %2641 = vmatmul.mubr.f32.gmra.mrb[20].mxu1 %v7155_v15  ;;  %v4385_v15 = vld [vmem:[%s6729_s20 + $0x218] sm:$0xff] }
 0x862   : > { %2533 = vmatprep.mubr.f32.mxu0 %v6363_v0  ;;  %2646 = vmatprep.mubr.f32.mxu1 %v6363_v0 }
 0x865   : > { %2534 = vmatmul.mubr.f32.gmra.mrb[22].mxu0 %v7201_v43  ;;  %2647 = vmatmul.mubr.f32.gmra.mrb[22].mxu1 %v7201_v43  ;;  %v7438_v43 = vpack.c.bf16 %v4387_v2, %v4383_v46  ;;  %v7520_v46 = vpack.c.bf16 %v4421_v18, %v4417_v14  ;;  %v4414_v2 = vld [vmem:[%s6729_s20 + $0x300] sm:$0xff]  ;;  %v7578_v14 = vpack.c.bf16 %v4443_v62, %v4439_v58  ;;  %v4445_v18 = vld [vmem:[%s6729_s20 + $0x3f8] sm:$0xff] }
 0x866   : > { %2539 = vmatprep.mubr.f32.mxu0 %v6363_v0  ;;  %2652 = vmatprep.mubr.f32.mxu1 %v6363_v0 }
 0x867   : > { %5121 = vmatprep.subr.bf16.mxu0 %v7438_v43 }
 0x869   : > { %2540 = vmatmul.mubr.f32.gmra.mrb[24].mxu0 %v7247_v8  ;;  %2653 = vmatmul.mubr.f32.gmra.mrb[24].mxu1 %v7247_v8  ;;  %v4389_v8 = vld [vmem:[%s6729_s20 + $0x238] sm:$0xff] }
 0x86a   : > { %2545 = vmatprep.mubr.f32.mxu0 %v6363_v0  ;;  %2658 = vmatprep.mubr.f32.mxu1 %v6363_v0  ;;  %v7443_v51 = vpack.c.bf16 %v4389_v8, %v4385_v15  ;;  %v4418_v15 = vld [vmem:[%s6729_s20 + $0x320] sm:$0xff]  ;;  %v4416_v8 = vld [vmem:[%s6729_s20 + $0x310] sm:$0xff] }
 0x86c   : > { %5153 = vmatprep.subr.bf16.mxu1 %v7443_v51 }
 0x86d   : > { %2546 = vmatmul.mubr.f32.gmra.mrb[26].mxu0 %v7293_v17  ;;  %2659 = vmatmul.mubr.f32.gmra.mrb[26].mxu1 %v7293_v17  ;;  %v4382_v17 = vld [vmem:[%s6729_s20 + $0x200] sm:$0xff] }
 0x86e   : > { %2551 = vmatprep.mubr.f32.mxu0 %v6363_v0  ;;  %2664 = vmatprep.mubr.f32.mxu1 %v6363_v0 }
 0x86f   : > { %5155 = vmatpush1.bf16.msra.mxu1 %v7450_v49 }
 0x870   : > { %5157 = vmatprep.subr.bf16.mxu1 %v7463_v24 }
 0x871   : > { %2552 = vmatmul.mubr.f32.gmra.mrb[28].mxu0 %v7351_v55  ;;  %2665 = vmatmul.mubr.f32.gmra.mrb[28].mxu1 %v7351_v55  ;;  %v7445_v55 = vpack.c.bf16 %v4386_v27, %v4382_v17  ;;  %v7526_v17 = vpack.c.bf16 %v4418_v15, %v4414_v2  ;;  %v4420_v27 = vld [vmem:[%s6729_s20 + $0x330] sm:$0xff]  ;;  %v4438_v2 = vld [vmem:[%s6729_s20 + $0x3c0] sm:$0xff] }
 0x872   : > { %2557 = vmatprep.mubr.f32.mxu0 %v6363_v0  ;;  %2670 = vmatprep.mubr.f32.mxu1 %v6363_v0  ;;  %v7533_v38 = vpack.c.bf16 %v4420_v27, %v4416_v8  ;;  %v4442_v15 = vld [vmem:[%s6729_s20 + $0x3e0] sm:$0xff]  ;;  %v7583_v8 = vpack.c.bf16 %v4445_v18, %v4441_v9 }
 0x873   : > { %5123 = vmatpush1.bf16.msra.mxu0 %v7445_v55  ;;  %5159 = vmatpush1.bf16.msra.mxu1 %v7470_v5  ;;  %v7585_v27 = vpack.c.bf16 %v4442_v15, %v4438_v2 }
 0x874   : > { %5125 = vmatprep.subr.bf16.mxu0 %v7458_v61  ;;  %5161 = vmatprep.subr.bf16.mxu1 %v7483_v3 }
 0x877   : > { %5127 = vmatpush1.bf16.msra.mxu0 %v7465_v12  ;;  %5163 = vmatpush1.bf16.msra.mxu1 %v7490_v16 }
 0x878   : > { %5129 = vmatprep.subr.bf16.mxu0 %v7478_v53  ;;  %5165 = vmatprep.subr.bf16.mxu1 %v7503_v44 }
 0x87b   : > { %5131 = vmatpush1.bf16.msra.mxu0 %v7485_v6  ;;  %5167 = vmatpush1.bf16.msra.mxu1 %v7511_v4 }
 0x87c   : > { %5133 = vmatprep.subr.bf16.mxu0 %v7498_v29  ;;  %5169 = vmatprep.subr.bf16.mxu1 %v7520_v46 }
 0x87f   : > { %5135 = vmatpush1.bf16.msra.mxu0 %v7505_v48  ;;  %5171 = vmatpush1.bf16.msra.mxu1 %v7533_v38 }
 0x880   : > { %5137 = vmatprep.subr.bf16.mxu0 %v7518_v22  ;;  %5173 = vmatprep.subr.bf16.mxu1 %v7540_v7 }
 0x883   : > { %5139 = vmatpush1.bf16.msra.mxu0 %v7526_v17  ;;  %5175 = vmatpush1.bf16.msra.mxu1 %v7553_v63 }
 0x884   : > { %5141 = vmatprep.subr.bf16.mxu0 %v7535_v52  ;;  %5177 = vmatprep.subr.bf16.mxu1 %v7561_v26 }
 0x887   : > { %5143 = vmatpush1.bf16.msra.mxu0 %v7546_v47  ;;  %5179 = vmatpush1.bf16.msra.mxu1 %v7570_v54 }
 0x888   : > { %5145 = vmatprep.subr.bf16.mxu0 %v7555_v10  ;;  %5181 = vmatprep.subr.bf16.mxu1 %v7583_v8 }
 0x88b   : > { %5147 = vmatpush1.bf16.msra.mxu0 %v7566_v40  ;;  %5183 = vmatpush1.bf16.msra.mxu1 %v7590_v41 }
 0x88c   : > { %5149 = vmatprep.subr.bf16.mxu0 %v7578_v14  ;;  %5217 = vmatprep.subr.bf16.mxu1 %v7443_v51 }
 0x88f   : > { %5151 = vmatpush1.bf16.msra.mxu0 %v7585_v27 }
 0x890   : > { %5185 = vmatprep.subr.bf16.mxu0 %v7438_v43 }
 0x90c   : > { %v2194_v33 = vpop.f32.mrb[14].mxu0  ;;  %v2265_v45 = vpop.f32.mrb[14].mxu1 }
 0x90d   : > { %v5646_v21 = vadd.f32 %v2194_v33, %v7040_v35  ;;  %v2196_v20 = vpop.f32.mrb[15].mxu0  ;;  %v2267_v28 = vpop.f32.mrb[15].mxu1  ;;  %v5662_v23 = vadd.f32 %v2265_v45, %v7057_v1 }
 0x90e   : > { %v5647_v50 = vadd.f32 %v2196_v20, %v7044_v37  ;;  %v5663_v13 = vadd.f32 %v2267_v28, %v7051_v57 }
 0x90f   : > { %v4315_v56 = vmul.f32 -1.442695, %v5646_v21 }
 0x910   : > { %v4316_v60 = vmul.f32 -1.442695, %v5647_v50  ;;  %v4317_v19 = vmul.f32 -1.442695, %v5663_v13 }
 0x911   : > { %5948 = vpow2.f32 %v4315_v56 }
 0x912   : > { %5950 = vpow2.f32 %v4316_v60 }
 0x913   : > { %5952 = vpow2.f32 %v4317_v19 }
 0x914   : > { %5954 = vtanh.f32 %v5662_v23 }
 0x91b   : > { %v5949_v32 = vpop.eup %5948 }
 0x91c   : > { %v5951_v36 = vpop.eup %5950  ;;  %v2277_v58 = vadd.f32 1.0, %v5949_v32 }
 0x91d   : > { %v2283_v62 = vadd.f32 1.0, %v5951_v36  ;;  %v5953_v35 = vpop.eup %5952 }
 0x91e   : > { %5956 = vrcp.f32 %v2277_v58  ;;  %v5955_v9 = vpop.eup %5954  ;;  %v2290_v15 = vadd.f32 1.0, %v5953_v35 }
 0x91f   : > { %5958 = vrcp.f32 %v2283_v62 }
 0x920   : > { %5960 = vrcp.f32 %v2290_v15 }
 0x928   : > { %v5957_v37 = vpop.eup %5956 }
 0x929   : > { %v5959_v18 = vpop.eup %5958  ;;  %v2294_v2 = vmul.f32 %v5957_v37, %v5955_v9 }
 0x92a   : > { %v2293_v39 = vmul.f32 %v5959_v18, %v7338_v25  ;;  %v5961_v1 = vpop.eup %5960  ;;  %v4446_v25 = vld [vmem:[%s6733_s25 + $0x4] sm:$0xf] }
 0x92b   : > { %v7643_v45 = vrot.slane %v4446_v25, %v694_v31  ;;  %v7647_v21 = vrot.slane %v4446_v25, %v698_v34  ;;  %v7653_v32 = vrot.slane %v4446_v25, %v706_v42  ;;  %v7658_v34 = vrot.slane %v4446_v25, %v702_v59 }
 0x92c   : > { %v2295_v57 = vadd.f32 %v2294_v2, %v2293_v39 }
 0x92e   : > { %5962 = vtanh.f32 %v2295_v57 }
 0x938   : > { %v5963_v11 = vpop.eup %5962 }
 0x939   : > { %v2297_v33 = vmul.f32 %v5963_v11, %v5961_v1 }
 0x93b   : > { %2558 = vmatmul.mubr.f32.gmra.mrb[30].mxu0 %v2297_v33  ;;  %2671 = vmatmul.mubr.f32.gmra.mrb[30].mxu1 %v2297_v33 }
 0x93c   : > { %2741 = vmatprep.mubr.f32.mxu0 %v6363_v0  ;;  %2812 = vmatprep.mubr.f32.mxu1 %v6363_v0 }
 0x93f   : > { %2742 = vmatmul.mubr.f32.vlgmr.msra.gmra.mrb[16].mxu0 %v6363_v0  ;;  %2813 = vmatmul.mubr.f32.vlgmr.msra.gmra.mrb[16].mxu1 %v6363_v0 }
 0x940   : > { %5187 = vmatpush1.bf16.msra.mxu0 %v7445_v55  ;;  %5219 = vmatpush1.bf16.msra.mxu1 %v7450_v49 }
 0x941   : > { %5189 = vmatprep.subr.bf16.mxu0 %v7458_v61  ;;  %5221 = vmatprep.subr.bf16.mxu1 %v7463_v24 }
 0x942   : > { %2911 = vmatprep.mubr.f32.mxu0 %v6363_v0  ;;  %2982 = vmatprep.mubr.f32.mxu1 %v6363_v0 }
 0x944   : > { %5191 = vmatpush1.bf16.msra.mxu0 %v7465_v12  ;;  %5223 = vmatpush1.bf16.msra.mxu1 %v7470_v5 }
 0x945   : > { %5193 = vmatprep.subr.bf16.mxu0 %v7478_v53  ;;  %5225 = vmatprep.subr.bf16.mxu1 %v7483_v3 }
 0x948   : > { %5195 = vmatpush1.bf16.msra.mxu0 %v7485_v6  ;;  %5227 = vmatpush1.bf16.msra.mxu1 %v7490_v16 }
 0x949   : > { %5197 = vmatprep.subr.bf16.mxu0 %v7498_v29  ;;  %5229 = vmatprep.subr.bf16.mxu1 %v7503_v44 }
 0x94c   : > { %5199 = vmatpush1.bf16.msra.mxu0 %v7505_v48  ;;  %5231 = vmatpush1.bf16.msra.mxu1 %v7511_v4 }
 0x94d   : > { %5201 = vmatprep.subr.bf16.mxu0 %v7518_v22  ;;  %5233 = vmatprep.subr.bf16.mxu1 %v7520_v46 }
 0x950   : > { %5203 = vmatpush1.bf16.msra.mxu0 %v7526_v17  ;;  %5235 = vmatpush1.bf16.msra.mxu1 %v7533_v38 }
 0x951   : > { %5205 = vmatprep.subr.bf16.mxu0 %v7535_v52  ;;  %5237 = vmatprep.subr.bf16.mxu1 %v7540_v7 }
 0x954   : > { %5207 = vmatpush1.bf16.msra.mxu0 %v7546_v47  ;;  %5239 = vmatpush1.bf16.msra.mxu1 %v7553_v63 }
 0x955   : > { %5209 = vmatprep.subr.bf16.mxu0 %v7555_v10  ;;  %5241 = vmatprep.subr.bf16.mxu1 %v7561_v26 }
 0x958   : > { %5211 = vmatpush1.bf16.msra.mxu0 %v7566_v40  ;;  %5243 = vmatpush1.bf16.msra.mxu1 %v7570_v54 }
 0x959   : > { %5213 = vmatprep.subr.bf16.mxu0 %v7578_v14  ;;  %5245 = vmatprep.subr.bf16.mxu1 %v7583_v8 }
 0x95c   : > { %5215 = vmatpush1.bf16.msra.mxu0 %v7585_v27  ;;  %5247 = vmatpush1.bf16.msra.mxu1 %v7590_v41 }
 0x95d   : > { %5249 = vmatprep.subr.bf16.mxu0 %v7438_v43  ;;  %5281 = vmatprep.subr.bf16.mxu1 %v7443_v51 }
 0xa12   : > { %v2743_v20 = vpop.f32.mrb[16].mxu0  ;;  %v2814_v28 = vpop.f32.mrb[16].mxu1 }
 0xa13   : > { %v5664_v50 = vadd.f32 %v2743_v20, %v7643_v45  ;;  %v2745_v56 = vpop.f32.mrb[17].mxu0  ;;  %v2816_v60 = vpop.f32.mrb[17].mxu1  ;;  %v5680_v58 = vadd.f32 %v2814_v28, %v7658_v34 }
 0xa14   : > { %v5665_v13 = vadd.f32 %v2745_v56, %v7647_v21  ;;  %v5681_v31 = vadd.f32 %v2816_v60, %v7653_v32 }
 0xa15   : > { %v4447_v19 = vmul.f32 -1.442695, %v5664_v50 }
 0xa16   : > { %v4448_v23 = vmul.f32 -1.442695, %v5665_v13  ;;  %v4449_v36 = vmul.f32 -1.442695, %v5681_v31 }
 0xa17   : > { %5964 = vpow2.f32 %v4447_v19 }
 0xa18   : > { %5966 = vpow2.f32 %v4448_v23 }
 0xa19   : > { %5968 = vpow2.f32 %v4449_v36 }
 0xa1a   : > { %5970 = vtanh.f32 %v5680_v58 }
 0xa21   : > { %v5965_v62 = vpop.eup %5964 }
 0xa22   : > { %v5967_v35 = vpop.eup %5966  ;;  %v2826_v9 = vadd.f32 1.0, %v5965_v62 }
 0xa23   : > { %v2832_v37 = vadd.f32 1.0, %v5967_v35  ;;  %v5969_v42 = vpop.eup %5968 }
 0xa24   : > { %5972 = vrcp.f32 %v2826_v9  ;;  %v5971_v18 = vpop.eup %5970  ;;  %v2839_v57 = vadd.f32 1.0, %v5969_v42 }
 0xa25   : > { %5974 = vrcp.f32 %v2832_v37 }
 0xa26   : > { %5976 = vrcp.f32 %v2839_v57 }
 0xa2e   : > { %v5973_v2 = vpop.eup %5972 }
 0xa2f   : > { %v5975_v15 = vpop.eup %5974  ;;  %v2843_v39 = vmul.f32 %v5973_v2, %v5971_v18 }
 0xa30   : > { %v2842_v30 = vmul.f32 0.0, %v5975_v15  ;;  %v5977_v1 = vpop.eup %5976 }
 0xa32   : > { %v7661_v59 = vadd.f32 %v2843_v39, %v2842_v30 }
 0xa34   : > { %5978 = vtanh.f32 %v7661_v59 }
 0xa3e   : > { %v5979_v11 = vpop.eup %5978 }
 0xa3f   : > { %v2846_v33 = vmul.f32 %v5979_v11, %v5977_v1 }
 0xa41   : > { %2912 = vmatmul.mubr.f32.vlgmr.msra.gmra.mrb[18].mxu0 %v2846_v33  ;;  %2983 = vmatmul.mubr.f32.vlgmr.msra.gmra.mrb[18].mxu1 %v2846_v33 }
 0xa42   : > { %5251 = vmatpush1.bf16.msra.mxu0 %v7445_v55  ;;  %5283 = vmatpush1.bf16.msra.mxu1 %v7450_v49 }
 0xa43   : > { %5253 = vmatprep.subr.bf16.mxu0 %v7458_v61  ;;  %5285 = vmatprep.subr.bf16.mxu1 %v7463_v24 }
 0xa44   : > { %3081 = vmatprep.mubr.f32.mxu0 %v6363_v0  ;;  %3152 = vmatprep.mubr.f32.mxu1 %v6363_v0 }
 0xa46   : > { %5255 = vmatpush1.bf16.msra.mxu0 %v7465_v12  ;;  %5287 = vmatpush1.bf16.msra.mxu1 %v7470_v5 }
 0xa47   : > { %5257 = vmatprep.subr.bf16.mxu0 %v7478_v53  ;;  %5289 = vmatprep.subr.bf16.mxu1 %v7483_v3 }
 0xa4a   : > { %5259 = vmatpush1.bf16.msra.mxu0 %v7485_v6  ;;  %5291 = vmatpush1.bf16.msra.mxu1 %v7490_v16 }
 0xa4b   : > { %5261 = vmatprep.subr.bf16.mxu0 %v7498_v29  ;;  %5293 = vmatprep.subr.bf16.mxu1 %v7503_v44 }
 0xa4e   : > { %5263 = vmatpush1.bf16.msra.mxu0 %v7505_v48  ;;  %5295 = vmatpush1.bf16.msra.mxu1 %v7511_v4 }
 0xa4f   : > { %5265 = vmatprep.subr.bf16.mxu0 %v7518_v22  ;;  %5297 = vmatprep.subr.bf16.mxu1 %v7520_v46 }
 0xa52   : > { %5267 = vmatpush1.bf16.msra.mxu0 %v7526_v17  ;;  %5299 = vmatpush1.bf16.msra.mxu1 %v7533_v38 }
 0xa53   : > { %5269 = vmatprep.subr.bf16.mxu0 %v7535_v52  ;;  %5301 = vmatprep.subr.bf16.mxu1 %v7540_v7 }
 0xa56   : > { %5271 = vmatpush1.bf16.msra.mxu0 %v7546_v47  ;;  %5303 = vmatpush1.bf16.msra.mxu1 %v7553_v63 }
 0xa57   : > { %5273 = vmatprep.subr.bf16.mxu0 %v7555_v10  ;;  %5305 = vmatprep.subr.bf16.mxu1 %v7561_v26 }
 0xa5a   : > { %5275 = vmatpush1.bf16.msra.mxu0 %v7566_v40  ;;  %5307 = vmatpush1.bf16.msra.mxu1 %v7570_v54 }
 0xa5b   : > { %5277 = vmatprep.subr.bf16.mxu0 %v7578_v14  ;;  %5309 = vmatprep.subr.bf16.mxu1 %v7583_v8 }
 0xa5e   : > { %5279 = vmatpush1.bf16.msra.mxu0 %v7585_v27  ;;  %5311 = vmatpush1.bf16.msra.mxu1 %v7590_v41 }
 0xa5f   : > { %5313 = vmatprep.subr.bf16.mxu0 %v7438_v43  ;;  %5345 = vmatprep.subr.bf16.mxu1 %v7443_v51 }
 0xb14   : > { %v2913_v25 = vpop.f32.mrb[18].mxu0  ;;  %v2984_v20 = vpop.f32.mrb[18].mxu1 }
 0xb15   : > { %v5666_v28 = vadd.f32 %v2913_v25, %v7643_v45  ;;  %v2915_v50 = vpop.f32.mrb[19].mxu0  ;;  %v2986_v56 = vpop.f32.mrb[19].mxu1  ;;  %v5682_v36 = vadd.f32 %v2984_v20, %v7658_v34 }
 0xb16   : > { %v5667_v60 = vadd.f32 %v2915_v50, %v7647_v21  ;;  %v5683_v23 = vadd.f32 %v2986_v56, %v7653_v32 }
 0xb17   : > { %v4450_v13 = vmul.f32 -1.442695, %v5666_v28 }
 0xb18   : > { %v4451_v19 = vmul.f32 -1.442695, %v5667_v60  ;;  %v4452_v31 = vmul.f32 -1.442695, %v5683_v23 }
 0xb19   : > { %5980 = vpow2.f32 %v4450_v13 }
 0xb1a   : > { %5982 = vpow2.f32 %v4451_v19 }
 0xb1b   : > { %5984 = vpow2.f32 %v4452_v31 }
 0xb1c   : > { %5986 = vtanh.f32 %v5682_v36 }
 0xb23   : > { %v5981_v58 = vpop.eup %5980 }
 0xb24   : > { %v5983_v62 = vpop.eup %5982  ;;  %v2996_v35 = vadd.f32 1.0, %v5981_v58 }
 0xb25   : > { %v3002_v9 = vadd.f32 1.0, %v5983_v62  ;;  %v5985_v37 = vpop.eup %5984 }
 0xb26   : > { %5988 = vrcp.f32 %v2996_v35  ;;  %v5987_v42 = vpop.eup %5986  ;;  %v3009_v39 = vadd.f32 1.0, %v5985_v37 }
 0xb27   : > { %5990 = vrcp.f32 %v3002_v9 }
 0xb28   : > { %5992 = vrcp.f32 %v3009_v39 }
 0xb30   : > { %v5989_v18 = vpop.eup %5988 }
 0xb31   : > { %v5991_v2 = vpop.eup %5990  ;;  %v3013_v15 = vmul.f32 %v5989_v18, %v5987_v42 }
 0xb32   : > { %v3012_v57 = vmul.f32 %v5991_v2, %v7661_v59  ;;  %v5993_v1 = vpop.eup %5992 }
 0xb34   : > { %v7703_v30 = vadd.f32 %v3013_v15, %v3012_v57 }
 0xb36   : > { %5994 = vtanh.f32 %v7703_v30 }
 0xb40   : > { %v5995_v11 = vpop.eup %5994 }
 0xb41   : > { %v3016_v33 = vmul.f32 %v5995_v11, %v5993_v1 }
 0xb43   : > { %3082 = vmatmul.mubr.f32.vlgmr.msra.gmra.mrb[20].mxu0 %v3016_v33  ;;  %3153 = vmatmul.mubr.f32.vlgmr.msra.gmra.mrb[20].mxu1 %v3016_v33 }
 0xb44   : > { %5315 = vmatpush1.bf16.msra.mxu0 %v7445_v55  ;;  %5347 = vmatpush1.bf16.msra.mxu1 %v7450_v49 }
 0xb45   : > { %5317 = vmatprep.subr.bf16.mxu0 %v7458_v61  ;;  %5349 = vmatprep.subr.bf16.mxu1 %v7463_v24 }
 0xb46   : > { %3251 = vmatprep.mubr.f32.mxu0 %v6363_v0  ;;  %3322 = vmatprep.mubr.f32.mxu1 %v6363_v0 }
 0xb48   : > { %5319 = vmatpush1.bf16.msra.mxu0 %v7465_v12  ;;  %5351 = vmatpush1.bf16.msra.mxu1 %v7470_v5 }
 0xb49   : > { %5321 = vmatprep.subr.bf16.mxu0 %v7478_v53  ;;  %5353 = vmatprep.subr.bf16.mxu1 %v7483_v3 }
 0xb4c   : > { %5323 = vmatpush1.bf16.msra.mxu0 %v7485_v6  ;;  %5355 = vmatpush1.bf16.msra.mxu1 %v7490_v16 }
 0xb4d   : > { %5325 = vmatprep.subr.bf16.mxu0 %v7498_v29  ;;  %5357 = vmatprep.subr.bf16.mxu1 %v7503_v44 }
 0xb50   : > { %5327 = vmatpush1.bf16.msra.mxu0 %v7505_v48  ;;  %5359 = vmatpush1.bf16.msra.mxu1 %v7511_v4 }
 0xb51   : > { %5329 = vmatprep.subr.bf16.mxu0 %v7518_v22  ;;  %5361 = vmatprep.subr.bf16.mxu1 %v7520_v46 }
 0xb54   : > { %5331 = vmatpush1.bf16.msra.mxu0 %v7526_v17  ;;  %5363 = vmatpush1.bf16.msra.mxu1 %v7533_v38 }
 0xb55   : > { %5333 = vmatprep.subr.bf16.mxu0 %v7535_v52  ;;  %5365 = vmatprep.subr.bf16.mxu1 %v7540_v7 }
 0xb58   : > { %5335 = vmatpush1.bf16.msra.mxu0 %v7546_v47  ;;  %5367 = vmatpush1.bf16.msra.mxu1 %v7553_v63 }
 0xb59   : > { %5337 = vmatprep.subr.bf16.mxu0 %v7555_v10  ;;  %5369 = vmatprep.subr.bf16.mxu1 %v7561_v26 }
 0xb5c   : > { %5339 = vmatpush1.bf16.msra.mxu0 %v7566_v40  ;;  %5371 = vmatpush1.bf16.msra.mxu1 %v7570_v54 }
 0xb5d   : > { %5341 = vmatprep.subr.bf16.mxu0 %v7578_v14  ;;  %5373 = vmatprep.subr.bf16.mxu1 %v7583_v8 }
 0xb60   : > { %5343 = vmatpush1.bf16.msra.mxu0 %v7585_v27  ;;  %5375 = vmatpush1.bf16.msra.mxu1 %v7590_v41 }
 0xb61   : > { %5377 = vmatprep.subr.bf16.mxu0 %v7438_v43  ;;  %5409 = vmatprep.subr.bf16.mxu1 %v7443_v51 }
 0xc16   : > { %v3083_v59 = vpop.f32.mrb[20].mxu0  ;;  %v3154_v25 = vpop.f32.mrb[20].mxu1 }
 0xc17   : > { %v5668_v20 = vadd.f32 %v3083_v59, %v7643_v45  ;;  %v3085_v28 = vpop.f32.mrb[21].mxu0  ;;  %v3156_v50 = vpop.f32.mrb[21].mxu1  ;;  %v5684_v31 = vadd.f32 %v3154_v25, %v7658_v34 }
 0xc18   : > { %v5669_v56 = vadd.f32 %v3085_v28, %v7647_v21  ;;  %v5685_v19 = vadd.f32 %v3156_v50, %v7653_v32 }
 0xc19   : > { %v4453_v60 = vmul.f32 -1.442695, %v5668_v20 }
 0xc1a   : > { %v4454_v13 = vmul.f32 -1.442695, %v5669_v56  ;;  %v4455_v23 = vmul.f32 -1.442695, %v5685_v19 }
 0xc1b   : > { %5996 = vpow2.f32 %v4453_v60 }
 0xc1c   : > { %5998 = vpow2.f32 %v4454_v13 }
 0xc1d   : > { %6000 = vpow2.f32 %v4455_v23 }
 0xc1e   : > { %6002 = vtanh.f32 %v5684_v31 }
 0xc25   : > { %v5997_v36 = vpop.eup %5996 }
 0xc26   : > { %v5999_v58 = vpop.eup %5998  ;;  %v3166_v62 = vadd.f32 1.0, %v5997_v36 }
 0xc27   : > { %v3172_v35 = vadd.f32 1.0, %v5999_v58  ;;  %v6001_v9 = vpop.eup %6000 }
 0xc28   : > { %6004 = vrcp.f32 %v3166_v62  ;;  %v6003_v37 = vpop.eup %6002  ;;  %v3179_v15 = vadd.f32 1.0, %v6001_v9 }
 0xc29   : > { %6006 = vrcp.f32 %v3172_v35 }
 0xc2a   : > { %6008 = vrcp.f32 %v3179_v15 }
 0xc32   : > { %v6005_v42 = vpop.eup %6004 }
 0xc33   : > { %v6007_v18 = vpop.eup %6006  ;;  %v3183_v2 = vmul.f32 %v6005_v42, %v6003_v37 }
 0xc34   : > { %v3182_v39 = vmul.f32 %v6007_v18, %v7703_v30  ;;  %v6009_v1 = vpop.eup %6008 }
 0xc36   : > { %v7745_v57 = vadd.f32 %v3183_v2, %v3182_v39 }
 0xc38   : > { %6010 = vtanh.f32 %v7745_v57 }
 0xc42   : > { %v6011_v11 = vpop.eup %6010 }
 0xc43   : > { %v3186_v33 = vmul.f32 %v6011_v11, %v6009_v1 }
 0xc45   : > { %3252 = vmatmul.mubr.f32.vlgmr.msra.gmra.mrb[22].mxu0 %v3186_v33  ;;  %3323 = vmatmul.mubr.f32.vlgmr.msra.gmra.mrb[22].mxu1 %v3186_v33 }
 0xc46   : > { %5379 = vmatpush1.bf16.msra.mxu0 %v7445_v55  ;;  %5411 = vmatpush1.bf16.msra.mxu1 %v7450_v49 }
 0xc47   : > { %5381 = vmatprep.subr.bf16.mxu0 %v7458_v61  ;;  %5413 = vmatprep.subr.bf16.mxu1 %v7463_v24 }
 0xc48   : > { %3421 = vmatprep.mubr.f32.mxu0 %v6363_v0  ;;  %3492 = vmatprep.mubr.f32.mxu1 %v6363_v0 }
 0xc4a   : > { %5383 = vmatpush1.bf16.msra.mxu0 %v7465_v12  ;;  %5415 = vmatpush1.bf16.msra.mxu1 %v7470_v5 }
 0xc4b   : > { %5385 = vmatprep.subr.bf16.mxu0 %v7478_v53  ;;  %5417 = vmatprep.subr.bf16.mxu1 %v7483_v3 }
 0xc4e   : > { %5387 = vmatpush1.bf16.msra.mxu0 %v7485_v6  ;;  %5419 = vmatpush1.bf16.msra.mxu1 %v7490_v16 }
 0xc4f   : > { %5389 = vmatprep.subr.bf16.mxu0 %v7498_v29  ;;  %5421 = vmatprep.subr.bf16.mxu1 %v7503_v44 }
 0xc52   : > { %5391 = vmatpush1.bf16.msra.mxu0 %v7505_v48  ;;  %5423 = vmatpush1.bf16.msra.mxu1 %v7511_v4 }
 0xc53   : > { %5393 = vmatprep.subr.bf16.mxu0 %v7518_v22  ;;  %5425 = vmatprep.subr.bf16.mxu1 %v7520_v46 }
 0xc56   : > { %5395 = vmatpush1.bf16.msra.mxu0 %v7526_v17  ;;  %5427 = vmatpush1.bf16.msra.mxu1 %v7533_v38 }
 0xc57   : > { %5397 = vmatprep.subr.bf16.mxu0 %v7535_v52  ;;  %5429 = vmatprep.subr.bf16.mxu1 %v7540_v7 }
 0xc5a   : > { %5399 = vmatpush1.bf16.msra.mxu0 %v7546_v47  ;;  %5431 = vmatpush1.bf16.msra.mxu1 %v7553_v63 }
 0xc5b   : > { %5401 = vmatprep.subr.bf16.mxu0 %v7555_v10  ;;  %5433 = vmatprep.subr.bf16.mxu1 %v7561_v26 }
 0xc5e   : > { %5403 = vmatpush1.bf16.msra.mxu0 %v7566_v40  ;;  %5435 = vmatpush1.bf16.msra.mxu1 %v7570_v54 }
 0xc5f   : > { %5405 = vmatprep.subr.bf16.mxu0 %v7578_v14  ;;  %5437 = vmatprep.subr.bf16.mxu1 %v7583_v8 }
 0xc62   : > { %5407 = vmatpush1.bf16.msra.mxu0 %v7585_v27  ;;  %5439 = vmatpush1.bf16.msra.mxu1 %v7590_v41 }
 0xc63   : > { %5441 = vmatprep.subr.bf16.mxu0 %v7438_v43  ;;  %5473 = vmatprep.subr.bf16.mxu1 %v7443_v51 }
 0xd18   : > { %v3253_v30 = vpop.f32.mrb[22].mxu0  ;;  %v3324_v59 = vpop.f32.mrb[22].mxu1 }
 0xd19   : > { %v5670_v25 = vadd.f32 %v3253_v30, %v7643_v45  ;;  %v3255_v20 = vpop.f32.mrb[23].mxu0  ;;  %v3326_v28 = vpop.f32.mrb[23].mxu1  ;;  %v5686_v23 = vadd.f32 %v3324_v59, %v7658_v34 }
 0xd1a   : > { %v5671_v50 = vadd.f32 %v3255_v20, %v7647_v21  ;;  %v5687_v13 = vadd.f32 %v3326_v28, %v7653_v32 }
 0xd1b   : > { %v4456_v56 = vmul.f32 -1.442695, %v5670_v25 }
 0xd1c   : > { %v4457_v60 = vmul.f32 -1.442695, %v5671_v50  ;;  %v4458_v19 = vmul.f32 -1.442695, %v5687_v13 }
 0xd1d   : > { %6012 = vpow2.f32 %v4456_v56 }
 0xd1e   : > { %6014 = vpow2.f32 %v4457_v60 }
 0xd1f   : > { %6016 = vpow2.f32 %v4458_v19 }
 0xd20   : > { %6018 = vtanh.f32 %v5686_v23 }
 0xd27   : > { %v6013_v31 = vpop.eup %6012 }
 0xd28   : > { %v6015_v36 = vpop.eup %6014  ;;  %v3336_v58 = vadd.f32 1.0, %v6013_v31 }
 0xd29   : > { %v3342_v62 = vadd.f32 1.0, %v6015_v36  ;;  %v6017_v35 = vpop.eup %6016 }
 0xd2a   : > { %6020 = vrcp.f32 %v3336_v58  ;;  %v6019_v9 = vpop.eup %6018  ;;  %v3349_v2 = vadd.f32 1.0, %v6017_v35 }
 0xd2b   : > { %6022 = vrcp.f32 %v3342_v62 }
 0xd2c   : > { %6024 = vrcp.f32 %v3349_v2 }
 0xd34   : > { %v6021_v37 = vpop.eup %6020 }
 0xd35   : > { %v6023_v42 = vpop.eup %6022  ;;  %v3353_v18 = vmul.f32 %v6021_v37, %v6019_v9 }
 0xd36   : > { %v3352_v15 = vmul.f32 %v6023_v42, %v7745_v57  ;;  %v6025_v1 = vpop.eup %6024 }
 0xd38   : > { %v7787_v39 = vadd.f32 %v3353_v18, %v3352_v15 }
 0xd3a   : > { %6026 = vtanh.f32 %v7787_v39 }
 0xd44   : > { %v6027_v11 = vpop.eup %6026 }
 0xd45   : > { %v3356_v33 = vmul.f32 %v6027_v11, %v6025_v1 }
 0xd47   : > { %3422 = vmatmul.mubr.f32.vlgmr.msra.gmra.mrb[24].mxu0 %v3356_v33  ;;  %3493 = vmatmul.mubr.f32.vlgmr.msra.gmra.mrb[24].mxu1 %v3356_v33 }
 0xd48   : > { %5443 = vmatpush1.bf16.msra.mxu0 %v7445_v55  ;;  %5475 = vmatpush1.bf16.msra.mxu1 %v7450_v49 }
 0xd49   : > { %5445 = vmatprep.subr.bf16.mxu0 %v7458_v61  ;;  %5477 = vmatprep.subr.bf16.mxu1 %v7463_v24 }
 0xd4a   : > { %3591 = vmatprep.mubr.f32.mxu0 %v6363_v0  ;;  %3662 = vmatprep.mubr.f32.mxu1 %v6363_v0 }
 0xd4c   : > { %5447 = vmatpush1.bf16.msra.mxu0 %v7465_v12  ;;  %5479 = vmatpush1.bf16.msra.mxu1 %v7470_v5 }
 0xd4d   : > { %5449 = vmatprep.subr.bf16.mxu0 %v7478_v53  ;;  %5481 = vmatprep.subr.bf16.mxu1 %v7483_v3 }
 0xd50   : > { %5451 = vmatpush1.bf16.msra.mxu0 %v7485_v6  ;;  %5483 = vmatpush1.bf16.msra.mxu1 %v7490_v16 }
 0xd51   : > { %5453 = vmatprep.subr.bf16.mxu0 %v7498_v29  ;;  %5485 = vmatprep.subr.bf16.mxu1 %v7503_v44 }
 0xd54   : > { %5455 = vmatpush1.bf16.msra.mxu0 %v7505_v48  ;;  %5487 = vmatpush1.bf16.msra.mxu1 %v7511_v4 }
 0xd55   : > { %5457 = vmatprep.subr.bf16.mxu0 %v7518_v22  ;;  %5489 = vmatprep.subr.bf16.mxu1 %v7520_v46 }
 0xd58   : > { %5459 = vmatpush1.bf16.msra.mxu0 %v7526_v17  ;;  %5491 = vmatpush1.bf16.msra.mxu1 %v7533_v38 }
 0xd59   : > { %5461 = vmatprep.subr.bf16.mxu0 %v7535_v52  ;;  %5493 = vmatprep.subr.bf16.mxu1 %v7540_v7 }
 0xd5c   : > { %5463 = vmatpush1.bf16.msra.mxu0 %v7546_v47  ;;  %5495 = vmatpush1.bf16.msra.mxu1 %v7553_v63 }
 0xd5d   : > { %5465 = vmatprep.subr.bf16.mxu0 %v7555_v10  ;;  %5497 = vmatprep.subr.bf16.mxu1 %v7561_v26 }
 0xd60   : > { %5467 = vmatpush1.bf16.msra.mxu0 %v7566_v40  ;;  %5499 = vmatpush1.bf16.msra.mxu1 %v7570_v54 }
 0xd61   : > { %5469 = vmatprep.subr.bf16.mxu0 %v7578_v14  ;;  %5501 = vmatprep.subr.bf16.mxu1 %v7583_v8 }
 0xd64   : > { %5471 = vmatpush1.bf16.msra.mxu0 %v7585_v27  ;;  %5503 = vmatpush1.bf16.msra.mxu1 %v7590_v41 }
 0xd65   : > { %5505 = vmatprep.subr.bf16.mxu0 %v7438_v43  ;;  %5537 = vmatprep.subr.bf16.mxu1 %v7443_v51 }
 0xe1a   : > { %v3423_v57 = vpop.f32.mrb[24].mxu0  ;;  %v3494_v30 = vpop.f32.mrb[24].mxu1 }
 0xe1b   : > { %v5672_v59 = vadd.f32 %v3423_v57, %v7643_v45  ;;  %v3425_v25 = vpop.f32.mrb[25].mxu0  ;;  %v3496_v20 = vpop.f32.mrb[25].mxu1  ;;  %v5688_v19 = vadd.f32 %v3494_v30, %v7658_v34 }
 0xe1c   : > { %v5673_v28 = vadd.f32 %v3425_v25, %v7647_v21  ;;  %v5689_v60 = vadd.f32 %v3496_v20, %v7653_v32 }
 0xe1d   : > { %v4459_v50 = vmul.f32 -1.442695, %v5672_v59 }
 0xe1e   : > { %v4460_v56 = vmul.f32 -1.442695, %v5673_v28  ;;  %v4461_v13 = vmul.f32 -1.442695, %v5689_v60 }
 0xe1f   : > { %6028 = vpow2.f32 %v4459_v50 }
 0xe20   : > { %6030 = vpow2.f32 %v4460_v56 }
 0xe21   : > { %6032 = vpow2.f32 %v4461_v13 }
 0xe22   : > { %6034 = vtanh.f32 %v5688_v19 }
 0xe29   : > { %v6029_v23 = vpop.eup %6028 }
 0xe2a   : > { %v6031_v31 = vpop.eup %6030  ;;  %v3506_v36 = vadd.f32 1.0, %v6029_v23 }
 0xe2b   : > { %v3512_v58 = vadd.f32 1.0, %v6031_v31  ;;  %v6033_v62 = vpop.eup %6032 }
 0xe2c   : > { %6036 = vrcp.f32 %v3506_v36  ;;  %v6035_v35 = vpop.eup %6034  ;;  %v3519_v18 = vadd.f32 1.0, %v6033_v62 }
 0xe2d   : > { %6038 = vrcp.f32 %v3512_v58 }
 0xe2e   : > { %6040 = vrcp.f32 %v3519_v18 }
 0xe36   : > { %v6037_v9 = vpop.eup %6036 }
 0xe37   : > { %v6039_v37 = vpop.eup %6038  ;;  %v3523_v42 = vmul.f32 %v6037_v9, %v6035_v35 }
 0xe38   : > { %v3522_v2 = vmul.f32 %v6039_v37, %v7787_v39  ;;  %v6041_v1 = vpop.eup %6040 }
 0xe3a   : > { %v7829_v15 = vadd.f32 %v3523_v42, %v3522_v2 }
 0xe3c   : > { %6042 = vtanh.f32 %v7829_v15 }
 0xe46   : > { %v6043_v11 = vpop.eup %6042 }
 0xe47   : > { %v3526_v33 = vmul.f32 %v6043_v11, %v6041_v1 }
 0xe49   : > { %3592 = vmatmul.mubr.f32.vlgmr.msra.gmra.mrb[26].mxu0 %v3526_v33  ;;  %3663 = vmatmul.mubr.f32.vlgmr.msra.gmra.mrb[26].mxu1 %v3526_v33 }
 0xe4a   : > { %5507 = vmatpush1.bf16.msra.mxu0 %v7445_v55  ;;  %5539 = vmatpush1.bf16.msra.mxu1 %v7450_v49 }
 0xe4b   : > { %5509 = vmatprep.subr.bf16.mxu0 %v7458_v61  ;;  %5541 = vmatprep.subr.bf16.mxu1 %v7463_v24 }
 0xe4c   : > { %3761 = vmatprep.mubr.f32.mxu0 %v6363_v0  ;;  %3832 = vmatprep.mubr.f32.mxu1 %v6363_v0 }
 0xe4e   : > { %5511 = vmatpush1.bf16.msra.mxu0 %v7465_v12  ;;  %5543 = vmatpush1.bf16.msra.mxu1 %v7470_v5 }
 0xe4f   : > { %5513 = vmatprep.subr.bf16.mxu0 %v7478_v53  ;;  %5545 = vmatprep.subr.bf16.mxu1 %v7483_v3 }
 0xe52   : > { %5515 = vmatpush1.bf16.msra.mxu0 %v7485_v6  ;;  %5547 = vmatpush1.bf16.msra.mxu1 %v7490_v16 }
 0xe53   : > { %5517 = vmatprep.subr.bf16.mxu0 %v7498_v29  ;;  %5549 = vmatprep.subr.bf16.mxu1 %v7503_v44 }
 0xe56   : > { %5519 = vmatpush1.bf16.msra.mxu0 %v7505_v48  ;;  %5551 = vmatpush1.bf16.msra.mxu1 %v7511_v4 }
 0xe57   : > { %5521 = vmatprep.subr.bf16.mxu0 %v7518_v22  ;;  %5553 = vmatprep.subr.bf16.mxu1 %v7520_v46 }
 0xe5a   : > { %5523 = vmatpush1.bf16.msra.mxu0 %v7526_v17  ;;  %5555 = vmatpush1.bf16.msra.mxu1 %v7533_v38 }
 0xe5b   : > { %5525 = vmatprep.subr.bf16.mxu0 %v7535_v52  ;;  %5557 = vmatprep.subr.bf16.mxu1 %v7540_v7 }
 0xe5e   : > { %5527 = vmatpush1.bf16.msra.mxu0 %v7546_v47  ;;  %5559 = vmatpush1.bf16.msra.mxu1 %v7553_v63 }
 0xe5f   : > { %5529 = vmatprep.subr.bf16.mxu0 %v7555_v10  ;;  %5561 = vmatprep.subr.bf16.mxu1 %v7561_v26 }
 0xe62   : > { %5531 = vmatpush1.bf16.msra.mxu0 %v7566_v40  ;;  %5563 = vmatpush1.bf16.msra.mxu1 %v7570_v54 }
 0xe63   : > { %5533 = vmatprep.subr.bf16.mxu0 %v7578_v14  ;;  %5565 = vmatprep.subr.bf16.mxu1 %v7583_v8 }
 0xe66   : > { %5535 = vmatpush1.bf16.msra.mxu0 %v7585_v27  ;;  %5567 = vmatpush1.bf16.msra.mxu1 %v7590_v41 }
 0xe67   : > { %5569 = vmatprep.subr.bf16.mxu0 %v7438_v43  ;;  %5601 = vmatprep.subr.bf16.mxu1 %v7443_v51 }
 0xf1c   : > { %v3593_v39 = vpop.f32.mrb[26].mxu0  ;;  %v3664_v57 = vpop.f32.mrb[26].mxu1 }
 0xf1d   : > { %v5674_v30 = vadd.f32 %v3593_v39, %v7643_v45  ;;  %v3595_v59 = vpop.f32.mrb[27].mxu0  ;;  %v3666_v25 = vpop.f32.mrb[27].mxu1  ;;  %v5690_v13 = vadd.f32 %v3664_v57, %v7658_v34 }
 0xf1e   : > { %v5675_v20 = vadd.f32 %v3595_v59, %v7647_v21  ;;  %v5691_v56 = vadd.f32 %v3666_v25, %v7653_v32 }
 0xf1f   : > { %v4462_v28 = vmul.f32 -1.442695, %v5674_v30 }
 0xf20   : > { %v4463_v50 = vmul.f32 -1.442695, %v5675_v20  ;;  %v4464_v60 = vmul.f32 -1.442695, %v5691_v56 }
 0xf21   : > { %6044 = vpow2.f32 %v4462_v28 }
 0xf22   : > { %6046 = vpow2.f32 %v4463_v50 }
 0xf23   : > { %6048 = vpow2.f32 %v4464_v60 }
 0xf24   : > { %6050 = vtanh.f32 %v5690_v13 }
 0xf2b   : > { %v6045_v43 = vpop.eup %6044 }
 0xf2c   : > { %v6047_v19 = vpop.eup %6046  ;;  %v3676_v51 = vadd.f32 1.0, %v6045_v43 }
 0xf2d   : > { %v3682_v23 = vadd.f32 1.0, %v6047_v19  ;;  %v6049_v31 = vpop.eup %6048  ;;  %v4472_v19 = vld [vmem:[%s475_s19] ss:$0 sm:$0xff] }
 0xf2e   : > { %6052 = vrcp.f32 %v3676_v51  ;;  %v6051_v36 = vpop.eup %6050  ;;  %v3689_v9 = vadd.f32 1.0, %v6049_v31  ;;  %v4039_v51 = vld [vmem:[%s484_s14] sm:$0xff] }
 0xf2f   : > { %6054 = vrcp.f32 %v3682_v23  ;;  %v4471_v31 = vld [vmem:[%s467_s6] ss:$0 sm:$0xff] }
 0xf30   : > { %6056 = vrcp.f32 %v3689_v9 }
 0xf38   : > { %v6053_v58 = vpop.eup %6052 }
 0xf39   : > { %v6055_v62 = vpop.eup %6054  ;;  %v3693_v35 = vmul.f32 %v6053_v58, %v6051_v36  ;;  %v4055_v58 = vmul.f32 %v4472_v19, %v4039_v51 }
 0xf3a   : > { %v3692_v37 = vmul.f32 %v6055_v62, %v7829_v15  ;;  %v6057_v18 = vpop.eup %6056 }
 0xf3c   : > { %v7871_v42 = vadd.f32 %v3693_v35, %v3692_v37  ;;  %v4057_v35 = vsel %vm4056_vm0, %v4055_v58, 0.0  ;;  %v4473_v37 = vld [vmem:[%s549_s12] ss:$0 sm:$0xff] }
 0xf3e   : > { %6058 = vtanh.f32 %v7871_v42 }
 0xf48   : > { %v6059_v2 = vpop.eup %6058 }
 0xf49   : > { %v3696_v1 = vmul.f32 %v6059_v2, %v6057_v18 }
 0xf4b   : > { %3762 = vmatmul.mubr.f32.vlgmr.msra.gmra.mrb[28].mxu0 %v3696_v1  ;;  %3833 = vmatmul.mubr.f32.vlgmr.msra.gmra.mrb[28].mxu1 %v3696_v1 }
 0xf4c   : > { %5571 = vmatpush1.bf16.msra.mxu0 %v7445_v55  ;;  %5603 = vmatpush1.bf16.msra.mxu1 %v7450_v49 }
 0xf4d   : > { %5573 = vmatprep.subr.bf16.mxu0 %v7458_v61  ;;  %5605 = vmatprep.subr.bf16.mxu1 %v7463_v24 }
 0xf4e   : > { %3931 = vmatprep.mubr.f32.mxu0 %v6363_v0  ;;  %4002 = vmatprep.mubr.f32.mxu1 %v6363_v0 }
 0xf50   : > { %5575 = vmatpush1.bf16.msra.mxu0 %v7465_v12  ;;  %5607 = vmatpush1.bf16.msra.mxu1 %v7470_v5 }
 0xf51   : > { %5577 = vmatprep.subr.bf16.mxu0 %v7478_v53  ;;  %5609 = vmatprep.subr.bf16.mxu1 %v7483_v3 }
 0xf54   : > { %5579 = vmatpush1.bf16.msra.mxu0 %v7485_v6  ;;  %5611 = vmatpush1.bf16.msra.mxu1 %v7490_v16 }
 0xf55   : > { %5581 = vmatprep.subr.bf16.mxu0 %v7498_v29  ;;  %5613 = vmatprep.subr.bf16.mxu1 %v7503_v44 }
 0xf58   : > { %5583 = vmatpush1.bf16.msra.mxu0 %v7505_v48  ;;  %5615 = vmatpush1.bf16.msra.mxu1 %v7511_v4 }
 0xf59   : > { %5585 = vmatprep.subr.bf16.mxu0 %v7518_v22  ;;  %5617 = vmatprep.subr.bf16.mxu1 %v7520_v46 }
 0xf5c   : > { %5587 = vmatpush1.bf16.msra.mxu0 %v7526_v17  ;;  %5619 = vmatpush1.bf16.msra.mxu1 %v7533_v38 }
 0xf5d   : > { %5589 = vmatprep.subr.bf16.mxu0 %v7535_v52  ;;  %5621 = vmatprep.subr.bf16.mxu1 %v7540_v7 }
 0xf60   : > { %5591 = vmatpush1.bf16.msra.mxu0 %v7546_v47  ;;  %5623 = vmatpush1.bf16.msra.mxu1 %v7553_v63 }
 0xf61   : > { %5593 = vmatprep.subr.bf16.mxu0 %v7555_v10  ;;  %5625 = vmatprep.subr.bf16.mxu1 %v7561_v26 }
 0xf64   : > { %5595 = vmatpush1.bf16.msra.mxu0 %v7566_v40  ;;  %5627 = vmatpush1.bf16.msra.mxu1 %v7570_v54 }
 0xf65   : > { %5597 = vmatprep.subr.bf16.mxu0 %v7578_v14  ;;  %5629 = vmatprep.subr.bf16.mxu1 %v7583_v8 }
 0xf68   : > { %5599 = vmatpush1.bf16.msra.mxu0 %v7585_v27  ;;  %5631 = vmatpush1.bf16.msra.mxu1 %v7590_v41 }
0x101e   : > { %v3763_v0 = vpop.f32.mrb[28].mxu0  ;;  %v3834_v55 = vpop.f32.mrb[28].mxu1 }
0x101f   : > { %v5676_v49 = vadd.f32 %v3763_v0, %v7643_v45  ;;  %v3765_v61 = vpop.f32.mrb[29].mxu0  ;;  %v3836_v24 = vpop.f32.mrb[29].mxu1  ;;  %v5692_v16 = vadd.f32 %v3834_v55, %v7658_v34 }
0x1020   : > { %v5677_v12 = vadd.f32 %v3765_v61, %v7647_v21  ;;  %v5693_v3 = vadd.f32 %v3836_v24, %v7653_v32 }
0x1021   : > { %v4465_v5 = vmul.f32 -1.442695, %v5676_v49 }
0x1022   : > { %v4466_v53 = vmul.f32 -1.442695, %v5677_v12  ;;  %v4467_v6 = vmul.f32 -1.442695, %v5693_v3 }
0x1023   : > { %6060 = vpow2.f32 %v4465_v5 }
0x1024   : > { %6062 = vpow2.f32 %v4466_v53 }
0x1025   : > { %6064 = vpow2.f32 %v4467_v6 }
0x1026   : > { %6066 = vtanh.f32 %v5692_v16 }
0x102d   : > { %v6061_v29 = vpop.eup %6060 }
0x102e   : > { %v6063_v44 = vpop.eup %6062  ;;  %v3846_v48 = vadd.f32 1.0, %v6061_v29 }
0x102f   : > { %v3852_v4 = vadd.f32 1.0, %v6063_v44  ;;  %v6065_v22 = vpop.eup %6064 }
0x1030   : > { %6068 = vrcp.f32 %v3846_v48  ;;  %v6067_v46 = vpop.eup %6066  ;;  %v3859_v7 = vadd.f32 1.0, %v6065_v22 }
0x1031   : > { %6070 = vrcp.f32 %v3852_v4 }
0x1032   : > { %6072 = vrcp.f32 %v3859_v7 }
0x103a   : > { %v6069_v17 = vpop.eup %6068 }
0x103b   : > { %v6071_v38 = vpop.eup %6070  ;;  %v3863_v52 = vmul.f32 %v6069_v17, %v6067_v46 }
0x103c   : > { %v3862_v47 = vmul.f32 %v6071_v38, %v7871_v42  ;;  %v6073_v10 = vpop.eup %6072 }
0x103e   : > { %v3864_v63 = vadd.f32 %v3863_v52, %v3862_v47 }
0x1040   : > { %6074 = vtanh.f32 %v3864_v63 }
0x104a   : > { %v6075_v26 = vpop.eup %6074 }
0x104b   : > { %v3866_v40 = vmul.f32 %v6075_v26, %v6073_v10 }
0x104d   : > { %3932 = vmatmul.mubr.f32.vlgmr.msra.gmra.mrb[30].mxu0 %v3866_v40  ;;  %4003 = vmatmul.mubr.f32.vlgmr.msra.gmra.mrb[30].mxu1 %v3866_v40 }
0x1120   : > { %v3933_v54 = vpop.f32.mrb[30].mxu0  ;;  %v4004_v14 = vpop.f32.mrb[30].mxu1 }
0x1121   : > { %v5678_v8 = vadd.f32 %v3933_v54, %v7643_v45  ;;  %v3935_v27 = vpop.f32.mrb[31].mxu0  ;;  %v4006_v41 = vpop.f32.mrb[31].mxu1  ;;  %v5694_v30 = vadd.f32 %v4004_v14, %v7658_v34 }
0x1122   : > { %v5679_v15 = vadd.f32 %v3935_v27, %v7647_v21  ;;  %v5695_v39 = vadd.f32 %v4006_v41, %v7653_v32 }
0x1123   : > { %v4468_v11 = vmul.f32 -1.442695, %v5678_v8 }
0x1124   : > { %v4469_v33 = vmul.f32 -1.442695, %v5679_v15  ;;  %v4470_v57 = vmul.f32 -1.442695, %v5695_v39 }
0x1125   : > { %6076 = vpow2.f32 %v4468_v11 }
0x1126   : > { %6078 = vpow2.f32 %v4469_v33 }
0x1127   : > { %6080 = vpow2.f32 %v4470_v57 }
0x1128   : > { %6082 = vtanh.f32 %v5694_v30 }
0x112f   : > { %v6077_v59 = vpop.eup %6076 }
0x1130   : > { %v6079_v25 = vpop.eup %6078  ;;  %v4016_v20 = vadd.f32 1.0, %v6077_v59 }
0x1131   : > { %v4022_v45 = vadd.f32 1.0, %v6079_v25  ;;  %v6081_v21 = vpop.eup %6080 }
0x1132   : > { %6084 = vrcp.f32 %v4016_v20  ;;  %v6083_v28 = vpop.eup %6082  ;;  %v4029_v32 = vadd.f32 1.0, %v6081_v21 }
0x1133   : > { %6086 = vrcp.f32 %v4022_v45 }
0x1134   : > { %6088 = vrcp.f32 %v4029_v32 }
0x113c   : > { %v6085_v50 = vpop.eup %6084 }
0x113d   : > { %v6087_v56 = vpop.eup %6086  ;;  %v4033_v60 = vmul.f32 %v6085_v50, %v6083_v28 }
0x113e   : > { %v4032_v13 = vmul.f32 %v6087_v56, %v3864_v63  ;;  %v6089_v34 = vpop.eup %6088 }
0x1140   : > { %v4034_v43 = vadd.f32 %v4033_v60, %v4032_v13 }
0x1142   : > { %6090 = vtanh.f32 %v4034_v43 }
0x114c   : > { %v6091_v23 = vpop.eup %6090 }
0x114d   : > { %v4036_v36 = vmul.f32 %v6091_v23, %v6089_v34 }
0x114f   : > { %v4046_v62 = vmul.f32 %v4471_v31, %v4036_v36 }
0x1151   : > { %4047 = vadd.xlane.f32.xlu0 %v4046_v62 }
0x1155   : > { %4058 = vadd.xlane.f32.xlu0 %v4057_v35 }
0x11de   : > { %v4048_v9 = vpop.xlane.xlu0 %4047 }
0x11e2   : > { %v4059_v42 = vpop.xlane.xlu0 %4058 }
0x11e3   : > { %v4060_v18 = vadd.f32 %v4059_v42, %v4048_v9 }
0x11e5   : > { %v4068_v2 = vadd.f32 %v4473_v37, %v4060_v18 }
0x11e7   : > { %4070 = vst.msk [vmem:[%s553_s27] sm:$0xff] %vm4069_vm1, %v4068_v2 }
0x11e8 PF: > { %s7991_s30 = sld [smem:[#allocation18_spill]]  ;;  %s7992_s24 = sld [smem:[#allocation17_spill]] }
0x11e9   : > { %s7993_s29 = sld [smem:[#allocation19_spill]]  ;;  %s7994_s27 = smov %s6340_s28 }
0x11ee   : > { %p27_p2 = scmp.ge.s32.totalorder %s7991_s30, 5   ;;  %s7995_s28 = smov %s7992_s24 }
0x11f0   :  { %29 = sbr.rel (!%p27_p2) target bundleno = 14 (0xe), region = 170 }
0x11f7   :  { %4090 = vsyncpa [#allocation3], 1 }
0x11f8   :  { %4092 = vsyncpa [#allocation3 + $0x1], 1 }
0x11f9   :  { %4093 = vsyncpa [#allocation5], 1 }
0x11fa   :  { %4095 = vsyncpa [#allocation5 + $0x1], 1 }
0x11fb   :  { %4096 = vsyncpa [#allocation8], 1 }
0x11fc   :  { %4098 = vsyncpa [#allocation8 + $0x1], 1 }
0x11fd   :  { %4099 = vsyncpa [#allocation11], 1 }
0x11fe   :  { %4101 = vsyncpa [#allocation11 + $0x1], 1 }

</bundles_post_ra>
